<compile_context>
chip_gen: v7x
topology: tpu7x:2x2x1
jax: 0.10.0
libtpu: 0.0.40
codegen_flags: <defaults>
</compile_context>

<pallas_src>
import jax
import jax.numpy as jnp
from jax.experimental import pallas as pl
from jax.experimental.pallas import tpu as pltpu

_SLOT = 128  # lane-aligned slot width per batch element in the packed operand


def cnn_encoder_kernel(x_ref, w_ref, bs_ref, ba_ref, spa_ref, avg_ref, xp_ref):
    # x_ref:   (Bt, C, HW)       bf16/f32 -- native NCHW layout, HW on lanes
    # w_ref:   (C, 2*d)          bf16     -- [W_spa^T | W_avg^T], grid-invariant
    # bs_ref:  (1, d)            f32      -- b_spa
    # ba_ref:  (1, d)            f32      -- b_avg
    # spa_ref: (Bt, HW, d)       f32
    # avg_ref: (Bt, 1, d)        f32
    # xp_ref:  (C, Bt*_SLOT)     bf16 scratch -- packed TN LHS, persists
    bt, _, hw = x_ref.shape
    d = avg_ref.shape[-1]
    slot = xp_ref.shape[-1] // bt  # == _SLOT

    # Zero the packed operand once so pad lanes hold defined values.  Pad rows
    # of the matmul result are never read, so this is for determinism only
    # (and therefore it is fine that a second megacore TC skips it).
    @pl.when(pl.program_id(0) == 0)
    def _():
        xp_ref[...] = jnp.zeros_like(xp_ref)

    # Pack Bt batch elements into 128-lane-aligned slots: copy-only loop, each
    # iteration's temp is consumed by its store, so live ranges stay bounded.
    # The astype is a no-op when the producer already emits bf16.
    for i in range(bt):
        xp_ref[:, pl.ds(i * slot, hw)] = x_ref[i].astype(jnp.bfloat16)

    # One TN (contract over C) matmul for both projections: M = Bt*128 >= 256.
    y = jax.lax.dot_general(
        xp_ref[...], w_ref[...], (((0,), (0,)), ((), ())),
        preferred_element_type=jnp.float32)          # (Bt*slot, 2*d) f32
    y3 = y.reshape(bt, slot, 2 * d)                  # clean split: slot % 8 == 0

    # --- spatial path: per-position projection + bias + ReLU, one dense store ---
    spa_ref[...] = jnp.maximum(y3[:, :hw, :d] + bs_ref[...], 0.0)

    # --- avg path: AvgPool2d(7) over a 7x7 map == full spatial mean, which
    #     commutes with the linear projection -> mean of the W_avg columns of
    #     the same matmul result; bias added after the mean (49x less VALU). ---
    avg = jnp.mean(y3[:, :hw, d:], axis=1, keepdims=True)        # (Bt, 1, d)
    avg_ref[...] = jnp.maximum(avg + ba_ref[...], 0.0)


def _pick_batch_tile(batch, d_model):
    # Largest Bt in {8,4,2,1} dividing B, capped so the per-step VMEM footprint
    # (x slab x2 buffers + packed operand + resident weights + f32 matmul
    # result) stays comfortably inside v7x's 64 MiB physical VMEM.
    # (No grid>=2 forcing: that only helped v7x megacore and shrank the DMAs
    #  on single-TC v5e/v6e.)
    if d_model <= 256:
        cap = 8
    elif d_model <= 512:
        cap = 4
    else:
        cap = 2
    for bt in (8, 4, 2, 1):
        if bt <= cap and batch % bt == 0:
            return bt
    return 1


def cnn_encoder(feats_nchw, w_spa, b_spa, w_avg, b_avg):
    """feats_nchw: (B, 2048, 7, 7), ideally bf16 straight from the producer.
    Weights in PyTorch layout (d, 2048); biases (d,)."""
    B, C, H, W = feats_nchw.shape
    assert C == 2048
    assert H == 7 and W == 7, "AvgPool2d(7) semantics assume 7x7 feature maps"
    HW = H * W
    d = w_spa.shape[0]
    assert d % 128 == 0, "keep d_model a multiple of 128 for lane-dense stores"

    # Native NCHW layout, free reshape -- no HBM transpose, no wrapper-side cast.
    x = feats_nchw.reshape(B, C, HW)
    # One-time prep of the small weights: fused (C, 2d) bf16 RHS; biases kept
    # separate so b_spa / b_avg can be applied where they are cheapest.
    w_cat = jnp.concatenate([w_spa.T, w_avg.T], axis=1).astype(jnp.bfloat16)
    bs = b_spa.reshape(1, d).astype(jnp.float32)
    ba = b_avg.reshape(1, d).astype(jnp.float32)

    bt = _pick_batch_tile(B, d)
    grid = (B // bt,)

    flops = 2 * B * HW * (2 * d) * C
    bytes_accessed = (x.size * x.dtype.itemsize          # feature read
                      + w_cat.size * 2 + 2 * d * 4       # weights + biases
                      + B * HW * d * 4 + B * d * 4)      # spa + avg writes

    spa, avg = pl.pallas_call(
        cnn_encoder_kernel,
        out_shape=(
            jax.ShapeDtypeStruct((B, HW, d), jnp.float32),
            jax.ShapeDtypeStruct((B, 1, d), jnp.float32),
        ),
        grid_spec=pltpu.PrefetchScalarGridSpec(
            num_scalar_prefetch=0,
            grid=grid,
            in_specs=[
                pl.BlockSpec((bt, C, HW), lambda g: (g, 0, 0)),   # feature slab
                pl.BlockSpec((C, 2 * d), lambda g: (0, 0)),       # fused weights
                pl.BlockSpec((1, d), lambda g: (0, 0)),           # b_spa
                pl.BlockSpec((1, d), lambda g: (0, 0)),           # b_avg
                # TODO(synk): on v7x, sweep pipeline_mode=pl.Buffered(3) on the
                # feature slab once compute per step drops below the x DMA.
            ],
            out_specs=[
                pl.BlockSpec((bt, HW, d), lambda g: (g, 0, 0)),
                pl.BlockSpec((bt, 1, d), lambda g: (g, 0, 0)),
            ],
            scratch_shapes=[pltpu.VMEM((C, bt * _SLOT), jnp.bfloat16)],
        ),
        compiler_params=pltpu.CompilerParams(
            dimension_semantics=("parallel",),
            # ~17 MiB @ bf16/d=128/Bt=8 (x slab x2, packed operand, weights,
            # f32 matmul result); raise above v5e's 16 MiB default scoped
            # limit while staying well under v7x's 64 MiB physical VMEM.
            vmem_limit_bytes=40 * 1024 * 1024,
        ),
        cost_estimate=pl.CostEstimate(
            flops=int(flops), transcendentals=0,
            bytes_accessed=int(bytes_accessed)),
    )(x, w_cat, bs, ba)
    return spa, avg.reshape(B, d)


def xavier_normal(key, out_features, in_features):
    # matches torch.nn.init.xavier_normal_ on a (out, in) weight
    std = (2.0 / (in_features + out_features)) ** 0.5
    return jax.random.normal(key, (out_features, in_features), jnp.float32) * std


if __name__ == "__main__":
    d_model = 128
    B, C, H, W = 2, 2048, 7, 7

    key = jax.random.PRNGKey(0)
    k_feats, k_wavg, k_wspa = jax.random.split(key, 3)

    # The upstream ResNet tail emits bf16 features; keep them bf16 end-to-end
    # (no standalone cast op anywhere in the wrapper or kernel).
    feats = jax.random.normal(k_feats, (B, C, H, W), jnp.bfloat16)

    # Deterministic parameter init (xavier_normal weights, zero biases), torch layout.
    w_avg = xavier_normal(k_wavg, d_model, 2048)     # (d, 2048)
    w_spa = xavier_normal(k_wspa, d_model, 2048)
    b_avg = jnp.zeros((d_model,), jnp.float32)
    b_spa = jnp.zeros((d_model,), jnp.float32)

    spa, avg = cnn_encoder(feats, w_spa, b_spa, w_avg, b_avg)
    jax.block_until_ready((spa, avg))

    # Reference in plain f32 JAX from the same bf16 features; kernel matmuls
    # run in bf16 (f32 accumulate), so use a correspondingly loose tolerance.
    x_flat = jnp.transpose(feats.astype(jnp.float32).reshape(B, C, H * W), (0, 2, 1))
    ref_spa = jnp.maximum(x_flat @ w_spa.T + b_spa, 0.0)
    ref_avg = jnp.maximum(jnp.mean(x_flat, axis=1) @ w_avg.T + b_avg, 0.0)
    assert spa.shape == (B, H * W, d_model) and avg.shape == (B, d_model)
    assert jnp.allclose(spa, ref_spa, atol=5e-2, rtol=5e-2), \
        float(jnp.max(jnp.abs(spa - ref_spa)))
    assert jnp.allclose(avg, ref_avg, atol=5e-2, rtol=5e-2), \
        float(jnp.max(jnp.abs(avg - ref_avg)))

    print("KERNEL_OK")
</pallas_src>

<mosaic_0001>
module attributes {stable_mosaic.version = 11 : i64} {
  func.func @cnn_encoder_kernel(%arg0: i32, %arg1: memref<2x2048x49xbf16, #tpu.memory_space<vmem>>, %arg2: memref<2048x256xbf16, #tpu.memory_space<vmem>>, %arg3: memref<1x128xf32, #tpu.memory_space<vmem>>, %arg4: memref<1x128xf32, #tpu.memory_space<vmem>>, %arg5: memref<2x49x128xf32, #tpu.memory_space<vmem>>, %arg6: memref<2x1x128xf32, #tpu.memory_space<vmem>>, %arg7: memref<2048x256xbf16, #tpu.memory_space<vmem>>) attributes {dimension_semantics = [#tpu.dimension_semantics<parallel>], iteration_bounds = array<i64: 1>, scalar_prefetch = 0 : i64, scratch_operands = 1 : i64, tpu.core_type = #tpu.core_type<tc>, window_params = [{transform_indices = @transform_0, window_bounds = array<i64: 2, 2048, 49>}, {pipeline_mode = #tpu.pipeline_mode<synchronous>, transform_indices = @transform_1, window_bounds = array<i64: 2048, 256>}, {pipeline_mode = #tpu.pipeline_mode<synchronous>, transform_indices = @transform_2, window_bounds = array<i64: 1, 128>}, {pipeline_mode = #tpu.pipeline_mode<synchronous>, transform_indices = @transform_3, window_bounds = array<i64: 1, 128>}, {transform_indices = @transform_4, window_bounds = array<i64: 2, 49, 128>}, {transform_indices = @transform_5, window_bounds = array<i64: 2, 1, 128>}]} {
    %c0_i32 = arith.constant 0 : i32
    %0 = arith.cmpi eq, %arg0, %c0_i32 : i32
    %1 = arith.extui %0 : i1 to i32
    %c0_i32_0 = arith.constant 0 : i32
    %2 = arith.cmpi ne, %1, %c0_i32_0 : i32
    scf.if %2 {
      %cst_26 = arith.constant 0.000000e+00 : bf16
      %33 = vector.broadcast %cst_26 : bf16 to vector<2048x256xbf16>
      %c0_27 = arith.constant 0 : index
      %c0_28 = arith.constant 0 : index
      %34 = vector.load %arg7[%c0_27, %c0_28] : memref<2048x256xbf16, #tpu.memory_space<vmem>>, vector<2048x256xbf16>
      tpu.vector_store %arg7[%c0_27, %c0_28], %33 {strides = array<i32>} : memref<2048x256xbf16, #tpu.memory_space<vmem>>, vector<2048x256xbf16>,
    } else {
    }
    %c0 = arith.constant 0 : index
    %c0_1 = arith.constant 0 : index
    %c0_2 = arith.constant 0 : index
    %3 = vector.load %arg1[%c0, %c0_1, %c0_2] : memref<2x2048x49xbf16, #tpu.memory_space<vmem>>, vector<1x2048x49xbf16>
    %4 = vector.shape_cast %3 : vector<1x2048x49xbf16> to vector<2048x49xbf16>
    %c0_3 = arith.constant 0 : index
    %c0_4 = arith.constant 0 : index
    %5 = vector.load %arg7[%c0_3, %c0_4] : memref<2048x256xbf16, #tpu.memory_space<vmem>>, vector<2048x49xbf16>
    tpu.vector_store %arg7[%c0_3, %c0_4], %4 {strides = array<i32>} : memref<2048x256xbf16, #tpu.memory_space<vmem>>, vector<2048x49xbf16>,
    %c1 = arith.constant 1 : index
    %c0_5 = arith.constant 0 : index
    %c0_6 = arith.constant 0 : index
    %6 = vector.load %arg1[%c1, %c0_5, %c0_6] : memref<2x2048x49xbf16, #tpu.memory_space<vmem>>, vector<1x2048x49xbf16>
    %7 = vector.shape_cast %6 : vector<1x2048x49xbf16> to vector<2048x49xbf16>
    %c0_7 = arith.constant 0 : index
    %c128 = arith.constant 128 : index
    %8 = vector.load %arg7[%c0_7, %c128] : memref<2048x256xbf16, #tpu.memory_space<vmem>>, vector<2048x49xbf16>
    tpu.vector_store %arg7[%c0_7, %c128], %7 {strides = array<i32>} : memref<2048x256xbf16, #tpu.memory_space<vmem>>, vector<2048x49xbf16>,
    %c0_8 = arith.constant 0 : index
    %c0_9 = arith.constant 0 : index
    %9 = vector.load %arg7[%c0_8, %c0_9] : memref<2048x256xbf16, #tpu.memory_space<vmem>>, vector<2048x256xbf16>
    %c0_10 = arith.constant 0 : index
    %c0_11 = arith.constant 0 : index
    %10 = vector.load %arg2[%c0_10, %c0_11] : memref<2048x256xbf16, #tpu.memory_space<vmem>>, vector<2048x256xbf16>
    %cst = arith.constant dense<0.000000e+00> : vector<256x256xf32>
    %11 = tpu.matmul %9, %10, %cst {dimension_numbers = #tpu.dot_dimension_numbers<[0], [0], [1], [1], [0, 1, 1, 1], [], []>} : vector<2048x256xbf16>, vector<2048x256xbf16>, vector<256x256xf32> -> vector<256x256xf32>
    %12 = vector.shape_cast %11 : vector<256x256xf32> to vector<2x128x256xf32>
    %13 = vector.extract_strided_slice %12 {offsets = [0, 0, 0], sizes = [2, 49, 128], strides = [1, 1, 1]} : vector<2x128x256xf32> to vector<2x49x128xf32>
    %c0_12 = arith.constant 0 : index
    %c0_13 = arith.constant 0 : index
    %14 = vector.load %arg3[%c0_12, %c0_13] : memref<1x128xf32, #tpu.memory_space<vmem>>, vector<1x128xf32>
    %15 = vector.shape_cast %14 : vector<1x128xf32> to vector<1x1x128xf32>
    %16 = vector.broadcast %15 : vector<1x1x128xf32> to vector<2x49x128xf32>
    %17 = arith.addf %13, %16 : vector<2x49x128xf32>
    %cst_14 = arith.constant 0.000000e+00 : f32
    %18 = vector.broadcast %cst_14 : f32 to vector<2x49x128xf32>
    %19 = arith.maximumf %17, %18 : vector<2x49x128xf32>
    %c0_15 = arith.constant 0 : index
    %c0_16 = arith.constant 0 : index
    %c0_17 = arith.constant 0 : index
    %20 = vector.load %arg5[%c0_15, %c0_16, %c0_17] : memref<2x49x128xf32, #tpu.memory_space<vmem>>, vector<2x49x128xf32>
    tpu.vector_store %arg5[%c0_15, %c0_16, %c0_17], %19 {strides = array<i32>} : memref<2x49x128xf32, #tpu.memory_space<vmem>>, vector<2x49x128xf32>,
    %21 = vector.extract_strided_slice %12 {offsets = [0, 0, 128], sizes = [2, 49, 128], strides = [1, 1, 1]} : vector<2x128x256xf32> to vector<2x49x128xf32>
    %cst_18 = arith.constant dense<0.000000e+00> : vector<2x128xf32>
    %22 = vector.multi_reduction <add>, %21, %cst_18 [1] : vector<2x49x128xf32> to vector<2x128xf32>
    %23 = vector.shape_cast %22 : vector<2x128xf32> to vector<2x1x128xf32>
    %cst_19 = arith.constant 4.900000e+01 : f32
    %24 = vector.broadcast %cst_19 : f32 to vector<2x1x128xf32>
    %25 = arith.divf %23, %24 : vector<2x1x128xf32>
    %c0_20 = arith.constant 0 : index
    %c0_21 = arith.constant 0 : index
    %26 = vector.load %arg4[%c0_20, %c0_21] : memref<1x128xf32, #tpu.memory_space<vmem>>, vector<1x128xf32>
    %27 = vector.shape_cast %26 : vector<1x128xf32> to vector<1x1x128xf32>
    %28 = vector.broadcast %27 : vector<1x1x128xf32> to vector<2x1x128xf32>
    %29 = arith.addf %25, %28 : vector<2x1x128xf32>
    %cst_22 = arith.constant 0.000000e+00 : f32
    %30 = vector.broadcast %cst_22 : f32 to vector<2x1x128xf32>
    %31 = arith.maximumf %29, %30 : vector<2x1x128xf32>
    %c0_23 = arith.constant 0 : index
    %c0_24 = arith.constant 0 : index
    %c0_25 = arith.constant 0 : index
    %32 = vector.load %arg6[%c0_23, %c0_24, %c0_25] : memref<2x1x128xf32, #tpu.memory_space<vmem>>, vector<2x1x128xf32>
    tpu.vector_store %arg6[%c0_23, %c0_24, %c0_25], %31 {strides = array<i32>} : memref<2x1x128xf32, #tpu.memory_space<vmem>>, vector<2x1x128xf32>,
    return
  }
  func.func @transform_0(%arg0: i32) -> (i32, i32, i32) {
    %c0_i32 = arith.constant 0 : i32
    %c0_i32_0 = arith.constant 0 : i32
    %c0_i32_1 = arith.constant 0 : i32
    return %arg0, %c0_i32, %c0_i32_0 : i32, i32, i32
  }
  func.func @transform_1(%arg0: i32) -> (i32, i32) {
    %c0_i32 = arith.constant 0 : i32
    %c0_i32_0 = arith.constant 0 : i32
    %c0_i32_1 = arith.constant 0 : i32
    return %c0_i32, %c0_i32_0 : i32, i32
  }
  func.func @transform_2(%arg0: i32) -> (i32, i32) {
    %c0_i32 = arith.constant 0 : i32
    %c0_i32_0 = arith.constant 0 : i32
    %c0_i32_1 = arith.constant 0 : i32
    return %c0_i32, %c0_i32_0 : i32, i32
  }
  func.func @transform_3(%arg0: i32) -> (i32, i32) {
    %c0_i32 = arith.constant 0 : i32
    %c0_i32_0 = arith.constant 0 : i32
    %c0_i32_1 = arith.constant 0 : i32
    return %c0_i32, %c0_i32_0 : i32, i32
  }
  func.func @transform_4(%arg0: i32) -> (i32, i32, i32) {
    %c0_i32 = arith.constant 0 : i32
    %c0_i32_0 = arith.constant 0 : i32
    %c0_i32_1 = arith.constant 0 : i32
    return %arg0, %c0_i32, %c0_i32_0 : i32, i32, i32
  }
  func.func @transform_5(%arg0: i32) -> (i32, i32, i32) {
    %c0_i32 = arith.constant 0 : i32
    %c0_i32_0 = arith.constant 0 : i32
    %c0_i32_1 = arith.constant 0 : i32
    return %arg0, %c0_i32, %c0_i32_0 : i32, i32, i32
  }
}

</mosaic_0001>

<bundles_post_ra>
// kernel: tpu_custom_call.1
= control target key start
LH: loop header
LB: loop body
LE: loop exit
PB: predicated region body
PF: predicated region fallthrough
CT: control target
= control target key end

     0   :  { %v7858_v1 = vmov 0   ;;  %vm1305_vm0 = vcmask 400384   ;;  %s10607_s0 = inlined_call_operand.vmem [shape: bf16[2,2048,49], index: 0, kind: input, shape index: {}]   ;;  %s10608_s1 = inlined_call_operand.vmem [shape: bf16[2048,256], index: 1, kind: input, shape index: {}]   ;;  %s10609_s2 = inlined_call_operand.vmem [shape: f32[1,128], index: 2, kind: input, shape index: {}]   ;;  %s10610_s3 = inlined_call_operand.vmem [shape: f32[1,128], index: 3, kind: input, shape index: {}]   ;;  %s10611_s4 = inlined_call_operand.vmem [shape: f32[2,49,128], index: 4, kind: output, shape index: {0}]   ;;  %s10612_s5 = inlined_call_operand.hbm [shape: f32[2,1,128], index: 5, kind: output, shape index: {1}]  }
   0x1   :  { %v7895_v0 = vld [vmem:[%s10607_s0 + $0x240] sm:$0xff]   ;;  %169 = vst [vmem:[#allocation2 + $0x480] sm:$0xff] %v7858_v1  ;;  %25 = vst [vmem:[#allocation2] sm:$0xff] %v7858_v1  ;;  %v7196_v3 = vld [vmem:[%s10607_s0 + $0x248] sm:$0xff]  }
   0x2   :  { %26 = vst [vmem:[#allocation2 + $0x8] sm:$0xff] %v7858_v1  ;;  %27 = vst [vmem:[#allocation2 + $0x10] sm:$0xff] %v7858_v1  ;;  %v7195_v2 = vld [vmem:[%s10607_s0 + $0x40] sm:$0xff]   ;;  %v7197_v4 = vld [vmem:[%s10607_s0 + $0x48] sm:$0xff]  }
   0x3   :  { %28 = vst [vmem:[#allocation2 + $0x18] sm:$0xff] %v7858_v1  ;;  %29 = vst [vmem:[#allocation2 + $0x20] sm:$0xff] %v7858_v1  ;;  %v7198_v5 = vld [vmem:[%s10607_s0 + $0x250] sm:$0xff]   ;;  %v7200_v7 = vld [vmem:[%s10607_s0 + $0x258] sm:$0xff]  }
   0x4   :  { %30 = vst [vmem:[#allocation2 + $0x28] sm:$0xff] %v7858_v1  ;;  %31 = vst [vmem:[#allocation2 + $0x30] sm:$0xff] %v7858_v1  ;;  %v7199_v6 = vld [vmem:[%s10607_s0 + $0x50] sm:$0xff]   ;;  %v7201_v8 = vld [vmem:[%s10607_s0 + $0x58] sm:$0xff]  }
   0x5   :  { %32 = vst [vmem:[#allocation2 + $0x38] sm:$0xff] %v7858_v1  ;;  %33 = vst [vmem:[#allocation2 + $0x40] sm:$0xff] %v7858_v1  ;;  %v7202_v9 = vld [vmem:[%s10607_s0 + $0x260] sm:$0xff]   ;;  %v7204_v14 = vld [vmem:[%s10607_s0 + $0x268] sm:$0xff]  }
   0x6   :  { %34 = vst [vmem:[#allocation2 + $0x48] sm:$0xff] %v7858_v1  ;;  %35 = vst [vmem:[#allocation2 + $0x50] sm:$0xff] %v7858_v1  ;;  %v7203_v12 = vld [vmem:[%s10607_s0 + $0x60] sm:$0xff]   ;;  %v7205_v16 = vld [vmem:[%s10607_s0 + $0x68] sm:$0xff]  }
   0x7   :  { %36 = vst [vmem:[#allocation2 + $0x58] sm:$0xff] %v7858_v1  ;;  %37 = vst [vmem:[#allocation2 + $0x60] sm:$0xff] %v7858_v1  ;;  %v7206_v17 = vld [vmem:[%s10607_s0 + $0x270] sm:$0xff]   ;;  %v7208_v21 = vld [vmem:[%s10607_s0 + $0x278] sm:$0xff]  }
   0x8   :  { %38 = vst [vmem:[#allocation2 + $0x68] sm:$0xff] %v7858_v1  ;;  %39 = vst [vmem:[#allocation2 + $0x70] sm:$0xff] %v7858_v1  ;;  %v7207_v20 = vld [vmem:[%s10607_s0 + $0x70] sm:$0xff]   ;;  %v7209_v22 = vld [vmem:[%s10607_s0 + $0x78] sm:$0xff]  }
   0x9   :  { %40 = vst [vmem:[#allocation2 + $0x78] sm:$0xff] %v7858_v1  ;;  %41 = vst [vmem:[#allocation2 + $0x80] sm:$0xff] %v7858_v1  ;;  %v7210_v25 = vld [vmem:[%s10607_s0 + $0x200] sm:$0xff]   ;;  %v7212_v28 = vld [vmem:[%s10607_s0 + $0x208] sm:$0xff]  }
   0xa   :  { %42 = vst [vmem:[#allocation2 + $0x88] sm:$0xff] %v7858_v1  ;;  %43 = vst [vmem:[#allocation2 + $0x90] sm:$0xff] %v7858_v1  ;;  %v7211_v26 = vld [vmem:[%s10607_s0] sm:$0xff]   ;;  %v7213_v30 = vld [vmem:[%s10607_s0 + $0x8] sm:$0xff]  }
   0xb   :  { %44 = vst [vmem:[#allocation2 + $0x98] sm:$0xff] %v7858_v1  ;;  %45 = vst [vmem:[#allocation2 + $0xa0] sm:$0xff] %v7858_v1  ;;  %v7214_v31 = vld [vmem:[%s10607_s0 + $0x210] sm:$0xff]   ;;  %v7216_v35 = vld [vmem:[%s10607_s0 + $0x218] sm:$0xff]  }
   0xc   :  { %46 = vst [vmem:[#allocation2 + $0xa8] sm:$0xff] %v7858_v1  ;;  %47 = vst [vmem:[#allocation2 + $0xb0] sm:$0xff] %v7858_v1  ;;  %v7215_v33 = vld [vmem:[%s10607_s0 + $0x10] sm:$0xff]   ;;  %v7217_v36 = vld [vmem:[%s10607_s0 + $0x18] sm:$0xff]  }
   0xd   :  { %48 = vst [vmem:[#allocation2 + $0xb8] sm:$0xff] %v7858_v1  ;;  %49 = vst [vmem:[#allocation2 + $0xc0] sm:$0xff] %v7858_v1  ;;  %v7218_v38 = vld [vmem:[%s10607_s0 + $0x220] sm:$0xff]   ;;  %v7220_v41 = vld [vmem:[%s10607_s0 + $0x228] sm:$0xff]  }
   0xe   :  { %50 = vst [vmem:[#allocation2 + $0xc8] sm:$0xff] %v7858_v1  ;;  %51 = vst [vmem:[#allocation2 + $0xd0] sm:$0xff] %v7858_v1  ;;  %v7219_v40 = vld [vmem:[%s10607_s0 + $0x20] sm:$0xff]   ;;  %v7221_v43 = vld [vmem:[%s10607_s0 + $0x28] sm:$0xff]  }
   0xf   :  { %52 = vst [vmem:[#allocation2 + $0xd8] sm:$0xff] %v7858_v1  ;;  %53 = vst [vmem:[#allocation2 + $0xe0] sm:$0xff] %v7858_v1  ;;  %v7222_v45 = vld [vmem:[%s10607_s0 + $0x230] sm:$0xff]   ;;  %v7224_v48 = vld [vmem:[%s10607_s0 + $0x238] sm:$0xff]  }
  0x10   :  { %54 = vst [vmem:[#allocation2 + $0xe8] sm:$0xff] %v7858_v1  ;;  %55 = vst [vmem:[#allocation2 + $0xf0] sm:$0xff] %v7858_v1  ;;  %v7223_v46 = vld [vmem:[%s10607_s0 + $0x30] sm:$0xff]   ;;  %v7225_v50 = vld [vmem:[%s10607_s0 + $0x38] sm:$0xff]  }
  0x11   :  { %56 = vst [vmem:[#allocation2 + $0xf8] sm:$0xff] %v7858_v1  ;;  %57 = vst [vmem:[#allocation2 + $0x100] sm:$0xff] %v7858_v1  ;;  %v7226_v51 = vld [vmem:[%s10607_s0 + $0x640] sm:$0xff]   ;;  %v7228_v55 = vld [vmem:[%s10607_s0 + $0x648] sm:$0xff]  }
  0x12   :  { %58 = vst [vmem:[#allocation2 + $0x108] sm:$0xff] %v7858_v1  ;;  %59 = vst [vmem:[#allocation2 + $0x110] sm:$0xff] %v7858_v1  ;;  %v7227_v53 = vld [vmem:[%s10607_s0 + $0x440] sm:$0xff]   ;;  %v7229_v56 = vld [vmem:[%s10607_s0 + $0x448] sm:$0xff]  }
  0x13   :  { %60 = vst [vmem:[#allocation2 + $0x118] sm:$0xff] %v7858_v1  ;;  %61 = vst [vmem:[#allocation2 + $0x120] sm:$0xff] %v7858_v1  ;;  %v7230_v58 = vld [vmem:[%s10608_s1 + $0x4] ss:$8 sps:$4 sm:$0xff]   ;;  %v7234_v61 = vld [vmem:[%s10608_s1] ss:$8 sps:$4 sm:$0xff]  }
  0x14   :  { %62 = vst [vmem:[#allocation2 + $0x128] sm:$0xff] %v7858_v1  ;;  %63 = vst [vmem:[#allocation2 + $0x130] sm:$0xff] %v7858_v1  ;;  %4891 = vmatprep.subr.bf16.mxu1 %v7230_v58  ;;  %v7232_v60 = vld [vmem:[%s10608_s1 + $0x404] ss:$8 sps:$4 sm:$0xff]   ;;  %v7235_v62 = vld [vmem:[%s10608_s1 + $0x400] ss:$8 sps:$4 sm:$0xff]  }
  0x15   :  { %64 = vst [vmem:[#allocation2 + $0x138] sm:$0xff] %v7858_v1  ;;  %65 = vst [vmem:[#allocation2 + $0x140] sm:$0xff] %v7858_v1  ;;  %5519 = vmatprep.subr.bf16.mxu0 %v7232_v60  ;;  %4892 = vmatpush1.bf16.msra.mxu1 %v7234_v61  ;;  %v7290_v58 = vld [vmem:[%s10608_s1 + $0x70] ss:$8 sps:$4 sm:$0xff]   ;;  %v7292_v61 = vld [vmem:[%s10607_s0 + $0x608] sm:$0xff]  }
  0x16   :  { %66 = vst [vmem:[#allocation2 + $0x148] sm:$0xff] %v7858_v1  ;;  %67 = vst [vmem:[#allocation2 + $0x150] sm:$0xff] %v7858_v1  ;;  %5520 = vmatpush1.bf16.msra.mxu0 %v7235_v62  ;;  %v7293_v62 = vld [vmem:[%s10607_s0 + $0x408] sm:$0xff]  }
  0x17   :  { %68 = vst [vmem:[#allocation2 + $0x158] sm:$0xff] %v7858_v1  ;;  %69 = vst [vmem:[#allocation2 + $0x160] sm:$0xff] %v7858_v1 }
  0x18   :  { %70 = vst [vmem:[#allocation2 + $0x168] sm:$0xff] %v7858_v1  ;;  %71 = vst [vmem:[#allocation2 + $0x170] sm:$0xff] %v7858_v1 }
  0x19   :  { %72 = vst [vmem:[#allocation2 + $0x178] sm:$0xff] %v7858_v1  ;;  %73 = vst [vmem:[#allocation2 + $0x180] sm:$0xff] %v7858_v1 }
  0x1a   :  { %74 = vst [vmem:[#allocation2 + $0x188] sm:$0xff] %v7858_v1  ;;  %75 = vst [vmem:[#allocation2 + $0x190] sm:$0xff] %v7858_v1 }
  0x1b   :  { %76 = vst [vmem:[#allocation2 + $0x198] sm:$0xff] %v7858_v1  ;;  %77 = vst [vmem:[#allocation2 + $0x1a0] sm:$0xff] %v7858_v1 }
  0x1c   :  { %78 = vst [vmem:[#allocation2 + $0x1a8] sm:$0xff] %v7858_v1  ;;  %79 = vst [vmem:[#allocation2 + $0x1b0] sm:$0xff] %v7858_v1 }
  0x1d   :  { %80 = vst [vmem:[#allocation2 + $0x1b8] sm:$0xff] %v7858_v1  ;;  %81 = vst [vmem:[#allocation2 + $0x1c0] sm:$0xff] %v7858_v1 }
  0x1e   :  { %82 = vst [vmem:[#allocation2 + $0x1c8] sm:$0xff] %v7858_v1  ;;  %83 = vst [vmem:[#allocation2 + $0x1d0] sm:$0xff] %v7858_v1 }
  0x1f   :  { %84 = vst [vmem:[#allocation2 + $0x1d8] sm:$0xff] %v7858_v1  ;;  %85 = vst [vmem:[#allocation2 + $0x1e0] sm:$0xff] %v7858_v1 }
  0x20   :  { %86 = vst [vmem:[#allocation2 + $0x1e8] sm:$0xff] %v7858_v1  ;;  %87 = vst [vmem:[#allocation2 + $0x1f0] sm:$0xff] %v7858_v1 }
  0x21   :  { %88 = vst [vmem:[#allocation2 + $0x1f8] sm:$0xff] %v7858_v1  ;;  %89 = vst [vmem:[#allocation2 + $0x200] sm:$0xff] %v7858_v1 }
  0x22   :  { %90 = vst [vmem:[#allocation2 + $0x208] sm:$0xff] %v7858_v1  ;;  %91 = vst [vmem:[#allocation2 + $0x210] sm:$0xff] %v7858_v1 }
  0x23   :  { %92 = vst [vmem:[#allocation2 + $0x218] sm:$0xff] %v7858_v1  ;;  %93 = vst [vmem:[#allocation2 + $0x220] sm:$0xff] %v7858_v1 }
  0x24   :  { %94 = vst [vmem:[#allocation2 + $0x228] sm:$0xff] %v7858_v1  ;;  %95 = vst [vmem:[#allocation2 + $0x230] sm:$0xff] %v7858_v1 }
  0x25   :  { %96 = vst [vmem:[#allocation2 + $0x238] sm:$0xff] %v7858_v1  ;;  %97 = vst [vmem:[#allocation2 + $0x240] sm:$0xff] %v7858_v1 }
  0x26   :  { %98 = vst [vmem:[#allocation2 + $0x248] sm:$0xff] %v7858_v1  ;;  %99 = vst [vmem:[#allocation2 + $0x250] sm:$0xff] %v7858_v1 }
  0x27   :  { %100 = vst [vmem:[#allocation2 + $0x258] sm:$0xff] %v7858_v1  ;;  %101 = vst [vmem:[#allocation2 + $0x260] sm:$0xff] %v7858_v1 }
  0x28   :  { %102 = vst [vmem:[#allocation2 + $0x268] sm:$0xff] %v7858_v1  ;;  %103 = vst [vmem:[#allocation2 + $0x270] sm:$0xff] %v7858_v1 }
  0x29   :  { %104 = vst [vmem:[#allocation2 + $0x278] sm:$0xff] %v7858_v1  ;;  %105 = vst [vmem:[#allocation2 + $0x280] sm:$0xff] %v7858_v1 }
  0x2a   :  { %106 = vst [vmem:[#allocation2 + $0x288] sm:$0xff] %v7858_v1  ;;  %107 = vst [vmem:[#allocation2 + $0x290] sm:$0xff] %v7858_v1 }
  0x2b   :  { %108 = vst [vmem:[#allocation2 + $0x298] sm:$0xff] %v7858_v1  ;;  %109 = vst [vmem:[#allocation2 + $0x2a0] sm:$0xff] %v7858_v1 }
  0x2c   :  { %110 = vst [vmem:[#allocation2 + $0x2a8] sm:$0xff] %v7858_v1  ;;  %111 = vst [vmem:[#allocation2 + $0x2b0] sm:$0xff] %v7858_v1 }
  0x2d   :  { %112 = vst [vmem:[#allocation2 + $0x2b8] sm:$0xff] %v7858_v1  ;;  %113 = vst [vmem:[#allocation2 + $0x2c0] sm:$0xff] %v7858_v1 }
  0x2e   :  { %114 = vst [vmem:[#allocation2 + $0x2c8] sm:$0xff] %v7858_v1  ;;  %115 = vst [vmem:[#allocation2 + $0x2d0] sm:$0xff] %v7858_v1 }
  0x2f   :  { %116 = vst [vmem:[#allocation2 + $0x2d8] sm:$0xff] %v7858_v1  ;;  %117 = vst [vmem:[#allocation2 + $0x2e0] sm:$0xff] %v7858_v1 }
  0x30   :  { %118 = vst [vmem:[#allocation2 + $0x2e8] sm:$0xff] %v7858_v1  ;;  %119 = vst [vmem:[#allocation2 + $0x2f0] sm:$0xff] %v7858_v1 }
  0x31   :  { %120 = vst [vmem:[#allocation2 + $0x2f8] sm:$0xff] %v7858_v1  ;;  %121 = vst [vmem:[#allocation2 + $0x300] sm:$0xff] %v7858_v1 }
  0x32   :  { %122 = vst [vmem:[#allocation2 + $0x308] sm:$0xff] %v7858_v1  ;;  %123 = vst [vmem:[#allocation2 + $0x310] sm:$0xff] %v7858_v1 }
  0x33   :  { %124 = vst [vmem:[#allocation2 + $0x318] sm:$0xff] %v7858_v1  ;;  %125 = vst [vmem:[#allocation2 + $0x320] sm:$0xff] %v7858_v1 }
  0x34   :  { %126 = vst [vmem:[#allocation2 + $0x328] sm:$0xff] %v7858_v1  ;;  %127 = vst [vmem:[#allocation2 + $0x330] sm:$0xff] %v7858_v1 }
  0x35   :  { %128 = vst [vmem:[#allocation2 + $0x338] sm:$0xff] %v7858_v1  ;;  %129 = vst [vmem:[#allocation2 + $0x340] sm:$0xff] %v7858_v1 }
  0x36   :  { %130 = vst [vmem:[#allocation2 + $0x348] sm:$0xff] %v7858_v1  ;;  %131 = vst [vmem:[#allocation2 + $0x350] sm:$0xff] %v7858_v1 }
  0x37   :  { %132 = vst [vmem:[#allocation2 + $0x358] sm:$0xff] %v7858_v1  ;;  %133 = vst [vmem:[#allocation2 + $0x360] sm:$0xff] %v7858_v1 }
  0x38   :  { %134 = vst [vmem:[#allocation2 + $0x368] sm:$0xff] %v7858_v1  ;;  %135 = vst [vmem:[#allocation2 + $0x370] sm:$0xff] %v7858_v1 }
  0x39   :  { %136 = vst [vmem:[#allocation2 + $0x378] sm:$0xff] %v7858_v1  ;;  %137 = vst [vmem:[#allocation2 + $0x380] sm:$0xff] %v7858_v1 }
  0x3a   :  { %138 = vst [vmem:[#allocation2 + $0x388] sm:$0xff] %v7858_v1  ;;  %139 = vst [vmem:[#allocation2 + $0x390] sm:$0xff] %v7858_v1 }
  0x3b   :  { %140 = vst [vmem:[#allocation2 + $0x398] sm:$0xff] %v7858_v1  ;;  %141 = vst [vmem:[#allocation2 + $0x3a0] sm:$0xff] %v7858_v1 }
  0x3c   :  { %142 = vst [vmem:[#allocation2 + $0x3a8] sm:$0xff] %v7858_v1  ;;  %143 = vst [vmem:[#allocation2 + $0x3b0] sm:$0xff] %v7858_v1 }
  0x3d   :  { %144 = vst [vmem:[#allocation2 + $0x3b8] sm:$0xff] %v7858_v1  ;;  %145 = vst [vmem:[#allocation2 + $0x3c0] sm:$0xff] %v7858_v1 }
  0x3e   :  { %146 = vst [vmem:[#allocation2 + $0x3c8] sm:$0xff] %v7858_v1  ;;  %147 = vst [vmem:[#allocation2 + $0x3d0] sm:$0xff] %v7858_v1 }
  0x3f   :  { %148 = vst [vmem:[#allocation2 + $0x3d8] sm:$0xff] %v7858_v1  ;;  %149 = vst [vmem:[#allocation2 + $0x3e0] sm:$0xff] %v7858_v1 }
  0x40   :  { %150 = vst [vmem:[#allocation2 + $0x3e8] sm:$0xff] %v7858_v1  ;;  %151 = vst [vmem:[#allocation2 + $0x3f0] sm:$0xff] %v7858_v1 }
  0x41   :  { %152 = vst [vmem:[#allocation2 + $0x3f8] sm:$0xff] %v7858_v1  ;;  %153 = vst [vmem:[#allocation2 + $0x400] sm:$0xff] %v7858_v1 }
  0x42   :  { %154 = vst [vmem:[#allocation2 + $0x408] sm:$0xff] %v7858_v1  ;;  %155 = vst [vmem:[#allocation2 + $0x410] sm:$0xff] %v7858_v1 }
  0x43   :  { %156 = vst [vmem:[#allocation2 + $0x418] sm:$0xff] %v7858_v1  ;;  %157 = vst [vmem:[#allocation2 + $0x420] sm:$0xff] %v7858_v1 }
  0x44   :  { %158 = vst [vmem:[#allocation2 + $0x428] sm:$0xff] %v7858_v1  ;;  %159 = vst [vmem:[#allocation2 + $0x430] sm:$0xff] %v7858_v1 }
  0x45   :  { %160 = vst [vmem:[#allocation2 + $0x438] sm:$0xff] %v7858_v1  ;;  %161 = vst [vmem:[#allocation2 + $0x440] sm:$0xff] %v7858_v1 }
  0x46   :  { %162 = vst [vmem:[#allocation2 + $0x448] sm:$0xff] %v7858_v1  ;;  %163 = vst [vmem:[#allocation2 + $0x450] sm:$0xff] %v7858_v1 }
  0x47   :  { %164 = vst [vmem:[#allocation2 + $0x458] sm:$0xff] %v7858_v1  ;;  %165 = vst [vmem:[#allocation2 + $0x460] sm:$0xff] %v7858_v1 }
  0x48   :  { %166 = vst [vmem:[#allocation2 + $0x468] sm:$0xff] %v7858_v1  ;;  %167 = vst [vmem:[#allocation2 + $0x470] sm:$0xff] %v7858_v1 }
  0x49   :  { %168 = vst [vmem:[#allocation2 + $0x478] sm:$0xff] %v7858_v1  ;;  %170 = vst [vmem:[#allocation2 + $0x488] sm:$0xff] %v7858_v1 }
  0x4a   :  { %171 = vst [vmem:[#allocation2 + $0x490] sm:$0xff] %v7858_v1  ;;  %172 = vst [vmem:[#allocation2 + $0x498] sm:$0xff] %v7858_v1 }
  0x4b   :  { %173 = vst [vmem:[#allocation2 + $0x4a0] sm:$0xff] %v7858_v1  ;;  %174 = vst [vmem:[#allocation2 + $0x4a8] sm:$0xff] %v7858_v1 }
  0x4c   :  { %175 = vst [vmem:[#allocation2 + $0x4b0] sm:$0xff] %v7858_v1  ;;  %176 = vst [vmem:[#allocation2 + $0x4b8] sm:$0xff] %v7858_v1 }
  0x4d   :  { %177 = vst [vmem:[#allocation2 + $0x4c0] sm:$0xff] %v7858_v1  ;;  %178 = vst [vmem:[#allocation2 + $0x4c8] sm:$0xff] %v7858_v1 }
  0x4e   :  { %179 = vst [vmem:[#allocation2 + $0x4d0] sm:$0xff] %v7858_v1  ;;  %180 = vst [vmem:[#allocation2 + $0x4d8] sm:$0xff] %v7858_v1 }
  0x4f   :  { %181 = vst [vmem:[#allocation2 + $0x4e0] sm:$0xff] %v7858_v1  ;;  %182 = vst [vmem:[#allocation2 + $0x4e8] sm:$0xff] %v7858_v1 }
  0x50   :  { %183 = vst [vmem:[#allocation2 + $0x4f0] sm:$0xff] %v7858_v1  ;;  %184 = vst [vmem:[#allocation2 + $0x4f8] sm:$0xff] %v7858_v1 }
  0x51   :  { %185 = vst [vmem:[#allocation2 + $0x500] sm:$0xff] %v7858_v1  ;;  %186 = vst [vmem:[#allocation2 + $0x508] sm:$0xff] %v7858_v1 }
  0x52   :  { %187 = vst [vmem:[#allocation2 + $0x510] sm:$0xff] %v7858_v1  ;;  %188 = vst [vmem:[#allocation2 + $0x518] sm:$0xff] %v7858_v1 }
  0x53   :  { %189 = vst [vmem:[#allocation2 + $0x520] sm:$0xff] %v7858_v1  ;;  %190 = vst [vmem:[#allocation2 + $0x528] sm:$0xff] %v7858_v1 }
  0x54   :  { %191 = vst [vmem:[#allocation2 + $0x530] sm:$0xff] %v7858_v1  ;;  %192 = vst [vmem:[#allocation2 + $0x538] sm:$0xff] %v7858_v1 }
  0x55   :  { %193 = vst [vmem:[#allocation2 + $0x540] sm:$0xff] %v7858_v1  ;;  %194 = vst [vmem:[#allocation2 + $0x548] sm:$0xff] %v7858_v1 }
  0x56   :  { %195 = vst [vmem:[#allocation2 + $0x550] sm:$0xff] %v7858_v1  ;;  %196 = vst [vmem:[#allocation2 + $0x558] sm:$0xff] %v7858_v1 }
  0x57   :  { %197 = vst [vmem:[#allocation2 + $0x560] sm:$0xff] %v7858_v1  ;;  %198 = vst [vmem:[#allocation2 + $0x568] sm:$0xff] %v7858_v1 }
  0x58   :  { %199 = vst [vmem:[#allocation2 + $0x570] sm:$0xff] %v7858_v1  ;;  %200 = vst [vmem:[#allocation2 + $0x578] sm:$0xff] %v7858_v1 }
  0x59   :  { %201 = vst [vmem:[#allocation2 + $0x580] sm:$0xff] %v7858_v1  ;;  %202 = vst [vmem:[#allocation2 + $0x588] sm:$0xff] %v7858_v1 }
  0x5a   :  { %203 = vst [vmem:[#allocation2 + $0x590] sm:$0xff] %v7858_v1  ;;  %204 = vst [vmem:[#allocation2 + $0x598] sm:$0xff] %v7858_v1 }
  0x5b   :  { %205 = vst [vmem:[#allocation2 + $0x5a0] sm:$0xff] %v7858_v1  ;;  %206 = vst [vmem:[#allocation2 + $0x5a8] sm:$0xff] %v7858_v1 }
  0x5c   :  { %207 = vst [vmem:[#allocation2 + $0x5b0] sm:$0xff] %v7858_v1  ;;  %208 = vst [vmem:[#allocation2 + $0x5b8] sm:$0xff] %v7858_v1 }
  0x5d   :  { %209 = vst [vmem:[#allocation2 + $0x5c0] sm:$0xff] %v7858_v1  ;;  %210 = vst [vmem:[#allocation2 + $0x5c8] sm:$0xff] %v7858_v1 }
  0x5e   :  { %211 = vst [vmem:[#allocation2 + $0x5d0] sm:$0xff] %v7858_v1  ;;  %212 = vst [vmem:[#allocation2 + $0x5d8] sm:$0xff] %v7858_v1 }
  0x5f   :  { %213 = vst [vmem:[#allocation2 + $0x5e0] sm:$0xff] %v7858_v1  ;;  %214 = vst [vmem:[#allocation2 + $0x5e8] sm:$0xff] %v7858_v1 }
  0x60   :  { %215 = vst [vmem:[#allocation2 + $0x5f0] sm:$0xff] %v7858_v1  ;;  %216 = vst [vmem:[#allocation2 + $0x5f8] sm:$0xff] %v7858_v1 }
  0x61   :  { %217 = vst [vmem:[#allocation2 + $0x600] sm:$0xff] %v7858_v1  ;;  %218 = vst [vmem:[#allocation2 + $0x608] sm:$0xff] %v7858_v1 }
  0x62   :  { %219 = vst [vmem:[#allocation2 + $0x610] sm:$0xff] %v7858_v1  ;;  %220 = vst [vmem:[#allocation2 + $0x618] sm:$0xff] %v7858_v1 }
  0x63   :  { %221 = vst [vmem:[#allocation2 + $0x620] sm:$0xff] %v7858_v1  ;;  %222 = vst [vmem:[#allocation2 + $0x628] sm:$0xff] %v7858_v1 }
  0x64   :  { %223 = vst [vmem:[#allocation2 + $0x630] sm:$0xff] %v7858_v1  ;;  %224 = vst [vmem:[#allocation2 + $0x638] sm:$0xff] %v7858_v1 }
  0x65   :  { %225 = vst [vmem:[#allocation2 + $0x640] sm:$0xff] %v7858_v1  ;;  %226 = vst [vmem:[#allocation2 + $0x648] sm:$0xff] %v7858_v1 }
  0x66   :  { %227 = vst [vmem:[#allocation2 + $0x650] sm:$0xff] %v7858_v1  ;;  %228 = vst [vmem:[#allocation2 + $0x658] sm:$0xff] %v7858_v1 }
  0x67   :  { %229 = vst [vmem:[#allocation2 + $0x660] sm:$0xff] %v7858_v1  ;;  %230 = vst [vmem:[#allocation2 + $0x668] sm:$0xff] %v7858_v1 }
  0x68   :  { %231 = vst [vmem:[#allocation2 + $0x670] sm:$0xff] %v7858_v1  ;;  %232 = vst [vmem:[#allocation2 + $0x678] sm:$0xff] %v7858_v1 }
  0x69   :  { %233 = vst [vmem:[#allocation2 + $0x680] sm:$0xff] %v7858_v1  ;;  %234 = vst [vmem:[#allocation2 + $0x688] sm:$0xff] %v7858_v1 }
  0x6a   :  { %235 = vst [vmem:[#allocation2 + $0x690] sm:$0xff] %v7858_v1  ;;  %236 = vst [vmem:[#allocation2 + $0x698] sm:$0xff] %v7858_v1 }
  0x6b   :  { %237 = vst [vmem:[#allocation2 + $0x6a0] sm:$0xff] %v7858_v1  ;;  %238 = vst [vmem:[#allocation2 + $0x6a8] sm:$0xff] %v7858_v1 }
  0x6c   :  { %239 = vst [vmem:[#allocation2 + $0x6b0] sm:$0xff] %v7858_v1  ;;  %240 = vst [vmem:[#allocation2 + $0x6b8] sm:$0xff] %v7858_v1 }
  0x6d   :  { %241 = vst [vmem:[#allocation2 + $0x6c0] sm:$0xff] %v7858_v1  ;;  %242 = vst [vmem:[#allocation2 + $0x6c8] sm:$0xff] %v7858_v1 }
  0x6e   :  { %243 = vst [vmem:[#allocation2 + $0x6d0] sm:$0xff] %v7858_v1  ;;  %244 = vst [vmem:[#allocation2 + $0x6d8] sm:$0xff] %v7858_v1 }
  0x6f   :  { %245 = vst [vmem:[#allocation2 + $0x6e0] sm:$0xff] %v7858_v1  ;;  %246 = vst [vmem:[#allocation2 + $0x6e8] sm:$0xff] %v7858_v1 }
  0x70   :  { %247 = vst [vmem:[#allocation2 + $0x6f0] sm:$0xff] %v7858_v1  ;;  %248 = vst [vmem:[#allocation2 + $0x6f8] sm:$0xff] %v7858_v1 }
  0x71   :  { %249 = vst [vmem:[#allocation2 + $0x700] sm:$0xff] %v7858_v1  ;;  %250 = vst [vmem:[#allocation2 + $0x708] sm:$0xff] %v7858_v1 }
  0x72   :  { %251 = vst [vmem:[#allocation2 + $0x710] sm:$0xff] %v7858_v1  ;;  %252 = vst [vmem:[#allocation2 + $0x718] sm:$0xff] %v7858_v1 }
  0x73   :  { %253 = vst [vmem:[#allocation2 + $0x720] sm:$0xff] %v7858_v1  ;;  %254 = vst [vmem:[#allocation2 + $0x728] sm:$0xff] %v7858_v1 }
  0x74   :  { %255 = vst [vmem:[#allocation2 + $0x730] sm:$0xff] %v7858_v1  ;;  %256 = vst [vmem:[#allocation2 + $0x738] sm:$0xff] %v7858_v1 }
  0x75   :  { %257 = vst [vmem:[#allocation2 + $0x740] sm:$0xff] %v7858_v1  ;;  %258 = vst [vmem:[#allocation2 + $0x748] sm:$0xff] %v7858_v1 }
  0x76   :  { %259 = vst [vmem:[#allocation2 + $0x750] sm:$0xff] %v7858_v1  ;;  %260 = vst [vmem:[#allocation2 + $0x758] sm:$0xff] %v7858_v1 }
  0x77   :  { %261 = vst [vmem:[#allocation2 + $0x760] sm:$0xff] %v7858_v1  ;;  %262 = vst [vmem:[#allocation2 + $0x768] sm:$0xff] %v7858_v1 }
  0x78   :  { %263 = vst [vmem:[#allocation2 + $0x770] sm:$0xff] %v7858_v1  ;;  %264 = vst [vmem:[#allocation2 + $0x778] sm:$0xff] %v7858_v1 }
  0x79   :  { %265 = vst [vmem:[#allocation2 + $0x780] sm:$0xff] %v7858_v1  ;;  %266 = vst [vmem:[#allocation2 + $0x788] sm:$0xff] %v7858_v1 }
  0x7a   :  { %267 = vst [vmem:[#allocation2 + $0x790] sm:$0xff] %v7858_v1  ;;  %268 = vst [vmem:[#allocation2 + $0x798] sm:$0xff] %v7858_v1 }
  0x7b   :  { %269 = vst [vmem:[#allocation2 + $0x7a0] sm:$0xff] %v7858_v1  ;;  %270 = vst [vmem:[#allocation2 + $0x7a8] sm:$0xff] %v7858_v1 }
  0x7c   :  { %271 = vst [vmem:[#allocation2 + $0x7b0] sm:$0xff] %v7858_v1  ;;  %272 = vst [vmem:[#allocation2 + $0x7b8] sm:$0xff] %v7858_v1 }
  0x7d   :  { %273 = vst [vmem:[#allocation2 + $0x7c0] sm:$0xff] %v7858_v1  ;;  %274 = vst [vmem:[#allocation2 + $0x7c8] sm:$0xff] %v7858_v1 }
  0x7e   :  { %275 = vst [vmem:[#allocation2 + $0x7d0] sm:$0xff] %v7858_v1  ;;  %276 = vst [vmem:[#allocation2 + $0x7d8] sm:$0xff] %v7858_v1 }
  0x7f   :  { %277 = vst [vmem:[#allocation2 + $0x7e0] sm:$0xff] %v7858_v1  ;;  %278 = vst [vmem:[#allocation2 + $0x7e8] sm:$0xff] %v7858_v1 }
  0x80   :  { %279 = vst [vmem:[#allocation2 + $0x7f0] sm:$0xff] %v7858_v1  ;;  %280 = vst [vmem:[#allocation2 + $0x7f8] sm:$0xff] %v7858_v1 }
  0x81   :  { %1378 = vst.msk [vmem:[#allocation2 + $0x480] sm:$0xff] %vm1305_vm0, %v7895_v0  ;;  %1314 = vst.msk [vmem:[#allocation2 + $0x80] sm:$0xff] %vm1305_vm0, %v7195_v2  ;;  %v7236_v0 = vld [vmem:[%s10607_s0 + $0x650] sm:$0xff]  }
  0x82   :  { %1379 = vst.msk [vmem:[#allocation2 + $0x490] sm:$0xff] %vm1305_vm0, %v7196_v3  ;;  %1315 = vst.msk [vmem:[#allocation2 + $0x90] sm:$0xff] %vm1305_vm0, %v7197_v4  ;;  %v7237_v2 = vld [vmem:[%s10607_s0 + $0x450] sm:$0xff]  }
  0x83   :  { %1380 = vst.msk [vmem:[#allocation2 + $0x4a0] sm:$0xff] %vm1305_vm0, %v7198_v5  ;;  %1316 = vst.msk [vmem:[#allocation2 + $0xa0] sm:$0xff] %vm1305_vm0, %v7199_v6  ;;  %v7238_v3 = vld [vmem:[%s10608_s1 + $0x14] ss:$8 sps:$4 sm:$0xff]  }
  0x84   :  { %1381 = vst.msk [vmem:[#allocation2 + $0x4b0] sm:$0xff] %vm1305_vm0, %v7200_v7  ;;  %1317 = vst.msk [vmem:[#allocation2 + $0xb0] sm:$0xff] %vm1305_vm0, %v7201_v8  ;;  %4893 = vmatprep.subr.bf16.mxu1 %v7238_v3  ;;  %v7240_v6 = vld [vmem:[%s10608_s1 + $0x414] ss:$8 sps:$4 sm:$0xff]   ;;  %v7242_v7 = vld [vmem:[%s10608_s1 + $0x10] ss:$8 sps:$4 sm:$0xff]  }
  0x85   :  { %1382 = vst.msk [vmem:[#allocation2 + $0x4c0] sm:$0xff] %vm1305_vm0, %v7202_v9  ;;  %1318 = vst.msk [vmem:[#allocation2 + $0xc0] sm:$0xff] %vm1305_vm0, %v7203_v12  ;;  %v7243_v8 = vld [vmem:[%s10608_s1 + $0x410] ss:$8 sps:$4 sm:$0xff]   ;;  %5521 = vmatprep.subr.bf16.mxu0 %v7240_v6  ;;  %4894 = vmatpush1.bf16.msra.mxu1 %v7242_v7 }
  0x86   :  { %1383 = vst.msk [vmem:[#allocation2 + $0x4d0] sm:$0xff] %vm1305_vm0, %v7204_v14  ;;  %1319 = vst.msk [vmem:[#allocation2 + $0xd0] sm:$0xff] %vm1305_vm0, %v7205_v16  ;;  %v7244_v9 = vld [vmem:[%s10607_s0 + $0x658] sm:$0xff]   ;;  %5522 = vmatpush1.bf16.msra.mxu0 %v7243_v8  ;;  %v7250_v14 = vld [vmem:[%s10608_s1 + $0x20] ss:$8 sps:$4 sm:$0xff]  }
  0x87   :  { %1384 = vst.msk [vmem:[#allocation2 + $0x4e0] sm:$0xff] %vm1305_vm0, %v7206_v17  ;;  %1320 = vst.msk [vmem:[#allocation2 + $0xe0] sm:$0xff] %vm1305_vm0, %v7207_v20  ;;  %v7251_v16 = vld [vmem:[%s10608_s1 + $0x420] ss:$8 sps:$4 sm:$0xff]   ;;  %v7300_v6 = vld [vmem:[%s10607_s0 + $0x610] sm:$0xff]  }
  0x88   :  { %v2731_v10 = vld [vmem:[#allocation2 + $0x480] sm:$0xff]  ;;  %1385 = vst.msk [vmem:[#allocation2 + $0x4f0] sm:$0xff] %vm1305_vm0, %v7208_v21  ;;  %1321 = vst.msk [vmem:[#allocation2 + $0xf0] sm:$0xff] %vm1305_vm0, %v7209_v22  ;;  %v7254_v21 = vld [vmem:[%s10608_s1 + $0x34] ss:$8 sps:$4 sm:$0xff]  }
  0x89   :  { %3387 = vxpose.xlu1.c.b16.start [1/8] %v2731_v10, 128  ;;  %v2603_v11 = vld [vmem:[#allocation2 + $0x80] sm:$0xff]  ;;  %v2733_v13 = vld [vmem:[#allocation2 + $0x490] sm:$0xff]  ;;  %1370 = vst.msk [vmem:[#allocation2 + $0x400] sm:$0xff] %vm1305_vm0, %v7210_v25  ;;  %1306 = vst.msk [vmem:[#allocation2] sm:$0xff] %vm1305_vm0, %v7211_v26 }
  0x8a   :  { %3131 = vxpose.xlu0.c.b16.start [1/8] %v2603_v11, 128  ;;  %v2605_v15 = vld [vmem:[#allocation2 + $0x90] sm:$0xff]  ;;  %v2735_v18 = vld [vmem:[#allocation2 + $0x4a0] sm:$0xff]  ;;  %1371 = vst.msk [vmem:[#allocation2 + $0x410] sm:$0xff] %vm1305_vm0, %v7212_v28  ;;  %1307 = vst.msk [vmem:[#allocation2 + $0x10] sm:$0xff] %vm1305_vm0, %v7213_v30 }
  0x8b   :  { %v2607_v19 = vld [vmem:[#allocation2 + $0xa0] sm:$0xff]  ;;  %v2737_v23 = vld [vmem:[#allocation2 + $0x4b0] sm:$0xff]  ;;  %1372 = vst.msk [vmem:[#allocation2 + $0x420] sm:$0xff] %vm1305_vm0, %v7214_v31  ;;  %1308 = vst.msk [vmem:[#allocation2 + $0x20] sm:$0xff] %vm1305_vm0, %v7215_v33 }
  0x8c   :  { %v2609_v24 = vld [vmem:[#allocation2 + $0xb0] sm:$0xff]  ;;  %v2739_v27 = vld [vmem:[#allocation2 + $0x4c0] sm:$0xff]  ;;  %1373 = vst.msk [vmem:[#allocation2 + $0x430] sm:$0xff] %vm1305_vm0, %v7216_v35  ;;  %1309 = vst.msk [vmem:[#allocation2 + $0x30] sm:$0xff] %vm1305_vm0, %v7217_v36 }
  0x8d   :  { %3388 = vxpose.xlu1.c.b16.cont [2/8] %v2733_v13, 128  ;;  %v2611_v29 = vld [vmem:[#allocation2 + $0xc0] sm:$0xff]  ;;  %v2741_v32 = vld [vmem:[#allocation2 + $0x4d0] sm:$0xff]  ;;  %1374 = vst.msk [vmem:[#allocation2 + $0x440] sm:$0xff] %vm1305_vm0, %v7218_v38  ;;  %1310 = vst.msk [vmem:[#allocation2 + $0x40] sm:$0xff] %vm1305_vm0, %v7219_v40 }
  0x8e   :  { %3132 = vxpose.xlu0.c.b16.cont [2/8] %v2605_v15, 128  ;;  %v2613_v34 = vld [vmem:[#allocation2 + $0xd0] sm:$0xff]  ;;  %v2743_v37 = vld [vmem:[#allocation2 + $0x4e0] sm:$0xff]  ;;  %1375 = vst.msk [vmem:[#allocation2 + $0x450] sm:$0xff] %vm1305_vm0, %v7220_v41  ;;  %1311 = vst.msk [vmem:[#allocation2 + $0x50] sm:$0xff] %vm1305_vm0, %v7221_v43 }
  0x8f   :  { %v2615_v39 = vld [vmem:[#allocation2 + $0xe0] sm:$0xff]  ;;  %v2745_v42 = vld [vmem:[#allocation2 + $0x4f0] sm:$0xff]  ;;  %1376 = vst.msk [vmem:[#allocation2 + $0x460] sm:$0xff] %vm1305_vm0, %v7222_v45  ;;  %1312 = vst.msk [vmem:[#allocation2 + $0x60] sm:$0xff] %vm1305_vm0, %v7223_v46 }
  0x90   :  { %v2617_v44 = vld [vmem:[#allocation2 + $0xf0] sm:$0xff]  ;;  %v2715_v47 = vld [vmem:[#allocation2 + $0x400] sm:$0xff]  ;;  %1377 = vst.msk [vmem:[#allocation2 + $0x470] sm:$0xff] %vm1305_vm0, %v7224_v48  ;;  %1313 = vst.msk [vmem:[#allocation2 + $0x70] sm:$0xff] %vm1305_vm0, %v7225_v50 }
  0x91   :  { %3389 = vxpose.xlu1.c.b16.cont [3/8] %v2735_v18, 128  ;;  %v2587_v49 = vld [vmem:[#allocation2] sm:$0xff]  ;;  %v2717_v52 = vld [vmem:[#allocation2 + $0x410] sm:$0xff]  ;;  %2531 = vst.msk [vmem:[#allocation2 + $0x488] sm:$0xff] %vm1305_vm0, %v7226_v51  ;;  %2467 = vst.msk [vmem:[#allocation2 + $0x88] sm:$0xff] %vm1305_vm0, %v7227_v53 }
  0x92   :  { %3133 = vxpose.xlu0.c.b16.cont [3/8] %v2607_v19, 128  ;;  %v2589_v54 = vld [vmem:[#allocation2 + $0x10] sm:$0xff]  ;;  %v2719_v57 = vld [vmem:[#allocation2 + $0x420] sm:$0xff]  ;;  %2532 = vst.msk [vmem:[#allocation2 + $0x498] sm:$0xff] %vm1305_vm0, %v7228_v55  ;;  %2468 = vst.msk [vmem:[#allocation2 + $0x98] sm:$0xff] %vm1305_vm0, %v7229_v56 }
  0x93   :  { %v2591_v59 = vld [vmem:[#allocation2 + $0x20] sm:$0xff]  ;;  %v2721_v63 = vld [vmem:[#allocation2 + $0x430] sm:$0xff]  ;;  %2533 = vst.msk [vmem:[#allocation2 + $0x4a8] sm:$0xff] %vm1305_vm0, %v7236_v0  ;;  %2469 = vst.msk [vmem:[#allocation2 + $0xa8] sm:$0xff] %vm1305_vm0, %v7237_v2 }
  0x94   :  { %v2593_v1 = vld [vmem:[#allocation2 + $0x30] sm:$0xff]  ;;  %v2723_v4 = vld [vmem:[#allocation2 + $0x440] sm:$0xff]  ;;  %v7245_v10 = vld [vmem:[%s10607_s0 + $0x458] sm:$0xff]   ;;  %2534 = vst.msk [vmem:[#allocation2 + $0x4b8] sm:$0xff] %vm1305_vm0, %v7244_v9 }
  0x95   :  { %3390 = vxpose.xlu1.c.b16.cont [4/8] %v2737_v23, 128  ;;  %v2595_v5 = vld [vmem:[#allocation2 + $0x40] sm:$0xff]  ;;  %v2725_v12 = vld [vmem:[#allocation2 + $0x450] sm:$0xff]  ;;  %2470 = vst.msk [vmem:[#allocation2 + $0xb8] sm:$0xff] %vm1305_vm0, %v7245_v10  ;;  %v7261_v28 = vld [vmem:[%s10607_s0 + $0x468] sm:$0xff]  }
  0x96   :  { %3134 = vxpose.xlu0.c.b16.cont [4/8] %v2609_v24, 128  ;;  %v7246_v11 = vld [vmem:[%s10608_s1 + $0x24] ss:$8 sps:$4 sm:$0xff]   ;;  %v2597_v15 = vld [vmem:[#allocation2 + $0x50] sm:$0xff]  ;;  %2472 = vst.msk [vmem:[#allocation2 + $0xd8] sm:$0xff] %vm1305_vm0, %v7261_v28  ;;  %v7267_v33 = vld [vmem:[%s10608_s1 + $0x440] ss:$8 sps:$4 sm:$0xff]  }
  0x97   :  { %v7248_v13 = vld [vmem:[%s10608_s1 + $0x424] ss:$8 sps:$4 sm:$0xff]   ;;  %4895 = vmatprep.subr.bf16.mxu1 %v7246_v11  ;;  %v7256_v22 = vld [vmem:[%s10608_s1 + $0x434] ss:$8 sps:$4 sm:$0xff]   ;;  %v7258_v23 = vld [vmem:[%s10608_s1 + $0x30] ss:$8 sps:$4 sm:$0xff]  }
  0x98   :  { %v2727_v17 = vld [vmem:[#allocation2 + $0x460] sm:$0xff]  ;;  %5523 = vmatprep.subr.bf16.mxu0 %v7248_v13  ;;  %4896 = vmatpush1.bf16.msra.mxu1 %v7250_v14  ;;  %v2729_v24 = vld [vmem:[#allocation2 + $0x470] sm:$0xff]  ;;  %v2732_v31 = vld [vmem:[#allocation2 + $0x488] sm:$0xff]  ;;  %2524 = vst.msk [vmem:[#allocation2 + $0x418] sm:$0xff] %vm1305_vm0, %v7292_v61 }
  0x99   :  { %3391 = vxpose.xlu1.c.b16.cont [5/8] %v2739_v27, 128  ;;  %v7252_v18 = vld [vmem:[%s10607_s0 + $0x660] sm:$0xff]   ;;  %5524 = vmatpush1.bf16.msra.mxu0 %v7251_v16  ;;  %v7259_v25 = vld [vmem:[%s10608_s1 + $0x430] ss:$8 sps:$4 sm:$0xff]   ;;  %v7260_v27 = vld [vmem:[%s10607_s0 + $0x668] sm:$0xff]   ;;  %2460 = vst.msk [vmem:[#allocation2 + $0x18] sm:$0xff] %vm1305_vm0, %v7293_v62 }
  0x9a   :  { %3135 = vxpose.xlu0.c.b16.cont [5/8] %v2611_v29, 128  ;;  %v2599_v19 = vld [vmem:[#allocation2 + $0x60] sm:$0xff]  ;;  %2535 = vst.msk [vmem:[#allocation2 + $0x4c8] sm:$0xff] %vm1305_vm0, %v7252_v18  ;;  %4897 = vmatprep.subr.bf16.mxu1 %v7254_v21  ;;  %v2601_v26 = vld [vmem:[#allocation2 + $0x70] sm:$0xff]  ;;  %2536 = vst.msk [vmem:[#allocation2 + $0x4d8] sm:$0xff] %vm1305_vm0, %v7260_v27 }
  0x9b   :  { %v7253_v20 = vld [vmem:[%s10607_s0 + $0x460] sm:$0xff]   ;;  %5525 = vmatprep.subr.bf16.mxu0 %v7256_v22  ;;  %v7268_v35 = vld [vmem:[%s10607_s0 + $0x670] sm:$0xff]   ;;  %v2734_v38 = vld [vmem:[#allocation2 + $0x498] sm:$0xff]  ;;  %2525 = vst.msk [vmem:[#allocation2 + $0x428] sm:$0xff] %vm1305_vm0, %v7300_v6 }
  0x9c   :  { %2471 = vst.msk [vmem:[#allocation2 + $0xc8] sm:$0xff] %vm1305_vm0, %v7253_v20  ;;  %4898 = vmatpush1.bf16.msra.mxu1 %v7258_v23  ;;  %v7262_v29 = vld [vmem:[%s10608_s1 + $0x44] ss:$8 sps:$4 sm:$0xff]   ;;  %v7269_v36 = vld [vmem:[%s10607_s0 + $0x470] sm:$0xff]   ;;  %2537 = vst.msk [vmem:[#allocation2 + $0x4e8] sm:$0xff] %vm1305_vm0, %v7268_v35 }
  0x9d   :  { %3392 = vxpose.xlu1.c.b16.cont [6/8] %v2741_v32, 128  ;;  %5526 = vmatpush1.bf16.msra.mxu0 %v7259_v25  ;;  %v7264_v30 = vld [vmem:[%s10608_s1 + $0x444] ss:$8 sps:$4 sm:$0xff]   ;;  %v7266_v32 = vld [vmem:[%s10608_s1 + $0x40] ss:$8 sps:$4 sm:$0xff]   ;;  %2473 = vst.msk [vmem:[#allocation2 + $0xe8] sm:$0xff] %vm1305_vm0, %v7269_v36  ;;  %v2606_v41 = vld [vmem:[#allocation2 + $0x98] sm:$0xff] }
  0x9e   :  { %3136 = vxpose.xlu0.c.b16.cont [6/8] %v2613_v34, 128  ;;  %4899 = vmatprep.subr.bf16.mxu1 %v7262_v29  ;;  %v2604_v34 = vld [vmem:[#allocation2 + $0x88] sm:$0xff]  ;;  %v7274_v40 = vld [vmem:[%s10608_s1 + $0x50] ss:$8 sps:$4 sm:$0xff]   ;;  %v7284_v53 = vld [vmem:[%s10607_s0 + $0x600] sm:$0xff]  }
  0x9f   :  { %5527 = vmatprep.subr.bf16.mxu0 %v7264_v30  ;;  %v2736_v43 = vld [vmem:[#allocation2 + $0x4a8] sm:$0xff]  ;;  %v7277_v46 = vld [vmem:[%s10607_s0 + $0x478] sm:$0xff]   ;;  %2523 = vst.msk [vmem:[#allocation2 + $0x408] sm:$0xff] %vm1305_vm0, %v7284_v53  ;;  %v7301_v8 = vld [vmem:[%s10607_s0 + $0x410] sm:$0xff]  }
  0xa0   :  { %4900 = vmatpush1.bf16.msra.mxu1 %v7266_v32  ;;  %v2608_v45 = vld [vmem:[#allocation2 + $0xa8] sm:$0xff]  ;;  %2474 = vst.msk [vmem:[#allocation2 + $0xf8] sm:$0xff] %vm1305_vm0, %v7277_v46  ;;  %v2738_v50 = vld [vmem:[#allocation2 + $0x4b8] sm:$0xff]  ;;  %2461 = vst.msk [vmem:[#allocation2 + $0x28] sm:$0xff] %vm1305_vm0, %v7301_v8 }
  0xa1   :  { %3393 = vxpose.xlu1.c.b16.cont [7/8] %v2743_v37, 128  ;;  %5528 = vmatpush1.bf16.msra.mxu0 %v7267_v33  ;;  %v7270_v37 = vld [vmem:[%s10608_s1 + $0x54] ss:$8 sps:$4 sm:$0xff]   ;;  %v7280_v48 = vld [vmem:[%s10608_s1 + $0x464] ss:$8 sps:$4 sm:$0xff]   ;;  %v7283_v51 = vld [vmem:[%s10608_s1 + $0x460] ss:$8 sps:$4 sm:$0xff]  }
  0xa2   :  { %3137 = vxpose.xlu0.c.b16.cont [7/8] %v2615_v39, 128  ;;  %v7272_v39 = vld [vmem:[%s10608_s1 + $0x454] ss:$8 sps:$4 sm:$0xff]   ;;  %4901 = vmatprep.subr.bf16.mxu1 %v7270_v37  ;;  %v7298_v2 = vld [vmem:[%s10608_s1 + $0x80] ss:$8 sps:$4 sm:$0xff]   ;;  %v7306_v11 = vld [vmem:[%s10608_s1 + $0x90] ss:$8 sps:$4 sm:$0xff]  }
  0xa3   :  { %5529 = vmatprep.subr.bf16.mxu0 %v7272_v39  ;;  %v7286_v55 = vld [vmem:[%s10608_s1 + $0x74] ss:$8 sps:$4 sm:$0xff]   ;;  %v2612_v60 = vld [vmem:[#allocation2 + $0xc8] sm:$0xff]  ;;  %v7307_v13 = vld [vmem:[%s10608_s1 + $0x490] ss:$8 sps:$4 sm:$0xff]  }
  0xa4   :  { %4902 = vmatpush1.bf16.msra.mxu1 %v7274_v40  ;;  %v7288_v56 = vld [vmem:[%s10608_s1 + $0x474] ss:$8 sps:$4 sm:$0xff]   ;;  %v2616_v7 = vld [vmem:[#allocation2 + $0xe8] sm:$0xff]  ;;  %v7316_v23 = vld [vmem:[%s10607_s0 + $0x620] sm:$0xff]  }
  0xa5   :  { %3394 = vxpose.xlu1.c.b16.end [8/8] %v2745_v42, 128  ;;  %v7275_v42 = vld [vmem:[%s10608_s1 + $0x450] ss:$8 sps:$4 sm:$0xff]   ;;  %v7302_v9 = vld [vmem:[%s10608_s1 + $0x94] ss:$8 sps:$4 sm:$0xff]   ;;  %v7312_v18 = vld [vmem:[%s10608_s1 + $0x4a4] ss:$8 sps:$4 sm:$0xff]  }
  0xa6   :  { %3138 = vxpose.xlu0.c.b16.end [8/8] %v2617_v44, 128  ;;  %v7276_v44 = vld [vmem:[%s10607_s0 + $0x678] sm:$0xff]   ;;  %5530 = vmatpush1.bf16.msra.mxu0 %v7275_v42  ;;  %v7314_v20 = vld [vmem:[%s10608_s1 + $0xa0] ss:$8 sps:$4 sm:$0xff]   ;;  %2527 = vst.msk [vmem:[#allocation2 + $0x448] sm:$0xff] %vm1305_vm0, %v7316_v23  ;;  %v7326_v35 = vld [vmem:[%s10608_s1 + $0xc4] ss:$8 sps:$4 sm:$0xff]  }
  0xa7   :  { %2538 = vst.msk [vmem:[#allocation2 + $0x4f8] sm:$0xff] %vm1305_vm0, %v7276_v44  ;;  %5531 = vmatprep.subr.bf16.mxu0 %v7280_v48  ;;  %v2742_v0 = vld [vmem:[#allocation2 + $0x4d8] sm:$0xff]  ;;  %v7315_v21 = vld [vmem:[%s10608_s1 + $0x4a0] ss:$8 sps:$4 sm:$0xff]   ;;  %v7328_v37 = vld [vmem:[%s10608_s1 + $0x4c4] ss:$8 sps:$4 sm:$0xff]  }
  0xa8   :  { %v2614_v3 = vld [vmem:[#allocation2 + $0xd8] sm:$0xff]  ;;  %v7324_v32 = vld [vmem:[%s10607_s0 + $0x628] sm:$0xff]   ;;  %v7333_v44 = vld [vmem:[%s10607_s0 + $0x430] sm:$0xff]  }
  0xa9   :  { %3355 = vxpose.xlu1.c.b16.start [1/8] %v2715_v47, 128  ;;  %v7278_v47 = vld [vmem:[%s10608_s1 + $0x64] ss:$8 sps:$4 sm:$0xff]   ;;  %v7304_v10 = vld [vmem:[%s10608_s1 + $0x494] ss:$8 sps:$4 sm:$0xff]   ;;  %v7322_v28 = vld [vmem:[%s10608_s1 + $0xb0] ss:$8 sps:$4 sm:$0xff]  }
  0xaa   :  { %3099 = vxpose.xlu0.c.b16.start [1/8] %v2587_v49, 128  ;;  %v7282_v49 = vld [vmem:[%s10608_s1 + $0x60] ss:$8 sps:$4 sm:$0xff]   ;;  %4903 = vmatprep.subr.bf16.mxu1 %v7278_v47  ;;  %v2618_v14 = vld [vmem:[#allocation2 + $0xf8] sm:$0xff]  ;;  %2528 = vst.msk [vmem:[#allocation2 + $0x458] sm:$0xff] %vm1305_vm0, %v7324_v32  ;;  %2465 = vst.msk [vmem:[#allocation2 + $0x68] sm:$0xff] %vm1305_vm0, %v7333_v44 }
  0xab   :  { %4904 = vmatpush1.bf16.msra.mxu1 %v7282_v49  ;;  %5532 = vmatpush1.bf16.msra.mxu0 %v7283_v51  ;;  %v7309_v16 = vld [vmem:[%s10607_s0 + $0x418] sm:$0xff]   ;;  %v2592_v33 = vld [vmem:[#allocation2 + $0x28] sm:$0xff] }
  0xac   :  { %4905 = vmatprep.subr.bf16.mxu1 %v7286_v55  ;;  %5533 = vmatprep.subr.bf16.mxu0 %v7288_v56  ;;  %2462 = vst.msk [vmem:[#allocation2 + $0x38] sm:$0xff] %vm1305_vm0, %v7309_v16  ;;  %v7318_v25 = vld [vmem:[%s10608_s1 + $0xb4] ss:$8 sps:$4 sm:$0xff]   ;;  %v7323_v30 = vld [vmem:[%s10608_s1 + $0x4b0] ss:$8 sps:$4 sm:$0xff]   ;;  %v7377_v44 = vld [vmem:[%s10607_s0 + $0xe8] sm:$0xff]  }
  0xad   :  { %3356 = vxpose.xlu1.c.b16.cont [2/8] %v2717_v52, 128  ;;  %v2610_v52 = vld [vmem:[#allocation2 + $0xb8] sm:$0xff]  ;;  %v2724_v49 = vld [vmem:[#allocation2 + $0x448] sm:$0xff]  ;;  %1335 = vst.msk [vmem:[#allocation2 + $0x1d0] sm:$0xff] %vm1305_vm0, %v7377_v44 }
  0xae   :  { %3100 = vxpose.xlu0.c.b16.cont [2/8] %v2589_v54, 128  ;;  %v7285_v54 = vld [vmem:[%s10607_s0 + $0x400] sm:$0xff]   ;;  %v7320_v27 = vld [vmem:[%s10608_s1 + $0x4b4] ss:$8 sps:$4 sm:$0xff]   ;;  %v7339_v51 = vld [vmem:[%s10608_s1 + $0x4d0] ss:$8 sps:$4 sm:$0xff]  }
  0xaf   :  { %2459 = vst.msk [vmem:[#allocation2 + $0x8] sm:$0xff] %vm1305_vm0, %v7285_v54  ;;  %4906 = vmatpush1.bf16.msra.mxu1 %v7290_v58  ;;  %v2590_v29 = vld [vmem:[#allocation2 + $0x18] sm:$0xff]  ;;  %v7361_v32 = vld [vmem:[%s10608_s1 + $0x500] ss:$8 sps:$4 sm:$0xff]  }
  0xb0   :  { %v7334_v46 = vld [vmem:[%s10608_s1 + $0xd4] ss:$8 sps:$4 sm:$0xff]   ;;  %v7354_v8 = vld [vmem:[%s10608_s1 + $0xf0] ss:$8 sps:$4 sm:$0xff]  }
  0xb1   :  { %3357 = vxpose.xlu1.c.b16.cont [3/8] %v2719_v57, 128  ;;  %v2740_v57 = vld [vmem:[#allocation2 + $0x4c8] sm:$0xff]  ;;  %v7336_v48 = vld [vmem:[%s10608_s1 + $0x4d4] ss:$8 sps:$4 sm:$0xff]  }
  0xb2   :  { %3101 = vxpose.xlu0.c.b16.cont [3/8] %v2591_v59, 128  ;;  %v7291_v59 = vld [vmem:[%s10608_s1 + $0x470] ss:$8 sps:$4 sm:$0xff]  }
  0xb3   :  { %5534 = vmatpush1.bf16.msra.mxu0 %v7291_v59  ;;  %v2594_v42 = vld [vmem:[#allocation2 + $0x38] sm:$0xff]  ;;  %v7344_v59 = vld [vmem:[%s10608_s1 + $0x4e4] ss:$8 sps:$4 sm:$0xff]  }
  0xb4   :  { %v7340_v54 = vld [vmem:[%s10607_s0 + $0x638] sm:$0xff]  }
  0xb5   :  { %3358 = vxpose.xlu1.c.b16.cont [4/8] %v2721_v63, 128  ;;  %v7294_v63 = vld [vmem:[%s10608_s1 + $0x84] ss:$8 sps:$4 sm:$0xff]   ;;  %v7341_v56 = vld [vmem:[%s10607_s0 + $0x438] sm:$0xff]   ;;  %2530 = vst.msk [vmem:[#allocation2 + $0x478] sm:$0xff] %vm1305_vm0, %v7340_v54  ;;  %v7384_v54 = vld [vmem:[%s10607_s0 + $0x2f0] sm:$0xff]  }
  0xb6   :  { %3102 = vxpose.xlu0.c.b16.cont [4/8] %v2593_v1, 128  ;;  %v7296_v1 = vld [vmem:[%s10608_s1 + $0x484] ss:$8 sps:$4 sm:$0xff]   ;;  %4907 = vmatprep.subr.bf16.mxu1 %v7294_v63  ;;  %v2726_v58 = vld [vmem:[#allocation2 + $0x458] sm:$0xff]  ;;  %2466 = vst.msk [vmem:[#allocation2 + $0x78] sm:$0xff] %vm1305_vm0, %v7341_v56  ;;  %v7347_v63 = vld [vmem:[%s10608_s1 + $0x4e0] ss:$8 sps:$4 sm:$0xff]  }
  0xb7   :  { %5535 = vmatprep.subr.bf16.mxu0 %v7296_v1  ;;  %4908 = vmatpush1.bf16.msra.mxu1 %v7298_v2  ;;  %v2588_v22 = vld [vmem:[#allocation2 + $0x8] sm:$0xff]  ;;  %v7348_v2 = vld [vmem:[%s10607_s0 + $0x2c0] sm:$0xff]   ;;  %1400 = vst.msk [vmem:[#allocation2 + $0x5e0] sm:$0xff] %vm1305_vm0, %v7384_v54 }
  0xb8   :  { %4909 = vmatprep.subr.bf16.mxu1 %v7302_v9  ;;  %1394 = vst.msk [vmem:[#allocation2 + $0x580] sm:$0xff] %vm1305_vm0, %v7348_v2 }
  0xb9   :  { %3359 = vxpose.xlu1.c.b16.cont [5/8] %v2723_v4, 128  ;;  %v7299_v4 = vld [vmem:[%s10608_s1 + $0x480] ss:$8 sps:$4 sm:$0xff]  }
  0xba   :  { %3103 = vxpose.xlu0.c.b16.cont [5/8] %v2595_v5, 128  ;;  %v2744_v5 = vld [vmem:[#allocation2 + $0x4e8] sm:$0xff]  ;;  %5536 = vmatpush1.bf16.msra.mxu0 %v7299_v4  ;;  %v7349_v4 = vld [vmem:[%s10607_s0 + $0xc0] sm:$0xff]  }
  0xbb   :  { %5537 = vmatprep.subr.bf16.mxu0 %v7304_v10  ;;  %4910 = vmatpush1.bf16.msra.mxu1 %v7306_v11  ;;  %1330 = vst.msk [vmem:[#allocation2 + $0x180] sm:$0xff] %vm1305_vm0, %v7349_v4  ;;  %v7355_v10 = vld [vmem:[%s10608_s1 + $0x4f0] ss:$8 sps:$4 sm:$0xff]   ;;  %v7390_v4 = vld [vmem:[%s10608_s1 + $0x534] ss:$8 sps:$4 sm:$0xff]  }
  0xbc   :  { %v2730_v11 = vld [vmem:[#allocation2 + $0x478] sm:$0xff] }
  0xbd   :  { %3360 = vxpose.xlu1.c.b16.cont [6/8] %v2725_v12, 128  ;;  %v2746_v12 = vld [vmem:[#allocation2 + $0x4f8] sm:$0xff] }
  0xbe   :  { %3104 = vxpose.xlu0.c.b16.cont [6/8] %v2597_v15, 128  ;;  %v7308_v15 = vld [vmem:[%s10607_s0 + $0x618] sm:$0xff]   ;;  %5538 = vmatpush1.bf16.msra.mxu0 %v7307_v13  ;;  %v7357_v13 = vld [vmem:[%s10607_s0 + $0xc8] sm:$0xff]  }
  0xbf   :  { %2526 = vst.msk [vmem:[#allocation2 + $0x438] sm:$0xff] %vm1305_vm0, %v7308_v15  ;;  %5539 = vmatprep.subr.bf16.mxu0 %v7312_v18  ;;  %v2602_v15 = vld [vmem:[#allocation2 + $0x78] sm:$0xff]  ;;  %1331 = vst.msk [vmem:[#allocation2 + $0x190] sm:$0xff] %vm1305_vm0, %v7357_v13  ;;  %v2763_v18 = vld [vmem:[#allocation2 + $0x580] sm:$0xff] }
  0xc1   :  { %3361 = vxpose.xlu1.c.b16.cont [7/8] %v2727_v17, 128  ;;  %v7310_v17 = vld [vmem:[%s10608_s1 + $0xa4] ss:$8 sps:$4 sm:$0xff]  }
  0xc2   :  { %3105 = vxpose.xlu0.c.b16.cont [7/8] %v2599_v19, 128  ;;  %v2716_v19 = vld [vmem:[#allocation2 + $0x408] sm:$0xff]  ;;  %4911 = vmatprep.subr.bf16.mxu1 %v7310_v17 }
  0xc3   :  { %4912 = vmatpush1.bf16.msra.mxu1 %v7314_v20  ;;  %5540 = vmatpush1.bf16.msra.mxu0 %v7315_v21  ;;  %v7360_v17 = vld [vmem:[%s10608_s1 + $0x104] ss:$8 sps:$4 sm:$0xff]  }
  0xc4   :  { %4913 = vmatprep.subr.bf16.mxu1 %v7318_v25  ;;  %5541 = vmatprep.subr.bf16.mxu0 %v7320_v27  ;;  %v2635_v20 = vld [vmem:[#allocation2 + $0x180] sm:$0xff]  ;;  %v7366_v25 = vld [vmem:[%s10607_s0 + $0x2d8] sm:$0xff]  }
  0xc5   :  { %3362 = vxpose.xlu1.c.b16.end [8/8] %v2729_v24, 128  ;;  %v7317_v24 = vld [vmem:[%s10607_s0 + $0x420] sm:$0xff]   ;;  %v7367_v27 = vld [vmem:[%s10607_s0 + $0xd8] sm:$0xff]   ;;  %1397 = vst.msk [vmem:[#allocation2 + $0x5b0] sm:$0xff] %vm1305_vm0, %v7366_v25 }
  0xc6   :  { %3106 = vxpose.xlu0.c.b16.end [8/8] %v2601_v26, 128  ;;  %v2718_v26 = vld [vmem:[#allocation2 + $0x418] sm:$0xff]  ;;  %2463 = vst.msk [vmem:[#allocation2 + $0x48] sm:$0xff] %vm1305_vm0, %v7317_v24  ;;  %v7365_v24 = vld [vmem:[%s10607_s0 + $0xd0] sm:$0xff]   ;;  %1333 = vst.msk [vmem:[#allocation2 + $0x1b0] sm:$0xff] %vm1305_vm0, %v7367_v27 }
  0xc7   :  { %4914 = vmatpush1.bf16.msra.mxu1 %v7322_v28  ;;  %5542 = vmatpush1.bf16.msra.mxu0 %v7323_v30  ;;  %v2722_v40 = vld [vmem:[#allocation2 + $0x438] sm:$0xff]  ;;  %1332 = vst.msk [vmem:[#allocation2 + $0x1a0] sm:$0xff] %vm1305_vm0, %v7365_v24  ;;  %v7398_v24 = vld [vmem:[%s10608_s1 + $0x540] ss:$8 sps:$4 sm:$0xff]   ;;  %v7404_v27 = vld [vmem:[%s10607_s0 + $0x290] sm:$0xff]  }
  0xc8   :  { %4915 = vmatprep.subr.bf16.mxu1 %v7326_v35  ;;  %5543 = vmatprep.subr.bf16.mxu0 %v7328_v37  ;;  %v7373_v37 = vld [vmem:[%s10608_s1 + $0x114] ss:$8 sps:$4 sm:$0xff]   ;;  %v7401_v25 = vld [vmem:[%s10608_s1 + $0x140] ss:$8 sps:$4 sm:$0xff]   ;;  %1388 = vst.msk [vmem:[#allocation2 + $0x520] sm:$0xff] %vm1305_vm0, %v7404_v27 }
  0xc9   :  { %3403 = vxpose.xlu1.c.b16.start [1/8] %v2732_v31, 128  ;;  %v2720_v31 = vld [vmem:[#allocation2 + $0x428] sm:$0xff]  ;;  %v7444_v27 = vld [vmem:[%s10607_s0 + $0x6d0] sm:$0xff]  }
  0xca   :  { %3147 = vxpose.xlu0.c.b16.start [1/8] %v2604_v34, 128  ;;  %v7325_v34 = vld [vmem:[%s10607_s0 + $0x428] sm:$0xff]   ;;  %2549 = vst.msk [vmem:[#allocation2 + $0x5a8] sm:$0xff] %vm1305_vm0, %v7444_v27 }
  0xcb   :  { %2464 = vst.msk [vmem:[#allocation2 + $0x58] sm:$0xff] %vm1305_vm0, %v7325_v34  ;;  %v7374_v34 = vld [vmem:[%s10607_s0 + $0x2e0] sm:$0xff]  }
  0xcc   :  { %1398 = vst.msk [vmem:[#allocation2 + $0x5c0] sm:$0xff] %vm1305_vm0, %v7374_v34 }
  0xcd   :  { %3404 = vxpose.xlu1.c.b16.cont [2/8] %v2734_v38, 128  ;;  %v7330_v38 = vld [vmem:[%s10608_s1 + $0xc0] ss:$8 sps:$4 sm:$0xff]  }
  0xce   :  { %3148 = vxpose.xlu0.c.b16.cont [2/8] %v2606_v41, 128  ;;  %v7331_v41 = vld [vmem:[%s10608_s1 + $0x4c0] ss:$8 sps:$4 sm:$0xff]   ;;  %4916 = vmatpush1.bf16.msra.mxu1 %v7330_v38 }
  0xcf   :  { %5544 = vmatpush1.bf16.msra.mxu0 %v7331_v41  ;;  %4917 = vmatprep.subr.bf16.mxu1 %v7334_v46  ;;  %v7375_v38 = vld [vmem:[%s10607_s0 + $0xe0] sm:$0xff]   ;;  %v7376_v41 = vld [vmem:[%s10607_s0 + $0x2e8] sm:$0xff]  }
  0xd0   :  { %5545 = vmatprep.subr.bf16.mxu0 %v7336_v48  ;;  %1334 = vst.msk [vmem:[#allocation2 + $0x1c0] sm:$0xff] %vm1305_vm0, %v7375_v38  ;;  %1399 = vst.msk [vmem:[#allocation2 + $0x5d0] sm:$0xff] %vm1305_vm0, %v7376_v41  ;;  %v2769_v48 = vld [vmem:[#allocation2 + $0x5b0] sm:$0xff] }
  0xd1   :  { %3405 = vxpose.xlu1.c.b16.cont [3/8] %v2736_v43, 128  ;;  %v7332_v43 = vld [vmem:[%s10607_s0 + $0x630] sm:$0xff]  }
  0xd2   :  { %3149 = vxpose.xlu0.c.b16.cont [3/8] %v2608_v45, 128  ;;  %2529 = vst.msk [vmem:[#allocation2 + $0x468] sm:$0xff] %vm1305_vm0, %v7332_v43  ;;  %v2598_v62 = vld [vmem:[#allocation2 + $0x58] sm:$0xff] }
  0xd3   :  { %5546 = vmatpush1.bf16.msra.mxu0 %v7339_v51  ;;  %v7371_v43 = vld [vmem:[%s10608_s1 + $0x110] ss:$8 sps:$4 sm:$0xff]   ;;  %v7380_v51 = vld [vmem:[%s10608_s1 + $0x524] ss:$8 sps:$4 sm:$0xff]  }
  0xd4   :  { %5547 = vmatprep.subr.bf16.mxu0 %v7344_v59  ;;  %v7411_v41 = vld [vmem:[%s10608_s1 + $0x150] ss:$8 sps:$4 sm:$0xff]  }
  0xd5   :  { %3406 = vxpose.xlu1.c.b16.cont [4/8] %v2738_v50, 128  ;;  %v7338_v50 = vld [vmem:[%s10608_s1 + $0xd0] ss:$8 sps:$4 sm:$0xff]  }
  0xd6   :  { %3150 = vxpose.xlu0.c.b16.cont [4/8] %v2610_v52, 128  ;;  %v2596_v52 = vld [vmem:[#allocation2 + $0x48] sm:$0xff]  ;;  %4918 = vmatpush1.bf16.msra.mxu1 %v7338_v50 }
  0xd7   :  { %5548 = vmatpush1.bf16.msra.mxu0 %v7347_v63  ;;  %v7387_v63 = vld [vmem:[%s10607_s0 + $0xf8] sm:$0xff]   ;;  %v2773_v2 = vld [vmem:[#allocation2 + $0x5d0] sm:$0xff] }
  0xd8   :  { %1337 = vst.msk [vmem:[#allocation2 + $0x1f0] sm:$0xff] %vm1305_vm0, %v7387_v63  ;;  %v7425_v63 = vld [vmem:[%s10607_s0 + $0xb0] sm:$0xff]  }
  0xd9   :  { %3407 = vxpose.xlu1.c.b16.cont [5/8] %v2740_v57, 128  ;;  %v7342_v57 = vld [vmem:[%s10608_s1 + $0xe4] ss:$8 sps:$4 sm:$0xff]   ;;  %1328 = vst.msk [vmem:[#allocation2 + $0x160] sm:$0xff] %vm1305_vm0, %v7425_v63 }
  0xda   :  { %3151 = vxpose.xlu0.c.b16.cont [5/8] %v2612_v60, 128  ;;  %v7346_v60 = vld [vmem:[%s10608_s1 + $0xe0] ss:$8 sps:$4 sm:$0xff]   ;;  %4919 = vmatprep.subr.bf16.mxu1 %v7342_v57 }
  0xdb   :  { %v2728_v1 = vld [vmem:[#allocation2 + $0x468] sm:$0xff]  ;;  %4920 = vmatpush1.bf16.msra.mxu1 %v7346_v60  ;;  %v2771_v57 = vld [vmem:[#allocation2 + $0x5c0] sm:$0xff] }
  0xdc   :  { %v2643_v60 = vld [vmem:[#allocation2 + $0x1c0] sm:$0xff] }
  0xdd   :  { %3408 = vxpose.xlu1.c.b16.cont [6/8] %v2742_v0, 128 }
  0xde   :  { %3152 = vxpose.xlu0.c.b16.cont [6/8] %v2614_v3, 128  ;;  %v2600_v3 = vld [vmem:[#allocation2 + $0x68] sm:$0xff] }
  0xe1   :  { %3409 = vxpose.xlu1.c.b16.cont [7/8] %v2744_v5, 128  ;;  %v7350_v5 = vld [vmem:[%s10608_s1 + $0xf4] ss:$8 sps:$4 sm:$0xff]  }
  0xe2   :  { %3153 = vxpose.xlu0.c.b16.cont [7/8] %v2616_v7, 128  ;;  %v7352_v7 = vld [vmem:[%s10608_s1 + $0x4f4] ss:$8 sps:$4 sm:$0xff]   ;;  %4921 = vmatprep.subr.bf16.mxu1 %v7350_v5  ;;  %v7391_v5 = vld [vmem:[%s10608_s1 + $0x130] ss:$8 sps:$4 sm:$0xff]  }
  0xe3   :  { %5549 = vmatprep.subr.bf16.mxu0 %v7352_v7  ;;  %4922 = vmatpush1.bf16.msra.mxu1 %v7354_v8  ;;  %v7393_v7 = vld [vmem:[%s10608_s1 + $0x134] ss:$8 sps:$4 sm:$0xff]   ;;  %v7394_v8 = vld [vmem:[%s10607_s0 + $0x280] sm:$0xff]  }
  0xe4   :  { %5550 = vmatpush1.bf16.msra.mxu0 %v7355_v10  ;;  %5048 = vmatprep.subr.bf16.mxu1 %v7360_v17  ;;  %1386 = vst.msk [vmem:[#allocation2 + $0x500] sm:$0xff] %vm1305_vm0, %v7394_v8  ;;  %v7396_v17 = vld [vmem:[%s10607_s0 + $0x288] sm:$0xff]   ;;  %v7431_v8 = vld [vmem:[%s10608_s1 + $0x170] ss:$8 sps:$4 sm:$0xff]  }
  0xe5   :  { %3410 = vxpose.xlu1.c.b16.end [8/8] %v2746_v12, 128  ;;  %v7356_v12 = vld [vmem:[%s10607_s0 + $0x2c8] sm:$0xff]   ;;  %1387 = vst.msk [vmem:[#allocation2 + $0x510] sm:$0xff] %vm1305_vm0, %v7396_v17 }
  0xe6   :  { %3154 = vxpose.xlu0.c.b16.end [8/8] %v2618_v14, 128  ;;  %1395 = vst.msk [vmem:[#allocation2 + $0x590] sm:$0xff] %vm1305_vm0, %v7356_v12  ;;  %v7395_v12 = vld [vmem:[%s10607_s0 + $0x80] sm:$0xff]  }
  0xe7   :  { %1322 = vst.msk [vmem:[#allocation2 + $0x100] sm:$0xff] %vm1305_vm0, %v7395_v12 }
  0xe9   :  { %3371 = vxpose.xlu1.c.b16.start [1/8] %v2716_v19, 128  ;;  %v7363_v19 = vld [vmem:[%s10608_s1 + $0x504] ss:$8 sps:$4 sm:$0xff]  }
  0xea   :  { %3115 = vxpose.xlu0.c.b16.start [1/8] %v2588_v22, 128  ;;  %5676 = vmatprep.subr.bf16.mxu0 %v7363_v19  ;;  %v7364_v22 = vld [vmem:[%s10607_s0 + $0x2d0] sm:$0xff]  }
  0xeb   :  { %1396 = vst.msk [vmem:[#allocation2 + $0x5a0] sm:$0xff] %vm1305_vm0, %v7364_v22  ;;  %v2649_v22 = vld [vmem:[#allocation2 + $0x1f0] sm:$0xff] }
  0xec   :  { %v2749_v38 = vld [vmem:[#allocation2 + $0x510] sm:$0xff] }
  0xed   :  { %3372 = vxpose.xlu1.c.b16.cont [2/8] %v2718_v26, 128  ;;  %v2765_v26 = vld [vmem:[#allocation2 + $0x590] sm:$0xff] }
  0xee   :  { %3116 = vxpose.xlu0.c.b16.cont [2/8] %v2590_v29, 128  ;;  %v2637_v29 = vld [vmem:[#allocation2 + $0x190] sm:$0xff]  ;;  %v2619_v34 = vld [vmem:[#allocation2 + $0x100] sm:$0xff] }
  0xef   :  { %v3395_v36 = vpop.trf.xlu1 }
  0xf0   :  { %v3139_v39 = vpop.trf.xlu0  ;;  %5551 = vmatprep.mubr.bf16.mxu0 %v3395_v36  ;;  %v7368_v36 = vld [vmem:[%s10608_s1 + $0x510] ss:$8 sps:$4 sm:$0xff]  }
  0xf1   :  { %4923 = vmatprep.mubr.bf16.mxu1 %v3139_v39  ;;  %3373 = vxpose.xlu1.c.b16.cont [3/8] %v2720_v31, 128  ;;  %v7358_v31 = vld [vmem:[%s10608_s1 + $0x100] ss:$8 sps:$4 sm:$0xff]  }
  0xf2   :  { %3117 = vxpose.xlu0.c.b16.cont [3/8] %v2592_v33, 128  ;;  %v7370_v33 = vld [vmem:[%s10608_s1 + $0x514] ss:$8 sps:$4 sm:$0xff]  }
  0xf3   :  { %v8553_v45 = vpop.trf.xlu1 }
  0xf4   :  { %v8559_v47 = vpop.trf.xlu0 }
  0xf5   :  { %3374 = vxpose.xlu1.c.b16.cont [4/8] %v2722_v40, 128  ;;  %v2767_v40 = vld [vmem:[#allocation2 + $0x5a0] sm:$0xff] }
  0xf6   :  { %3118 = vxpose.xlu0.c.b16.cont [4/8] %v2594_v42, 128  ;;  %v2639_v42 = vld [vmem:[#allocation2 + $0x1a0] sm:$0xff] }
  0xf7   :  { %v8571_v53 = vpop.trf.xlu1 }
  0xf8   :  { %v8576_v55 = vpop.trf.xlu0 }
  0xf9   :  { %3375 = vxpose.xlu1.c.b16.cont [5/8] %v2724_v49, 128  ;;  %v2641_v49 = vld [vmem:[#allocation2 + $0x1b0] sm:$0xff] }
  0xfa   :  { %3119 = vxpose.xlu0.c.b16.cont [5/8] %v2596_v52, 128  ;;  %v7383_v52 = vld [vmem:[%s10608_s1 + $0x124] ss:$8 sps:$4 sm:$0xff]  }
  0xfb   :  { %v8592_v61 = vpop.trf.xlu1 }
  0xfc   :  { %v8597_v0 = vpop.trf.xlu0 }
  0xfd   :  { %3376 = vxpose.xlu1.c.b16.cont [6/8] %v2726_v58, 128  ;;  %v7385_v58 = vld [vmem:[%s10607_s0 + $0xf0] sm:$0xff]  }
  0xfe   :  { %3120 = vxpose.xlu0.c.b16.cont [6/8] %v2598_v62, 128  ;;  %1336 = vst.msk [vmem:[#allocation2 + $0x1e0] sm:$0xff] %vm1305_vm0, %v7385_v58  ;;  %v7386_v62 = vld [vmem:[%s10607_s0 + $0x2f8] sm:$0xff]   ;;  %v7423_v58 = vld [vmem:[%s10608_s1 + $0x164] ss:$8 sps:$4 sm:$0xff]  }
  0xff   :  { %v8609_v6 = vpop.trf.xlu1  ;;  %1401 = vst.msk [vmem:[#allocation2 + $0x5f0] sm:$0xff] %vm1305_vm0, %v7386_v62 }
 0x100   :  { %v8618_v9 = vpop.trf.xlu0 }
 0x101   :  { %3377 = vxpose.xlu1.c.b16.cont [7/8] %v2728_v1, 128 }
 0x102   :  { %3121 = vxpose.xlu0.c.b16.cont [7/8] %v2600_v3, 128  ;;  %v2645_v3 = vld [vmem:[#allocation2 + $0x1d0] sm:$0xff] }
 0x103   :  { %v8629_v14 = vpop.trf.xlu1 }
 0x104   :  { %v8632_v16 = vpop.trf.xlu0 }
 0x105   :  { %3378 = vxpose.xlu1.c.b16.end [8/8] %v2730_v11, 128  ;;  %v2775_v11 = vld [vmem:[#allocation2 + $0x5e0] sm:$0xff] }
 0x106   :  { %3122 = vxpose.xlu0.c.b16.end [8/8] %v2602_v15, 128  ;;  %v2647_v15 = vld [vmem:[#allocation2 + $0x1e0] sm:$0xff] }
 0x107   :  { %v8641_v21 = vpop.trf.xlu1 }
 0x108   :  { %v8646_v23 = vpop.trf.xlu0 }
 0x109   :  { %3451 = vxpose.xlu1.c.b16.start [1/8] %v2763_v18, 128  ;;  %v7397_v18 = vld [vmem:[%s10607_s0 + $0x88] sm:$0xff]  }
 0x10a   :  { %3195 = vxpose.xlu0.c.b16.start [1/8] %v2635_v20, 128  ;;  %v2777_v20 = vld [vmem:[#allocation2 + $0x5f0] sm:$0xff]  ;;  %1323 = vst.msk [vmem:[#allocation2 + $0x110] sm:$0xff] %vm1305_vm0, %v7397_v18  ;;  %v2631_v18 = vld [vmem:[#allocation2 + $0x160] sm:$0xff] }
 0x10b   :  { %v8659_v28 = vpop.trf.xlu1 }
 0x10c   :  { %v8662_v30 = vpop.trf.xlu0 }
 0x10d   :  { %3452 = vxpose.xlu1.c.b16.cont [2/8] %v2765_v26, 128  ;;  %v7403_v26 = vld [vmem:[%s10608_s1 + $0x144] ss:$8 sps:$4 sm:$0xff]  }
 0x10e   :  { %3196 = vxpose.xlu0.c.b16.cont [2/8] %v2637_v29, 128 }
 0x10f   :  { %v3363_v35 = vpop.trf.xlu1 }
 0x110   :  { %v3107_v39 = vpop.trf.xlu0  ;;  %5552 = vmatmul.mubr.bf16.vlgmr.msra.gmra.mrb[0].mxu0 %v3363_v35  ;;  %v7406_v35 = vld [vmem:[%s10607_s0 + $0x298] sm:$0xff]  }
 0x111   :  { %4924 = vmatmul.mubr.bf16.vlgmr.msra.gmra.mrb[0].mxu1 %v3107_v39  ;;  %5677 = vmatpush1.bf16.msra.mxu0 %v7361_v32  ;;  %v7405_v32 = vld [vmem:[%s10607_s0 + $0x90] sm:$0xff]   ;;  %1389 = vst.msk [vmem:[#allocation2 + $0x530] sm:$0xff] %vm1305_vm0, %v7406_v35  ;;  %v7446_v35 = vld [vmem:[%s10607_s0 + $0x6d8] sm:$0xff]  }
 0x112   :  { %5049 = vmatpush1.bf16.msra.mxu1 %v7358_v31  ;;  %3453 = vxpose.xlu1.c.b16.cont [3/8] %v2767_v40, 128  ;;  %v2747_v31 = vld [vmem:[#allocation2 + $0x500] sm:$0xff]  ;;  %1324 = vst.msk [vmem:[#allocation2 + $0x120] sm:$0xff] %vm1305_vm0, %v7405_v32  ;;  %v2621_v39 = vld [vmem:[#allocation2 + $0x110] sm:$0xff]  ;;  %2550 = vst.msk [vmem:[#allocation2 + $0x5b8] sm:$0xff] %vm1305_vm0, %v7446_v35 }
 0x113   :  { %5561 = vmatprep.mubr.bf16.mxu0 %v8553_v45  ;;  %3197 = vxpose.xlu0.c.b16.cont [3/8] %v2639_v42, 128  ;;  %v3364_v46 = vpop.trf.xlu1  ;;  %v7381_v45 = vld [vmem:[%s10608_s1 + $0x120] ss:$8 sps:$4 sm:$0xff]   ;;  %v7408_v40 = vld [vmem:[%s10608_s1 + $0x550] ss:$8 sps:$4 sm:$0xff]   ;;  %v7413_v42 = vld [vmem:[%s10608_s1 + $0x154] ss:$8 sps:$4 sm:$0xff]  }
 0x114   :  { %4933 = vmatprep.mubr.bf16.mxu1 %v8559_v47  ;;  %v3108_v50 = vpop.trf.xlu0  ;;  %5678 = vmatprep.subr.bf16.mxu0 %v7370_v33  ;;  %v7378_v47 = vld [vmem:[%s10608_s1 + $0x520] ss:$8 sps:$4 sm:$0xff]   ;;  %v7445_v32 = vld [vmem:[%s10607_s0 + $0x4d0] sm:$0xff]  }
 0x115   :  { %5050 = vmatprep.subr.bf16.mxu1 %v7373_v37  ;;  %5679 = vmatpush1.bf16.msra.mxu0 %v7368_v36  ;;  %v7407_v36 = vld [vmem:[%s10607_s0 + $0x98] sm:$0xff]   ;;  %2485 = vst.msk [vmem:[#allocation2 + $0x1a8] sm:$0xff] %vm1305_vm0, %v7445_v32  ;;  %v7481_v32 = vld [vmem:[%s10608_s1 + $0x1c0] ss:$8 sps:$4 sm:$0xff]   ;;  %v7484_v35 = vld [vmem:[%s10607_s0 + $0x690] sm:$0xff]  }
 0x116   :  { %3454 = vxpose.xlu1.c.b16.cont [4/8] %v2769_v48, 128  ;;  %5051 = vmatpush1.bf16.msra.mxu1 %v7371_v43  ;;  %1325 = vst.msk [vmem:[#allocation2 + $0x130] sm:$0xff] %vm1305_vm0, %v7407_v36  ;;  %v7414_v43 = vld [vmem:[%s10607_s0 + $0x2a0] sm:$0xff]   ;;  %v7447_v36 = vld [vmem:[%s10607_s0 + $0x4d8] sm:$0xff]   ;;  %2541 = vst.msk [vmem:[#allocation2 + $0x528] sm:$0xff] %vm1305_vm0, %v7484_v35 }
 0x117   :  { %3198 = vxpose.xlu0.c.b16.cont [4/8] %v2641_v49, 128  ;;  %v3365_v56 = vpop.trf.xlu1  ;;  %5680 = vmatprep.subr.bf16.mxu0 %v7380_v51  ;;  %v7415_v48 = vld [vmem:[%s10607_s0 + $0xa0] sm:$0xff]   ;;  %1390 = vst.msk [vmem:[#allocation2 + $0x540] sm:$0xff] %vm1305_vm0, %v7414_v43  ;;  %v7416_v51 = vld [vmem:[%s10607_s0 + $0x2a8] sm:$0xff]   ;;  %2486 = vst.msk [vmem:[#allocation2 + $0x1b8] sm:$0xff] %vm1305_vm0, %v7447_v36 }
 0x118   :  { %v3109_v59 = vpop.trf.xlu0  ;;  %5562 = vmatmul.mubr.bf16.gmra.mrb[4].mxu0 %v3364_v46  ;;  %5052 = vmatprep.subr.bf16.mxu1 %v7383_v52  ;;  %v2751_v46 = vld [vmem:[#allocation2 + $0x520] sm:$0xff]  ;;  %1326 = vst.msk [vmem:[#allocation2 + $0x140] sm:$0xff] %vm1305_vm0, %v7415_v48  ;;  %1391 = vst.msk [vmem:[#allocation2 + $0x550] sm:$0xff] %vm1305_vm0, %v7416_v51  ;;  %v7456_v51 = vld [vmem:[%s10607_s0 + $0x6e8] sm:$0xff]  }
 0x119   :  { %4934 = vmatmul.mubr.bf16.gmra.mrb[4].mxu1 %v3108_v50  ;;  %5571 = vmatprep.mubr.bf16.mxu0 %v8571_v53  ;;  %v2623_v50 = vld [vmem:[#allocation2 + $0x120] sm:$0xff]  ;;  %2552 = vst.msk [vmem:[#allocation2 + $0x5d8] sm:$0xff] %vm1305_vm0, %v7456_v51  ;;  %v7525_v35 = vld [vmem:[%s10607_s0 + $0x150] sm:$0xff]  }
 0x11a   :  { %3455 = vxpose.xlu1.c.b16.cont [5/8] %v2771_v57, 128  ;;  %4943 = vmatprep.mubr.bf16.mxu1 %v8576_v55  ;;  %v7388_v55 = vld [vmem:[%s10608_s1 + $0x530] ss:$8 sps:$4 sm:$0xff]   ;;  %v7421_v57 = vld [vmem:[%s10608_s1 + $0x160] ss:$8 sps:$4 sm:$0xff]   ;;  %1348 = vst.msk [vmem:[#allocation2 + $0x2a0] sm:$0xff] %vm1305_vm0, %v7525_v35 }
 0x11b   :  { %3199 = vxpose.xlu0.c.b16.cont [5/8] %v2643_v60, 128  ;;  %v3366_v1 = vpop.trf.xlu1  ;;  %5053 = vmatpush1.bf16.msra.mxu1 %v7381_v45  ;;  %v7417_v45 = vld [vmem:[%s10607_s0 + $0xa8] sm:$0xff]   ;;  %v7454_v43 = vld [vmem:[%s10607_s0 + $0x6e0] sm:$0xff]  }
 0x11c   :  { %v3110_v53 = vpop.trf.xlu0  ;;  %5681 = vmatpush1.bf16.msra.mxu0 %v7378_v47  ;;  %5054 = vmatprep.subr.bf16.mxu1 %v7393_v7  ;;  %v2753_v47 = vld [vmem:[#allocation2 + $0x530] sm:$0xff]  ;;  %1327 = vst.msk [vmem:[#allocation2 + $0x150] sm:$0xff] %vm1305_vm0, %v7417_v45  ;;  %v7455_v48 = vld [vmem:[%s10607_s0 + $0x4e0] sm:$0xff]   ;;  %2551 = vst.msk [vmem:[#allocation2 + $0x5c8] sm:$0xff] %vm1305_vm0, %v7454_v43 }
 0x11d   :  { %5682 = vmatprep.subr.bf16.mxu0 %v7390_v4  ;;  %v2625_v54 = vld [vmem:[#allocation2 + $0x130] sm:$0xff]  ;;  %2487 = vst.msk [vmem:[#allocation2 + $0x1c8] sm:$0xff] %vm1305_vm0, %v7455_v48  ;;  %v7457_v45 = vld [vmem:[%s10607_s0 + $0x4e8] sm:$0xff]   ;;  %v7494_v51 = vld [vmem:[%s10607_s0 + $0x6a0] sm:$0xff]  }
 0x11e   :  { %3456 = vxpose.xlu1.c.b16.cont [6/8] %v2773_v2, 128  ;;  %v2755_v62 = vld [vmem:[#allocation2 + $0x540] sm:$0xff]  ;;  %v7428_v7 = vld [vmem:[%s10608_s1 + $0x570] ss:$8 sps:$4 sm:$0xff]   ;;  %2488 = vst.msk [vmem:[#allocation2 + $0x1d8] sm:$0xff] %vm1305_vm0, %v7457_v45  ;;  %v2752_v45 = vld [vmem:[#allocation2 + $0x528] sm:$0xff] }
 0x11f   :  { %3200 = vxpose.xlu0.c.b16.cont [6/8] %v2645_v3, 128  ;;  %v8746_v10 = vpop.trf.xlu1  ;;  %5055 = vmatpush1.bf16.msra.mxu1 %v7391_v5  ;;  %v2627_v2 = vld [vmem:[#allocation2 + $0x140] sm:$0xff]  ;;  %v7426_v3 = vld [vmem:[%s10607_s0 + $0x2b8] sm:$0xff]   ;;  %2543 = vst.msk [vmem:[#allocation2 + $0x548] sm:$0xff] %vm1305_vm0, %v7494_v51 }
 0x120   :  { %v8751_v13 = vpop.trf.xlu0  ;;  %5572 = vmatmul.mubr.bf16.gmra.mrb[8].mxu0 %v3365_v56  ;;  %5056 = vmatprep.subr.bf16.mxu1 %v7403_v26  ;;  %v7418_v56 = vld [vmem:[%s10608_s1 + $0x560] ss:$8 sps:$4 sm:$0xff]   ;;  %1393 = vst.msk [vmem:[#allocation2 + $0x570] sm:$0xff] %vm1305_vm0, %v7426_v3  ;;  %v7443_v26 = vld [vmem:[%s10608_s1 + $0x184] ss:$8 sps:$4 sm:$0xff]  }
 0x121   :  { %4944 = vmatmul.mubr.bf16.gmra.mrb[8].mxu1 %v3109_v59  ;;  %5581 = vmatprep.mubr.bf16.mxu0 %v8592_v61  ;;  %v7424_v59 = vld [vmem:[%s10607_s0 + $0x2b0] sm:$0xff]  }
 0x122   :  { %3457 = vxpose.xlu1.c.b16.cont [7/8] %v2775_v11, 128  ;;  %4953 = vmatprep.mubr.bf16.mxu1 %v8597_v0  ;;  %v7400_v0 = vld [vmem:[%s10608_s1 + $0x544] ss:$8 sps:$4 sm:$0xff]   ;;  %1392 = vst.msk [vmem:[#allocation2 + $0x560] sm:$0xff] %vm1305_vm0, %v7424_v59  ;;  %v7464_v59 = vld [vmem:[%s10607_s0 + $0x6f0] sm:$0xff]  }
 0x123   :  { %3201 = vxpose.xlu0.c.b16.cont [7/8] %v2647_v15, 128  ;;  %v8763_v19 = vpop.trf.xlu1  ;;  %5683 = vmatpush1.bf16.msra.mxu0 %v7388_v55  ;;  %v2757_v55 = vld [vmem:[#allocation2 + $0x550] sm:$0xff]  ;;  %v7434_v11 = vld [vmem:[%s10607_s0 + $0x6c0] sm:$0xff]   ;;  %v2772_v63 = vld [vmem:[#allocation2 + $0x5c8] sm:$0xff]  ;;  %2553 = vst.msk [vmem:[#allocation2 + $0x5e8] sm:$0xff] %vm1305_vm0, %v7464_v59 }
 0x124   :  { %v8766_v61 = vpop.trf.xlu0  ;;  %5684 = vmatprep.subr.bf16.mxu0 %v7400_v0  ;;  %5057 = vmatpush1.bf16.msra.mxu1 %v7401_v25  ;;  %v2629_v5 = vld [vmem:[#allocation2 + $0x150] sm:$0xff]  ;;  %v7435_v15 = vld [vmem:[%s10607_s0 + $0x4c0] sm:$0xff]   ;;  %2547 = vst.msk [vmem:[#allocation2 + $0x588] sm:$0xff] %vm1305_vm0, %v7434_v11 }
 0x125   :  { %5058 = vmatprep.subr.bf16.mxu1 %v7413_v42  ;;  %2483 = vst.msk [vmem:[#allocation2 + $0x188] sm:$0xff] %vm1305_vm0, %v7435_v15  ;;  %v7441_v25 = vld [vmem:[%s10608_s1 + $0x180] ss:$8 sps:$4 sm:$0xff]   ;;  %v7453_v42 = vld [vmem:[%s10608_s1 + $0x194] ss:$8 sps:$4 sm:$0xff]  }
 0x126   :  { %3458 = vxpose.xlu1.c.b16.end [8/8] %v2777_v20, 128  ;;  %v7437_v20 = vld [vmem:[%s10607_s0 + $0x4c8] sm:$0xff]   ;;  %v7471_v11 = vld [vmem:[%s10608_s1 + $0x1b0] ss:$8 sps:$4 sm:$0xff]   ;;  %v7474_v15 = vld [vmem:[%s10607_s0 + $0x680] sm:$0xff]  }
 0x127   :  { %3202 = vxpose.xlu0.c.b16.end [8/8] %v2649_v22, 128  ;;  %v8784_v29 = vpop.trf.xlu1  ;;  %5685 = vmatpush1.bf16.msra.mxu0 %v7398_v24  ;;  %2484 = vst.msk [vmem:[#allocation2 + $0x198] sm:$0xff] %vm1305_vm0, %v7437_v20  ;;  %v7438_v24 = vld [vmem:[%s10608_s1 + $0x580] ss:$8 sps:$4 sm:$0xff]   ;;  %2539 = vst.msk [vmem:[#allocation2 + $0x508] sm:$0xff] %vm1305_vm0, %v7474_v15  ;;  %v7488_v48 = vld [vmem:[%s10608_s1 + $0x5d0] ss:$8 sps:$4 sm:$0xff]  }
 0x128   :  { %v8789_v33 = vpop.trf.xlu0  ;;  %5582 = vmatmul.mubr.bf16.gmra.mrb[12].mxu0 %v3366_v1  ;;  %5059 = vmatpush1.bf16.msra.mxu1 %v7411_v41  ;;  %v7451_v41 = vld [vmem:[%s10608_s1 + $0x190] ss:$8 sps:$4 sm:$0xff]   ;;  %v7475_v20 = vld [vmem:[%s10607_s0 + $0x480] sm:$0xff]  }
 0x129   :  { %4954 = vmatmul.mubr.bf16.gmra.mrb[12].mxu1 %v3110_v53  ;;  %5589 = vmatprep.mubr.bf16.mxu0 %v8609_v6  ;;  %v7427_v53 = vld [vmem:[%s10607_s0 + $0xb8] sm:$0xff]   ;;  %2475 = vst.msk [vmem:[#allocation2 + $0x108] sm:$0xff] %vm1305_vm0, %v7475_v20  ;;  %v7500_v59 = vld [vmem:[%s10608_s1 + $0x5e4] ss:$8 sps:$4 sm:$0xff]  }
 0x12a   :  { %3419 = vxpose.xlu1.c.b16.start [1/8] %v2747_v31, 128  ;;  %4961 = vmatprep.mubr.bf16.mxu1 %v8618_v9  ;;  %v7410_v9 = vld [vmem:[%s10608_s1 + $0x554] ss:$8 sps:$4 sm:$0xff]   ;;  %1329 = vst.msk [vmem:[#allocation2 + $0x170] sm:$0xff] %vm1305_vm0, %v7427_v53  ;;  %v2644_v53 = vld [vmem:[#allocation2 + $0x1c8] sm:$0xff]  ;;  %v7511_v15 = vld [vmem:[%s10608_s1 + $0x1f0] ss:$8 sps:$4 sm:$0xff]  }
 0x12b   :  { %3163 = vxpose.xlu0.c.b16.start [1/8] %v2619_v34, 128  ;;  %v8801_v37 = vpop.trf.xlu1  ;;  %5686 = vmatprep.subr.bf16.mxu0 %v7410_v9  ;;  %v2764_v31 = vld [vmem:[#allocation2 + $0x588] sm:$0xff]  ;;  %v7450_v9 = vld [vmem:[%s10608_s1 + $0x594] ss:$8 sps:$4 sm:$0xff]  }
 0x12c   :  { %v8804_v6 = vpop.trf.xlu0  ;;  %5687 = vmatpush1.bf16.msra.mxu0 %v7408_v40  ;;  %5060 = vmatprep.subr.bf16.mxu1 %v7423_v58  ;;  %v2636_v34 = vld [vmem:[#allocation2 + $0x188] sm:$0xff]  ;;  %v7448_v40 = vld [vmem:[%s10608_s1 + $0x590] ss:$8 sps:$4 sm:$0xff]  }
 0x12d   :  { %5061 = vmatpush1.bf16.msra.mxu1 %v7421_v57  ;;  %v7461_v57 = vld [vmem:[%s10608_s1 + $0x1a0] ss:$8 sps:$4 sm:$0xff]   ;;  %v7463_v58 = vld [vmem:[%s10608_s1 + $0x1a4] ss:$8 sps:$4 sm:$0xff]  }
 0x12e   :  { %3420 = vxpose.xlu1.c.b16.cont [2/8] %v2749_v38, 128 }
 0x12f   :  { %3164 = vxpose.xlu0.c.b16.cont [2/8] %v2621_v39, 128  ;;  %v8822_v44 = vpop.trf.xlu1  ;;  %v2638_v39 = vld [vmem:[#allocation2 + $0x198] sm:$0xff] }
 0x130   :  { %v8827_v49 = vpop.trf.xlu0  ;;  %5590 = vmatmul.mubr.bf16.gmra.mrb[16].mxu0 %v8746_v10  ;;  %v7433_v10 = vld [vmem:[%s10608_s1 + $0x174] ss:$8 sps:$4 sm:$0xff]  }
 0x131   :  { %4962 = vmatmul.mubr.bf16.gmra.mrb[16].mxu1 %v8751_v13  ;;  %5595 = vmatprep.mubr.bf16.mxu0 %v8629_v14  ;;  %v2759_v13 = vld [vmem:[#allocation2 + $0x560] sm:$0xff]  ;;  %v2633_v0 = vld [vmem:[#allocation2 + $0x170] sm:$0xff] }
 0x132   :  { %3421 = vxpose.xlu1.c.b16.cont [3/8] %v2751_v46, 128  ;;  %4967 = vmatprep.mubr.bf16.mxu1 %v8632_v16  ;;  %v7420_v16 = vld [vmem:[%s10608_s1 + $0x564] ss:$8 sps:$4 sm:$0xff]  }
 0x133   :  { %3165 = vxpose.xlu0.c.b16.cont [3/8] %v2623_v50, 128  ;;  %v8841_v52 = vpop.trf.xlu1  ;;  %5688 = vmatprep.subr.bf16.mxu0 %v7420_v16  ;;  %v2768_v46 = vld [vmem:[#allocation2 + $0x5a8] sm:$0xff]  ;;  %v2642_v16 = vld [vmem:[#allocation2 + $0x1b8] sm:$0xff] }
 0x134   :  { %v8844_v14 = vpop.trf.xlu0  ;;  %5689 = vmatpush1.bf16.msra.mxu0 %v7418_v56  ;;  %5062 = vmatprep.subr.bf16.mxu1 %v7433_v10  ;;  %v2640_v50 = vld [vmem:[#allocation2 + $0x1a8] sm:$0xff]  ;;  %v7470_v10 = vld [vmem:[%s10608_s1 + $0x5b4] ss:$8 sps:$4 sm:$0xff]  }
 0x135   :  { %5063 = vmatpush1.bf16.msra.mxu1 %v7431_v8  ;;  %v7460_v56 = vld [vmem:[%s10608_s1 + $0x5a4] ss:$8 sps:$4 sm:$0xff]   ;;  %v2646_v8 = vld [vmem:[#allocation2 + $0x1d8] sm:$0xff] }
 0x136   :  { %3422 = vxpose.xlu1.c.b16.cont [4/8] %v2753_v47, 128  ;;  %5064 = vmatprep.subr.bf16.mxu1 %v7443_v26 }
 0x137   :  { %3166 = vxpose.xlu0.c.b16.cont [4/8] %v2625_v54, 128  ;;  %v8862_v60 = vpop.trf.xlu1  ;;  %v2770_v54 = vld [vmem:[#allocation2 + $0x5b8] sm:$0xff] }
 0x138   :  { %v8867_v1 = vpop.trf.xlu0  ;;  %5596 = vmatmul.mubr.bf16.gmra.mrb[20].mxu0 %v8763_v19  ;;  %v7436_v19 = vld [vmem:[%s10607_s0 + $0x6c8] sm:$0xff]  }
 0x139   :  { %4968 = vmatmul.mubr.bf16.gmra.mrb[20].mxu1 %v8766_v61  ;;  %5601 = vmatprep.mubr.bf16.mxu0 %v8641_v21  ;;  %v2761_v61 = vld [vmem:[#allocation2 + $0x570] sm:$0xff]  ;;  %2548 = vst.msk [vmem:[#allocation2 + $0x598] sm:$0xff] %vm1305_vm0, %v7436_v19  ;;  %v2776_v19 = vld [vmem:[#allocation2 + $0x5e8] sm:$0xff] }
 0x13a   :  { %3423 = vxpose.xlu1.c.b16.cont [5/8] %v2755_v62, 128  ;;  %4973 = vmatprep.mubr.bf16.mxu1 %v8646_v23  ;;  %v7430_v23 = vld [vmem:[%s10608_s1 + $0x574] ss:$8 sps:$4 sm:$0xff]  }
 0x13b   :  { %3167 = vxpose.xlu0.c.b16.cont [5/8] %v2627_v2, 128  ;;  %v8881_v4 = vpop.trf.xlu1  ;;  %5690 = vmatprep.subr.bf16.mxu0 %v7430_v23  ;;  %v7465_v2 = vld [vmem:[%s10607_s0 + $0x4f0] sm:$0xff]  }
 0x13c   :  { %v8884_v21 = vpop.trf.xlu0  ;;  %5691 = vmatpush1.bf16.msra.mxu0 %v7428_v7  ;;  %5065 = vmatpush1.bf16.msra.mxu1 %v7441_v25  ;;  %2489 = vst.msk [vmem:[#allocation2 + $0x1e8] sm:$0xff] %vm1305_vm0, %v7465_v2  ;;  %v2774_v7 = vld [vmem:[#allocation2 + $0x5d8] sm:$0xff]  ;;  %v7503_v2 = vld [vmem:[%s10608_s1 + $0x1e4] ss:$8 sps:$4 sm:$0xff]  }
 0x13d   :  { %5066 = vmatprep.subr.bf16.mxu1 %v7453_v42  ;;  %v7487_v42 = vld [vmem:[%s10607_s0 + $0x498] sm:$0xff]  }
 0x13e   :  { %3424 = vxpose.xlu1.c.b16.cont [6/8] %v2757_v55, 128  ;;  %v7466_v55 = vld [vmem:[%s10607_s0 + $0x6f8] sm:$0xff]   ;;  %2478 = vst.msk [vmem:[#allocation2 + $0x138] sm:$0xff] %vm1305_vm0, %v7487_v42 }
 0x13f   :  { %3168 = vxpose.xlu0.c.b16.cont [6/8] %v2629_v5, 128  ;;  %v8902_v12 = vpop.trf.xlu1  ;;  %v7467_v5 = vld [vmem:[%s10607_s0 + $0x4f8] sm:$0xff]   ;;  %2554 = vst.msk [vmem:[#allocation2 + $0x5f8] sm:$0xff] %vm1305_vm0, %v7466_v55  ;;  %v7505_v55 = vld [vmem:[%s10607_s0 + $0x4b0] sm:$0xff]  }
 0x140   :  { %v8907_v17 = vpop.trf.xlu0  ;;  %5602 = vmatmul.mubr.bf16.gmra.mrb[24].mxu0 %v8784_v29  ;;  %v2766_v38 = vld [vmem:[#allocation2 + $0x598] sm:$0xff]  ;;  %5067 = vmatpush1.bf16.msra.mxu1 %v7451_v41  ;;  %2490 = vst.msk [vmem:[#allocation2 + $0x1f8] sm:$0xff] %vm1305_vm0, %v7467_v5  ;;  %2481 = vst.msk [vmem:[#allocation2 + $0x168] sm:$0xff] %vm1305_vm0, %v7505_v55  ;;  %v7545_v55 = vld [vmem:[%s10607_s0 + $0x170] sm:$0xff]  }
 0x141   :  { %4974 = vmatmul.mubr.bf16.gmra.mrb[24].mxu1 %v8789_v33  ;;  %5607 = vmatprep.mubr.bf16.mxu0 %v8659_v28  ;;  %v7486_v41 = vld [vmem:[%s10607_s0 + $0x698] sm:$0xff]   ;;  %1352 = vst.msk [vmem:[#allocation2 + $0x2e0] sm:$0xff] %vm1305_vm0, %v7545_v55  ;;  %v7583_v55 = vld [vmem:[%s10608_s1 + $0x264] ss:$8 sps:$4 sm:$0xff]  }
 0x142   :  { %3425 = vxpose.xlu1.c.b16.cont [7/8] %v2759_v13, 128  ;;  %4979 = vmatprep.mubr.bf16.mxu1 %v8662_v30  ;;  %v7440_v30 = vld [vmem:[%s10608_s1 + $0x584] ss:$8 sps:$4 sm:$0xff]   ;;  %v7473_v13 = vld [vmem:[%s10608_s1 + $0x1b4] ss:$8 sps:$4 sm:$0xff]   ;;  %2542 = vst.msk [vmem:[#allocation2 + $0x538] sm:$0xff] %vm1305_vm0, %v7486_v41 }
 0x143   :  { %3169 = vxpose.xlu0.c.b16.cont [7/8] %v2631_v18, 128  ;;  %v8921_v22 = vpop.trf.xlu1  ;;  %5692 = vmatprep.subr.bf16.mxu0 %v7440_v30  ;;  %v7476_v30 = vld [vmem:[%s10607_s0 + $0x688] sm:$0xff]  }
 0x144   :  { %v8924_v28 = vpop.trf.xlu0  ;;  %5693 = vmatpush1.bf16.msra.mxu0 %v7438_v24  ;;  %5068 = vmatprep.subr.bf16.mxu1 %v7463_v58  ;;  %v7477_v24 = vld [vmem:[%s10607_s0 + $0x488] sm:$0xff]   ;;  %2540 = vst.msk [vmem:[#allocation2 + $0x518] sm:$0xff] %vm1305_vm0, %v7476_v30 }
 0x145   :  { %5694 = vmatprep.subr.bf16.mxu0 %v7450_v9  ;;  %5069 = vmatpush1.bf16.msra.mxu1 %v7461_v57  ;;  %2476 = vst.msk [vmem:[#allocation2 + $0x118] sm:$0xff] %vm1305_vm0, %v7477_v24  ;;  %v2626_v58 = vld [vmem:[#allocation2 + $0x138] sm:$0xff] }
 0x146   :  { %3426 = vxpose.xlu1.c.b16.end [8/8] %v2761_v61, 128  ;;  %5070 = vmatprep.subr.bf16.mxu1 %v7473_v13  ;;  %v2778_v26 = vld [vmem:[#allocation2 + $0x5f8] sm:$0xff] }
 0x147   :  { %3170 = vxpose.xlu0.c.b16.end [8/8] %v2633_v0, 128  ;;  %v8942_v29 = vpop.trf.xlu1  ;;  %v2648_v0 = vld [vmem:[#allocation2 + $0x1e8] sm:$0xff]  ;;  %v2650_v27 = vld [vmem:[#allocation2 + $0x1f8] sm:$0xff] }
 0x148   :  { %v8947_v33 = vpop.trf.xlu0  ;;  %5608 = vmatmul.mubr.bf16.gmra.mrb[28].mxu0 %v8801_v37  ;;  %v2632_v30 = vld [vmem:[#allocation2 + $0x168] sm:$0xff] }
 0x149   :  { %4980 = vmatmul.mubr.bf16.gmra.mrb[28].mxu1 %v8804_v6  ;;  %5613 = vmatprep.mubr.bf16.mxu0 %v8822_v44  ;;  %v2754_v57 = vld [vmem:[#allocation2 + $0x538] sm:$0xff] }
 0x14a   :  { %3467 = vxpose.xlu1.c.b16.start [1/8] %v2764_v31, 128  ;;  %4985 = vmatprep.mubr.bf16.mxu1 %v8827_v49  ;;  %v7478_v31 = vld [vmem:[%s10608_s1 + $0x5c0] ss:$8 sps:$4 sm:$0xff]  }
 0x14b   :  { %3211 = vxpose.xlu0.c.b16.start [1/8] %v2636_v34, 128  ;;  %v8961_v37 = vpop.trf.xlu1  ;;  %5695 = vmatpush1.bf16.msra.mxu0 %v7448_v40  ;;  %v7483_v34 = vld [vmem:[%s10608_s1 + $0x1c4] ss:$8 sps:$4 sm:$0xff]  }
 0x14c   :  { %v8964_v6 = vpop.trf.xlu0  ;;  %5696 = vmatprep.subr.bf16.mxu0 %v7460_v56  ;;  %5071 = vmatpush1.bf16.msra.mxu1 %v7471_v11  ;;  %v2620_v40 = vld [vmem:[#allocation2 + $0x108] sm:$0xff]  ;;  %v7510_v11 = vld [vmem:[%s10608_s1 + $0x5f4] ss:$8 sps:$4 sm:$0xff]  }
 0x14d   :  { %5072 = vmatprep.subr.bf16.mxu1 %v7483_v34  ;;  %v7496_v56 = vld [vmem:[%s10607_s0 + $0x6a8] sm:$0xff]  }
 0x14e   :  { %3468 = vxpose.xlu1.c.b16.cont [2/8] %v2766_v38, 128  ;;  %v2748_v38 = vld [vmem:[#allocation2 + $0x508] sm:$0xff]  ;;  %2544 = vst.msk [vmem:[#allocation2 + $0x558] sm:$0xff] %vm1305_vm0, %v7496_v56 }
 0x14f   :  { %3212 = vxpose.xlu0.c.b16.cont [2/8] %v2638_v39, 128  ;;  %v3379_v44 = vpop.trf.xlu1  ;;  %v7485_v39 = vld [vmem:[%s10607_s0 + $0x490] sm:$0xff]   ;;  %v7537_v56 = vld [vmem:[%s10607_s0 + $0x168] sm:$0xff]  }
 0x150   :  { %v3123_v49 = vpop.trf.xlu0  ;;  %5614 = vmatmul.mubr.bf16.gmra.mrb[32].mxu0 %v3379_v44  ;;  %5073 = vmatpush1.bf16.msra.mxu1 %v7481_v32  ;;  %2477 = vst.msk [vmem:[#allocation2 + $0x128] sm:$0xff] %vm1305_vm0, %v7485_v39  ;;  %v2750_v44 = vld [vmem:[#allocation2 + $0x518] sm:$0xff]  ;;  %v7524_v32 = vld [vmem:[%s10607_s0 + $0x350] sm:$0xff]   ;;  %1351 = vst.msk [vmem:[#allocation2 + $0x2d0] sm:$0xff] %vm1305_vm0, %v7537_v56 }
 0x151   :  { %4986 = vmatmul.mubr.bf16.gmra.mrb[32].mxu1 %v3123_v49  ;;  %5623 = vmatprep.mubr.bf16.mxu0 %v8841_v52  ;;  %v7491_v49 = vld [vmem:[%s10608_s1 + $0x1d0] ss:$8 sps:$4 sm:$0xff]   ;;  %1412 = vst.msk [vmem:[#allocation2 + $0x6a0] sm:$0xff] %vm1305_vm0, %v7524_v32  ;;  %v7574_v56 = vld [vmem:[%s10607_s0 + $0x320] sm:$0xff]  }
 0x152   :  { %3469 = vxpose.xlu1.c.b16.cont [3/8] %v2768_v46, 128  ;;  %4995 = vmatprep.mubr.bf16.mxu1 %v8844_v14  ;;  %v7458_v14 = vld [vmem:[%s10608_s1 + $0x5a0] ss:$8 sps:$4 sm:$0xff]   ;;  %v2622_v46 = vld [vmem:[#allocation2 + $0x118] sm:$0xff]  ;;  %1406 = vst.msk [vmem:[#allocation2 + $0x640] sm:$0xff] %vm1305_vm0, %v7574_v56 }
 0x153   :  { %3213 = vxpose.xlu0.c.b16.cont [3/8] %v2640_v50, 128  ;;  %v3380_v47 = vpop.trf.xlu1  ;;  %5697 = vmatpush1.bf16.msra.mxu0 %v7458_v14  ;;  %v7493_v50 = vld [vmem:[%s10608_s1 + $0x1d4] ss:$8 sps:$4 sm:$0xff]   ;;  %v7497_v14 = vld [vmem:[%s10607_s0 + $0x4a8] sm:$0xff]   ;;  %v7614_v56 = vld [vmem:[%s10607_s0 + $0x760] sm:$0xff]  }
 0x154   :  { %v3124_v52 = vpop.trf.xlu0  ;;  %5698 = vmatprep.subr.bf16.mxu0 %v7470_v10  ;;  %5074 = vmatprep.subr.bf16.mxu1 %v7493_v50  ;;  %2480 = vst.msk [vmem:[#allocation2 + $0x158] sm:$0xff] %vm1305_vm0, %v7497_v14  ;;  %v7535_v50 = vld [vmem:[%s10607_s0 + $0x160] sm:$0xff]   ;;  %2567 = vst.msk [vmem:[#allocation2 + $0x6c8] sm:$0xff] %vm1305_vm0, %v7614_v56 }
 0x155   :  { %5075 = vmatpush1.bf16.msra.mxu1 %v7491_v49  ;;  %v2758_v10 = vld [vmem:[#allocation2 + $0x558] sm:$0xff]  ;;  %1350 = vst.msk [vmem:[#allocation2 + $0x2c0] sm:$0xff] %vm1305_vm0, %v7535_v50 }
 0x156   :  { %3470 = vxpose.xlu1.c.b16.cont [4/8] %v2770_v54, 128  ;;  %5076 = vmatprep.subr.bf16.mxu1 %v7503_v2  ;;  %v7530_v49 = vld [vmem:[%s10608_s1 + $0x614] ss:$8 sps:$4 sm:$0xff]   ;;  %v7543_v2 = vld [vmem:[%s10608_s1 + $0x224] ss:$8 sps:$4 sm:$0xff]  }
 0x157   :  { %3214 = vxpose.xlu0.c.b16.cont [4/8] %v2642_v16, 128  ;;  %v3381_v62 = vpop.trf.xlu1  ;;  %v2624_v16 = vld [vmem:[#allocation2 + $0x128] sm:$0xff]  ;;  %v7567_v50 = vld [vmem:[%s10607_s0 + $0x118] sm:$0xff]  }
 0x158   :  { %v3125_v3 = vpop.trf.xlu0  ;;  %5624 = vmatmul.mubr.bf16.gmra.mrb[36].mxu0 %v3380_v47  ;;  %v7495_v47 = vld [vmem:[%s10607_s0 + $0x4a0] sm:$0xff]   ;;  %1341 = vst.msk [vmem:[#allocation2 + $0x230] sm:$0xff] %vm1305_vm0, %v7567_v50  ;;  %v7607_v50 = vld [vmem:[%s10607_s0 + $0x558] sm:$0xff]  }
 0x159   :  { %4996 = vmatmul.mubr.bf16.gmra.mrb[36].mxu1 %v3124_v52  ;;  %5633 = vmatprep.mubr.bf16.mxu0 %v8862_v60  ;;  %2479 = vst.msk [vmem:[#allocation2 + $0x148] sm:$0xff] %vm1305_vm0, %v7495_v47  ;;  %v7528_v47 = vld [vmem:[%s10608_s1 + $0x610] ss:$8 sps:$4 sm:$0xff]   ;;  %2502 = vst.msk [vmem:[#allocation2 + $0x2b8] sm:$0xff] %vm1305_vm0, %v7607_v50 }
 0x15a   :  { %3471 = vxpose.xlu1.c.b16.cont [5/8] %v2772_v63, 128  ;;  %5005 = vmatprep.mubr.bf16.mxu1 %v8867_v1  ;;  %v7468_v1 = vld [vmem:[%s10608_s1 + $0x5b0] ss:$8 sps:$4 sm:$0xff]   ;;  %v7501_v63 = vld [vmem:[%s10608_s1 + $0x1e0] ss:$8 sps:$4 sm:$0xff]  }
 0x15b   :  { %3215 = vxpose.xlu0.c.b16.cont [5/8] %v2644_v53, 128  ;;  %v3382_v23 = vpop.trf.xlu1  ;;  %5699 = vmatpush1.bf16.msra.mxu0 %v7468_v1  ;;  %v2756_v53 = vld [vmem:[#allocation2 + $0x548] sm:$0xff]  ;;  %v2630_v1 = vld [vmem:[#allocation2 + $0x158] sm:$0xff] }
 0x15c   :  { %v3126_v60 = vpop.trf.xlu0  ;;  %5077 = vmatpush1.bf16.msra.mxu1 %v7501_v63 }
 0x15e   :  { %3472 = vxpose.xlu1.c.b16.cont [6/8] %v2774_v7, 128 }
 0x15f   :  { %3216 = vxpose.xlu0.c.b16.cont [6/8] %v2646_v8, 128  ;;  %v9042_v18 = vpop.trf.xlu1  ;;  %v7506_v8 = vld [vmem:[%s10607_s0 + $0x6b8] sm:$0xff]  }
 0x160   :  { %v9047_v61 = vpop.trf.xlu0  ;;  %5634 = vmatmul.mubr.bf16.gmra.mrb[40].mxu0 %v3381_v62  ;;  %2546 = vst.msk [vmem:[#allocation2 + $0x578] sm:$0xff] %vm1305_vm0, %v7506_v8  ;;  %v2675_v8 = vld [vmem:[#allocation2 + $0x2c0] sm:$0xff] }
 0x161   :  { %5006 = vmatmul.mubr.bf16.gmra.mrb[40].mxu1 %v3125_v3  ;;  %5643 = vmatprep.mubr.bf16.mxu0 %v8881_v4  ;;  %v7504_v3 = vld [vmem:[%s10607_s0 + $0x6b0] sm:$0xff]  }
 0x162   :  { %3473 = vxpose.xlu1.c.b16.cont [7/8] %v2776_v19, 128  ;;  %5015 = vmatprep.mubr.bf16.mxu1 %v8884_v21  ;;  %v7480_v21 = vld [vmem:[%s10608_s1 + $0x5c4] ss:$8 sps:$4 sm:$0xff]   ;;  %2545 = vst.msk [vmem:[#allocation2 + $0x568] sm:$0xff] %vm1305_vm0, %v7504_v3  ;;  %v7544_v3 = vld [vmem:[%s10607_s0 + $0x370] sm:$0xff]  }
 0x163   :  { %3217 = vxpose.xlu0.c.b16.cont [7/8] %v2648_v0, 128  ;;  %v9059_v25 = vpop.trf.xlu1  ;;  %5700 = vmatprep.subr.bf16.mxu0 %v7480_v21  ;;  %v7514_v19 = vld [vmem:[%s10607_s0 + $0x340] sm:$0xff]   ;;  %1416 = vst.msk [vmem:[#allocation2 + $0x6e0] sm:$0xff] %vm1305_vm0, %v7544_v3  ;;  %v2657_v3 = vld [vmem:[#allocation2 + $0x230] sm:$0xff] }
 0x164   :  { %v9062_v4 = vpop.trf.xlu0  ;;  %5701 = vmatpush1.bf16.msra.mxu0 %v7478_v31  ;;  %1410 = vst.msk [vmem:[#allocation2 + $0x680] sm:$0xff] %vm1305_vm0, %v7514_v19  ;;  %v7520_v21 = vld [vmem:[%s10608_s1 + $0x604] ss:$8 sps:$4 sm:$0xff]   ;;  %v7551_v19 = vld [vmem:[%s10608_s1 + $0x230] ss:$8 sps:$4 sm:$0xff]  }
 0x166   :  { %3474 = vxpose.xlu1.c.b16.end [8/8] %v2778_v26, 128  ;;  %v7517_v26 = vld [vmem:[%s10607_s0 + $0x148] sm:$0xff]  }
 0x167   :  { %3218 = vxpose.xlu0.c.b16.end [8/8] %v2650_v27, 128  ;;  %v9080_v36 = vpop.trf.xlu1  ;;  %v2762_v27 = vld [vmem:[#allocation2 + $0x578] sm:$0xff]  ;;  %1347 = vst.msk [vmem:[#allocation2 + $0x290] sm:$0xff] %vm1305_vm0, %v7517_v26 }
 0x168   :  { %v9085_v9 = vpop.trf.xlu0  ;;  %5644 = vmatmul.mubr.bf16.gmra.mrb[44].mxu0 %v3382_v23  ;;  %v2628_v23 = vld [vmem:[#allocation2 + $0x148] sm:$0xff] }
 0x169   :  { %5016 = vmatmul.mubr.bf16.gmra.mrb[44].mxu1 %v3126_v60  ;;  %5651 = vmatprep.mubr.bf16.mxu0 %v8902_v12  ;;  %v7507_v60 = vld [vmem:[%s10607_s0 + $0x4b8] sm:$0xff]   ;;  %v2760_v20 = vld [vmem:[#allocation2 + $0x568] sm:$0xff] }
 0x16a   :  { %3435 = vxpose.xlu1.c.b16.start [1/8] %v2748_v38, 128  ;;  %5023 = vmatprep.mubr.bf16.mxu1 %v8907_v17  ;;  %v7490_v17 = vld [vmem:[%s10608_s1 + $0x5d4] ss:$8 sps:$4 sm:$0xff]   ;;  %2482 = vst.msk [vmem:[#allocation2 + $0x178] sm:$0xff] %vm1305_vm0, %v7507_v60 }
 0x16b   :  { %3179 = vxpose.xlu0.c.b16.start [1/8] %v2620_v40, 128  ;;  %v9097_v43 = vpop.trf.xlu1  ;;  %5702 = vmatprep.subr.bf16.mxu0 %v7490_v17  ;;  %v2795_v34 = vld [vmem:[#allocation2 + $0x680] sm:$0xff]  ;;  %v7527_v40 = vld [vmem:[%s10607_s0 + $0x158] sm:$0xff]  }
 0x16c   :  { %v9100_v12 = vpop.trf.xlu0  ;;  %5703 = vmatpush1.bf16.msra.mxu0 %v7488_v48  ;;  %1349 = vst.msk [vmem:[#allocation2 + $0x2b0] sm:$0xff] %vm1305_vm0, %v7527_v40  ;;  %v7534_v17 = vld [vmem:[%s10607_s0 + $0x360] sm:$0xff]  }
 0x16d   :  { %5704 = vmatprep.subr.bf16.mxu0 %v7500_v59  ;;  %v2799_v48 = vld [vmem:[#allocation2 + $0x6a0] sm:$0xff]  ;;  %1414 = vst.msk [vmem:[#allocation2 + $0x6c0] sm:$0xff] %vm1305_vm0, %v7534_v17 }
 0x16e   :  { %3436 = vxpose.xlu1.c.b16.cont [2/8] %v2750_v44, 128  ;;  %v7540_v59 = vld [vmem:[%s10608_s1 + $0x624] ss:$8 sps:$4 sm:$0xff]   ;;  %v7558_v40 = vld [vmem:[%s10608_s1 + $0x640] ss:$8 sps:$4 sm:$0xff]  }
 0x16f   :  { %3180 = vxpose.xlu0.c.b16.cont [2/8] %v2622_v46, 128  ;;  %v7518_v46 = vld [vmem:[%s10608_s1 + $0x600] ss:$8 sps:$4 sm:$0xff]  }
 0x170   :  { %v9121_v54 = vpop.trf.xlu1  ;;  %5652 = vmatmul.mubr.bf16.gmra.mrb[48].mxu0 %v9042_v18  ;;  %v7513_v18 = vld [vmem:[%s10608_s1 + $0x1f4] ss:$8 sps:$4 sm:$0xff]  }
 0x171   :  { %v9125_v52 = vpop.trf.xlu0  ;;  %5024 = vmatmul.mubr.bf16.gmra.mrb[48].mxu1 %v9047_v61  ;;  %5657 = vmatprep.mubr.bf16.mxu0 %v8921_v22  ;;  %v7515_v61 = vld [vmem:[%s10607_s0 + $0x140] sm:$0xff]  }
 0x172   :  { %3437 = vxpose.xlu1.c.b16.cont [3/8] %v2752_v45, 128  ;;  %5029 = vmatprep.mubr.bf16.mxu1 %v8924_v28  ;;  %v7498_v28 = vld [vmem:[%s10608_s1 + $0x5e0] ss:$8 sps:$4 sm:$0xff]   ;;  %1346 = vst.msk [vmem:[#allocation2 + $0x280] sm:$0xff] %vm1305_vm0, %v7515_v61 }
 0x173   :  { %3181 = vxpose.xlu0.c.b16.cont [3/8] %v2624_v16, 128  ;;  %5705 = vmatpush1.bf16.msra.mxu0 %v7498_v28  ;;  %v2671_v45 = vld [vmem:[#allocation2 + $0x2a0] sm:$0xff]  ;;  %v7536_v16 = vld [vmem:[%s10607_s0 + $0x368] sm:$0xff]   ;;  %v2673_v63 = vld [vmem:[#allocation2 + $0x2b0] sm:$0xff] }
 0x174   :  { %v9138_v22 = vpop.trf.xlu1  ;;  %5706 = vmatprep.subr.bf16.mxu0 %v7510_v11  ;;  %5078 = vmatprep.subr.bf16.mxu1 %v7513_v18  ;;  %1415 = vst.msk [vmem:[#allocation2 + $0x6d0] sm:$0xff] %vm1305_vm0, %v7536_v16  ;;  %v7554_v61 = vld [vmem:[%s10607_s0 + $0x300] sm:$0xff]   ;;  %v7573_v16 = vld [vmem:[%s10608_s1 + $0x254] ss:$8 sps:$4 sm:$0xff]  }
 0x175   :  { %v9144_v62 = vpop.trf.xlu0  ;;  %5079 = vmatpush1.bf16.msra.mxu1 %v7511_v15  ;;  %1402 = vst.msk [vmem:[#allocation2 + $0x600] sm:$0xff] %vm1305_vm0, %v7554_v61  ;;  %v7593_v61 = vld [vmem:[%s10608_s1 + $0x274] ss:$8 sps:$4 sm:$0xff]  }
 0x176   :  { %3438 = vxpose.xlu1.c.b16.cont [4/8] %v2754_v57, 128  ;;  %v7531_v57 = vld [vmem:[%s10608_s1 + $0x210] ss:$8 sps:$4 sm:$0xff]  }
 0x177   :  { %3182 = vxpose.xlu0.c.b16.cont [4/8] %v2626_v58, 128 }
 0x178   :  { %v9161_v5 = vpop.trf.xlu1  ;;  %5658 = vmatmul.mubr.bf16.gmra.mrb[52].mxu0 %v9059_v25  ;;  %v7516_v25 = vld [vmem:[%s10607_s0 + $0x348] sm:$0xff]  }
 0x179   :  { %v9165_v7 = vpop.trf.xlu0  ;;  %5030 = vmatmul.mubr.bf16.gmra.mrb[52].mxu1 %v9062_v4  ;;  %5663 = vmatprep.mubr.bf16.mxu0 %v8942_v29  ;;  %v2634_v4 = vld [vmem:[#allocation2 + $0x178] sm:$0xff]  ;;  %1411 = vst.msk [vmem:[#allocation2 + $0x690] sm:$0xff] %vm1305_vm0, %v7516_v25  ;;  %v2667_v38 = vld [vmem:[#allocation2 + $0x280] sm:$0xff] }
 0x17a   :  { %3439 = vxpose.xlu1.c.b16.cont [5/8] %v2756_v53, 128  ;;  %5035 = vmatprep.mubr.bf16.mxu1 %v8947_v33  ;;  %v7508_v33 = vld [vmem:[%s10608_s1 + $0x5f0] ss:$8 sps:$4 sm:$0xff]   ;;  %v7538_v53 = vld [vmem:[%s10608_s1 + $0x620] ss:$8 sps:$4 sm:$0xff]  }
 0x17b   :  { %3183 = vxpose.xlu0.c.b16.cont [5/8] %v2628_v23, 128  ;;  %5707 = vmatpush1.bf16.msra.mxu0 %v7508_v33  ;;  %v2805_v11 = vld [vmem:[#allocation2 + $0x6d0] sm:$0xff]  ;;  %v7555_v25 = vld [vmem:[%s10607_s0 + $0x100] sm:$0xff]  }
 0x17c   :  { %v9178_v29 = vpop.trf.xlu1  ;;  %5833 = vmatprep.subr.bf16.mxu0 %v7520_v21  ;;  %v2677_v33 = vld [vmem:[#allocation2 + $0x2d0] sm:$0xff]  ;;  %1338 = vst.msk [vmem:[#allocation2 + $0x200] sm:$0xff] %vm1305_vm0, %v7555_v25  ;;  %v7556_v21 = vld [vmem:[%s10607_s0 + $0x308] sm:$0xff]   ;;  %v7594_v25 = vld [vmem:[%s10607_s0 + $0x740] sm:$0xff]  }
 0x17d   :  { %v9184_v13 = vpop.trf.xlu0  ;;  %1403 = vst.msk [vmem:[#allocation2 + $0x610] sm:$0xff] %vm1305_vm0, %v7556_v21  ;;  %2563 = vst.msk [vmem:[#allocation2 + $0x688] sm:$0xff] %vm1305_vm0, %v7594_v25  ;;  %v7631_v25 = vld [vmem:[%s10608_s1 + $0x2b0] ss:$8 sps:$4 sm:$0xff]  }
 0x17e   :  { %3440 = vxpose.xlu1.c.b16.cont [6/8] %v2758_v10, 128  ;;  %v7546_v10 = vld [vmem:[%s10607_s0 + $0x378] sm:$0xff]  }
 0x17f   :  { %3184 = vxpose.xlu0.c.b16.cont [6/8] %v2630_v1, 128  ;;  %v7547_v1 = vld [vmem:[%s10607_s0 + $0x178] sm:$0xff]   ;;  %1417 = vst.msk [vmem:[#allocation2 + $0x6f0] sm:$0xff] %vm1305_vm0, %v7546_v10  ;;  %v7585_v10 = vld [vmem:[%s10607_s0 + $0x130] sm:$0xff]  }
 0x180   :  { %v9201_v0 = vpop.trf.xlu1  ;;  %5664 = vmatmul.mubr.bf16.gmra.mrb[56].mxu0 %v9080_v36  ;;  %v2797_v41 = vld [vmem:[#allocation2 + $0x690] sm:$0xff]  ;;  %1353 = vst.msk [vmem:[#allocation2 + $0x2f0] sm:$0xff] %vm1305_vm0, %v7547_v1  ;;  %1344 = vst.msk [vmem:[#allocation2 + $0x260] sm:$0xff] %vm1305_vm0, %v7585_v10 }
 0x181   :  { %v9205_v24 = vpop.trf.xlu0  ;;  %5036 = vmatmul.mubr.bf16.gmra.mrb[56].mxu1 %v9085_v9  ;;  %5669 = vmatprep.mubr.bf16.mxu0 %v8961_v37  ;;  %v7526_v9 = vld [vmem:[%s10607_s0 + $0x358] sm:$0xff]   ;;  %v7625_v10 = vld [vmem:[%s10607_s0 + $0x570] sm:$0xff]  }
 0x182   :  { %3441 = vxpose.xlu1.c.b16.cont [7/8] %v2760_v20, 128  ;;  %5041 = vmatprep.mubr.bf16.mxu1 %v8964_v6  ;;  %v7523_v6 = vld [vmem:[%s10608_s1 + $0x204] ss:$8 sps:$4 sm:$0xff]   ;;  %1413 = vst.msk [vmem:[#allocation2 + $0x6b0] sm:$0xff] %vm1305_vm0, %v7526_v9  ;;  %v7548_v20 = vld [vmem:[%s10608_s1 + $0x630] ss:$8 sps:$4 sm:$0xff]   ;;  %2505 = vst.msk [vmem:[#allocation2 + $0x2e8] sm:$0xff] %vm1305_vm0, %v7625_v10 }
 0x183   :  { %3185 = vxpose.xlu0.c.b16.cont [7/8] %v2632_v30, 128  ;;  %5205 = vmatprep.subr.bf16.mxu1 %v7523_v6  ;;  %v2807_v30 = vld [vmem:[#allocation2 + $0x6e0] sm:$0xff]  ;;  %v7557_v6 = vld [vmem:[%s10607_s0 + $0x108] sm:$0xff]  }
 0x184   :  { %v9218_v37 = vpop.trf.xlu1  ;;  %1339 = vst.msk [vmem:[#allocation2 + $0x210] sm:$0xff] %vm1305_vm0, %v7557_v6  ;;  %v7563_v9 = vld [vmem:[%s10608_s1 + $0x244] ss:$8 sps:$4 sm:$0xff]  }
 0x185   :  { %v9224_v31 = vpop.trf.xlu0  ;;  %v2651_v17 = vld [vmem:[#allocation2 + $0x200] sm:$0xff] }
 0x186   :  { %3442 = vxpose.xlu1.c.b16.end [8/8] %v2762_v27, 128  ;;  %v2679_v27 = vld [vmem:[#allocation2 + $0x2e0] sm:$0xff]  ;;  %v2809_v32 = vld [vmem:[#allocation2 + $0x6f0] sm:$0xff] }
 0x187   :  { %3186 = vxpose.xlu0.c.b16.end [8/8] %v2634_v4, 128  ;;  %v2663_v21 = vld [vmem:[#allocation2 + $0x260] sm:$0xff] }
 0x188   :  { %v9235_v36 = vpop.trf.xlu1  ;;  %5670 = vmatmul.mubr.bf16.gmra.mrb[60].mxu0 %v9097_v43  ;;  %v2669_v43 = vld [vmem:[#allocation2 + $0x290] sm:$0xff] }
 0x189   :  { %v9239_v39 = vpop.trf.xlu0  ;;  %5042 = vmatmul.mubr.bf16.gmra.mrb[60].mxu1 %v9100_v12  ;;  %5708 = vmatprep.mubr.bf16.mxu0 %v9121_v54  ;;  %v7521_v12 = vld [vmem:[%s10608_s1 + $0x200] ss:$8 sps:$4 sm:$0xff]   ;;  %v2801_v14 = vld [vmem:[#allocation2 + $0x6b0] sm:$0xff] }
 0x18a   :  { %3515 = vxpose.xlu1.c.b16.start [1/8] %v2795_v34, 128  ;;  %5080 = vmatprep.mubr.bf16.mxu1 %v9125_v52  ;;  %v7533_v52 = vld [vmem:[%s10608_s1 + $0x214] ss:$8 sps:$4 sm:$0xff]  }
 0x18b   :  { %3259 = vxpose.xlu0.c.b16.start [1/8] %v2667_v38, 128  ;;  %v2681_v34 = vld [vmem:[#allocation2 + $0x2f0] sm:$0xff] }
 0x18c   :  { %v9252_v42 = vpop.trf.xlu1 }
 0x18d   :  { %v9255_v44 = vpop.trf.xlu0 }
 0x18e   :  { %3516 = vxpose.xlu1.c.b16.cont [2/8] %v2797_v41, 128  ;;  %v7564_v41 = vld [vmem:[%s10607_s0 + $0x310] sm:$0xff]  }
 0x18f   :  { %3260 = vxpose.xlu0.c.b16.cont [2/8] %v2669_v43, 128  ;;  %v2779_v43 = vld [vmem:[#allocation2 + $0x600] sm:$0xff]  ;;  %1404 = vst.msk [vmem:[#allocation2 + $0x620] sm:$0xff] %vm1305_vm0, %v7564_v41  ;;  %v7604_v41 = vld [vmem:[%s10607_s0 + $0x750] sm:$0xff]  }
 0x190   :  { %v3427_v51 = vpop.trf.xlu1  ;;  %2565 = vst.msk [vmem:[#allocation2 + $0x6a8] sm:$0xff] %vm1305_vm0, %v7604_v41 }
 0x191   :  { %v3171_v54 = vpop.trf.xlu0  ;;  %5709 = vmatmul.mubr.bf16.vlgmr.msra.gmra.mrb[0].mxu0 %v3427_v51  ;;  %v2781_v51 = vld [vmem:[#allocation2 + $0x610] sm:$0xff] }
 0x192   :  { %5081 = vmatmul.mubr.bf16.vlgmr.msra.gmra.mrb[0].mxu1 %v3171_v54  ;;  %5834 = vmatpush1.bf16.msra.mxu0 %v7518_v46  ;;  %v7565_v46 = vld [vmem:[%s10607_s0 + $0x110] sm:$0xff]  }
 0x193   :  { %5206 = vmatpush1.bf16.msra.mxu1 %v7521_v12  ;;  %3517 = vxpose.xlu1.c.b16.cont [3/8] %v2799_v48, 128  ;;  %1340 = vst.msk [vmem:[#allocation2 + $0x220] sm:$0xff] %vm1305_vm0, %v7565_v46  ;;  %v7605_v46 = vld [vmem:[%s10607_s0 + $0x550] sm:$0xff]  }
 0x194   :  { %5718 = vmatprep.mubr.bf16.mxu0 %v9138_v22  ;;  %3261 = vxpose.xlu0.c.b16.cont [3/8] %v2671_v45, 128  ;;  %v3428_v58 = vpop.trf.xlu1  ;;  %v7541_v22 = vld [vmem:[%s10608_s1 + $0x220] ss:$8 sps:$4 sm:$0xff]   ;;  %v2653_v45 = vld [vmem:[#allocation2 + $0x210] sm:$0xff]  ;;  %2501 = vst.msk [vmem:[#allocation2 + $0x2a8] sm:$0xff] %vm1305_vm0, %v7605_v46  ;;  %v7643_v46 = vld [vmem:[%s10608_s1 + $0x2c4] ss:$8 sps:$4 sm:$0xff]  }
 0x195   :  { %5090 = vmatprep.mubr.bf16.mxu1 %v9144_v62  ;;  %v3172_v28 = vpop.trf.xlu0  ;;  %5835 = vmatprep.subr.bf16.mxu0 %v7530_v49  ;;  %v2803_v62 = vld [vmem:[#allocation2 + $0x6c0] sm:$0xff]  ;;  %v7566_v49 = vld [vmem:[%s10607_s0 + $0x318] sm:$0xff]  }
 0x196   :  { %5207 = vmatprep.subr.bf16.mxu1 %v7533_v52  ;;  %5836 = vmatpush1.bf16.msra.mxu0 %v7528_v47  ;;  %1405 = vst.msk [vmem:[#allocation2 + $0x630] sm:$0xff] %vm1305_vm0, %v7566_v49  ;;  %v7568_v52 = vld [vmem:[%s10608_s1 + $0x650] ss:$8 sps:$4 sm:$0xff]  }
 0x197   :  { %3518 = vxpose.xlu1.c.b16.cont [4/8] %v2801_v14, 128  ;;  %5208 = vmatpush1.bf16.msra.mxu1 %v7531_v57  ;;  %v2783_v14 = vld [vmem:[#allocation2 + $0x620] sm:$0xff]  ;;  %v7606_v49 = vld [vmem:[%s10607_s0 + $0x758] sm:$0xff]  }
 0x198   :  { %3262 = vxpose.xlu0.c.b16.cont [4/8] %v2673_v63, 128  ;;  %v3429_v23 = vpop.trf.xlu1  ;;  %5837 = vmatprep.subr.bf16.mxu0 %v7540_v59  ;;  %v7575_v57 = vld [vmem:[%s10607_s0 + $0x120] sm:$0xff]   ;;  %v7576_v63 = vld [vmem:[%s10607_s0 + $0x328] sm:$0xff]   ;;  %2566 = vst.msk [vmem:[#allocation2 + $0x6b8] sm:$0xff] %vm1305_vm0, %v7606_v49  ;;  %v7644_v49 = vld [vmem:[%s10607_s0 + $0x710] sm:$0xff]  }
 0x199   :  { %v3173_v60 = vpop.trf.xlu0  ;;  %5719 = vmatmul.mubr.bf16.gmra.mrb[4].mxu0 %v3428_v58  ;;  %5209 = vmatprep.subr.bf16.mxu1 %v7543_v2  ;;  %1342 = vst.msk [vmem:[#allocation2 + $0x240] sm:$0xff] %vm1305_vm0, %v7575_v57  ;;  %v7577_v2 = vld [vmem:[%s10607_s0 + $0x128] sm:$0xff]   ;;  %1407 = vst.msk [vmem:[#allocation2 + $0x650] sm:$0xff] %vm1305_vm0, %v7576_v63  ;;  %v7615_v57 = vld [vmem:[%s10607_s0 + $0x560] sm:$0xff]  }
 0x19a   :  { %5091 = vmatmul.mubr.bf16.gmra.mrb[4].mxu1 %v3172_v28  ;;  %5728 = vmatprep.mubr.bf16.mxu0 %v9161_v5  ;;  %v7550_v5 = vld [vmem:[%s10608_s1 + $0x634] ss:$8 sps:$4 sm:$0xff]   ;;  %v2655_v59 = vld [vmem:[#allocation2 + $0x220] sm:$0xff]  ;;  %1343 = vst.msk [vmem:[#allocation2 + $0x250] sm:$0xff] %vm1305_vm0, %v7577_v2  ;;  %2503 = vst.msk [vmem:[#allocation2 + $0x2c8] sm:$0xff] %vm1305_vm0, %v7615_v57 }
 0x19b   :  { %3519 = vxpose.xlu1.c.b16.cont [5/8] %v2803_v62, 128  ;;  %5100 = vmatprep.mubr.bf16.mxu1 %v9165_v7  ;;  %v7553_v7 = vld [vmem:[%s10608_s1 + $0x234] ss:$8 sps:$4 sm:$0xff]   ;;  %v7616_v63 = vld [vmem:[%s10607_s0 + $0x768] sm:$0xff]   ;;  %2557 = vst.msk [vmem:[#allocation2 + $0x628] sm:$0xff] %vm1305_vm0, %v7644_v49 }
 0x19c   :  { %3263 = vxpose.xlu0.c.b16.cont [5/8] %v2675_v8, 128  ;;  %v3430_v15 = vpop.trf.xlu1  ;;  %5210 = vmatpush1.bf16.msra.mxu1 %v7541_v22  ;;  %v7584_v8 = vld [vmem:[%s10607_s0 + $0x330] sm:$0xff]   ;;  %v7617_v2 = vld [vmem:[%s10607_s0 + $0x568] sm:$0xff]   ;;  %2568 = vst.msk [vmem:[#allocation2 + $0x6d8] sm:$0xff] %vm1305_vm0, %v7616_v63  ;;  %v7654_v63 = vld [vmem:[%s10607_s0 + $0x720] sm:$0xff]  }
 0x19d   :  { %v3174_v18 = vpop.trf.xlu0  ;;  %5838 = vmatpush1.bf16.msra.mxu0 %v7538_v53  ;;  %5211 = vmatprep.subr.bf16.mxu1 %v7553_v7  ;;  %v2785_v22 = vld [vmem:[#allocation2 + $0x630] sm:$0xff]  ;;  %1408 = vst.msk [vmem:[#allocation2 + $0x660] sm:$0xff] %vm1305_vm0, %v7584_v8  ;;  %2504 = vst.msk [vmem:[#allocation2 + $0x2d8] sm:$0xff] %vm1305_vm0, %v7617_v2 }
 0x19e   :  { %5839 = vmatprep.subr.bf16.mxu0 %v7550_v5  ;;  %v7587_v5 = vld [vmem:[%s10607_s0 + $0x138] sm:$0xff]   ;;  %v7624_v8 = vld [vmem:[%s10607_s0 + $0x770] sm:$0xff]   ;;  %2559 = vst.msk [vmem:[#allocation2 + $0x648] sm:$0xff] %vm1305_vm0, %v7654_v63 }
 0x19f   :  { %3520 = vxpose.xlu1.c.b16.cont [6/8] %v2805_v11, 128  ;;  %1345 = vst.msk [vmem:[#allocation2 + $0x270] sm:$0xff] %vm1305_vm0, %v7587_v5  ;;  %2569 = vst.msk [vmem:[#allocation2 + $0x6e8] sm:$0xff] %vm1305_vm0, %v7624_v8  ;;  %v7660_v8 = vld [vmem:[%s10608_s1 + $0x6e4] ss:$8 sps:$4 sm:$0xff]  }
 0x1a0   :  { %3264 = vxpose.xlu0.c.b16.cont [6/8] %v2677_v33, 128  ;;  %v9341_v26 = vpop.trf.xlu1  ;;  %5212 = vmatpush1.bf16.msra.mxu1 %v7551_v19  ;;  %v2659_v11 = vld [vmem:[#allocation2 + $0x240] sm:$0xff] }
 0x1a1   :  { %v9344_v4 = vpop.trf.xlu0  ;;  %5729 = vmatmul.mubr.bf16.gmra.mrb[8].mxu0 %v3429_v23  ;;  %5213 = vmatprep.subr.bf16.mxu1 %v7563_v9  ;;  %v7578_v23 = vld [vmem:[%s10608_s1 + $0x660] ss:$8 sps:$4 sm:$0xff]   ;;  %v2661_v19 = vld [vmem:[#allocation2 + $0x250] sm:$0xff]  ;;  %v7603_v9 = vld [vmem:[%s10608_s1 + $0x284] ss:$8 sps:$4 sm:$0xff]  }
 0x1a2   :  { %5101 = vmatmul.mubr.bf16.gmra.mrb[8].mxu1 %v3173_v60  ;;  %5738 = vmatprep.mubr.bf16.mxu0 %v9178_v29  ;;  %v7560_v29 = vld [vmem:[%s10608_s1 + $0x644] ss:$8 sps:$4 sm:$0xff]  }
 0x1a3   :  { %3521 = vxpose.xlu1.c.b16.cont [7/8] %v2807_v30, 128  ;;  %5110 = vmatprep.mubr.bf16.mxu1 %v9184_v13  ;;  %v7561_v13 = vld [vmem:[%s10608_s1 + $0x240] ss:$8 sps:$4 sm:$0xff]   ;;  %v7588_v30 = vld [vmem:[%s10608_s1 + $0x670] ss:$8 sps:$4 sm:$0xff]  }
 0x1a4   :  { %3265 = vxpose.xlu0.c.b16.cont [7/8] %v2679_v27, 128  ;;  %v9356_v35 = vpop.trf.xlu1  ;;  %5840 = vmatpush1.bf16.msra.mxu0 %v7548_v20  ;;  %v2787_v60 = vld [vmem:[#allocation2 + $0x640] sm:$0xff]  ;;  %v2784_v2 = vld [vmem:[#allocation2 + $0x628] sm:$0xff] }
 0x1a5   :  { %v9362_v38 = vpop.trf.xlu0  ;;  %5841 = vmatprep.subr.bf16.mxu0 %v7560_v29  ;;  %5214 = vmatpush1.bf16.msra.mxu1 %v7561_v13  ;;  %v7595_v27 = vld [vmem:[%s10607_s0 + $0x540] sm:$0xff]  }
 0x1a6   :  { %5215 = vmatprep.subr.bf16.mxu1 %v7573_v16  ;;  %2499 = vst.msk [vmem:[#allocation2 + $0x288] sm:$0xff] %vm1305_vm0, %v7595_v27  ;;  %v2665_v29 = vld [vmem:[#allocation2 + $0x270] sm:$0xff]  ;;  %v7634_v27 = vld [vmem:[%s10607_s0 + $0x700] sm:$0xff]  }
 0x1a7   :  { %3522 = vxpose.xlu1.c.b16.end [8/8] %v2809_v32, 128  ;;  %v7596_v32 = vld [vmem:[%s10607_s0 + $0x748] sm:$0xff]   ;;  %v7613_v16 = vld [vmem:[%s10608_s1 + $0x294] ss:$8 sps:$4 sm:$0xff]   ;;  %2555 = vst.msk [vmem:[#allocation2 + $0x608] sm:$0xff] %vm1305_vm0, %v7634_v27 }
 0x1a8   :  { %3266 = vxpose.xlu0.c.b16.end [8/8] %v2681_v34, 128  ;;  %v9379_v12 = vpop.trf.xlu1  ;;  %5842 = vmatpush1.bf16.msra.mxu0 %v7558_v40  ;;  %v7597_v34 = vld [vmem:[%s10607_s0 + $0x548] sm:$0xff]   ;;  %2564 = vst.msk [vmem:[#allocation2 + $0x698] sm:$0xff] %vm1305_vm0, %v7596_v32  ;;  %v7635_v32 = vld [vmem:[%s10607_s0 + $0x500] sm:$0xff]  }
 0x1a9   :  { %v9382_v48 = vpop.trf.xlu0  ;;  %5739 = vmatmul.mubr.bf16.gmra.mrb[64].mxu0 %v3430_v15  ;;  %v7586_v15 = vld [vmem:[%s10607_s0 + $0x338] sm:$0xff]   ;;  %2500 = vst.msk [vmem:[#allocation2 + $0x298] sm:$0xff] %vm1305_vm0, %v7597_v34  ;;  %v7598_v40 = vld [vmem:[%s10608_s1 + $0x680] ss:$8 sps:$4 sm:$0xff]   ;;  %2491 = vst.msk [vmem:[#allocation2 + $0x208] sm:$0xff] %vm1305_vm0, %v7635_v32 }
 0x1aa   :  { %5111 = vmatmul.mubr.bf16.gmra.mrb[64].mxu1 %v3174_v18  ;;  %5746 = vmatprep.mubr.bf16.mxu0 %v9201_v0  ;;  %v7570_v0 = vld [vmem:[%s10608_s1 + $0x654] ss:$8 sps:$4 sm:$0xff]   ;;  %1409 = vst.msk [vmem:[#allocation2 + $0x670] sm:$0xff] %vm1305_vm0, %v7586_v15  ;;  %v2676_v15 = vld [vmem:[#allocation2 + $0x2c8] sm:$0xff]  ;;  %v7671_v32 = vld [vmem:[%s10608_s1 + $0x2f0] ss:$8 sps:$4 sm:$0xff]  }
 0x1ab   :  { %3483 = vxpose.xlu1.c.b16.start [1/8] %v2779_v43, 128  ;;  %5118 = vmatprep.mubr.bf16.mxu1 %v9205_v24  ;;  %v7571_v24 = vld [vmem:[%s10608_s1 + $0x250] ss:$8 sps:$4 sm:$0xff]   ;;  %v2796_v43 = vld [vmem:[#allocation2 + $0x688] sm:$0xff] }
 0x1ac   :  { %3227 = vxpose.xlu0.c.b16.start [1/8] %v2651_v17, 128  ;;  %v9394_v47 = vpop.trf.xlu1  ;;  %5843 = vmatprep.subr.bf16.mxu0 %v7570_v0  ;;  %v2789_v18 = vld [vmem:[#allocation2 + $0x650] sm:$0xff] }
 0x1ad   :  { %v9400_v54 = vpop.trf.xlu0  ;;  %5216 = vmatpush1.bf16.msra.mxu1 %v7571_v24  ;;  %5844 = vmatpush1.bf16.msra.mxu0 %v7568_v52  ;;  %v2668_v17 = vld [vmem:[#allocation2 + $0x288] sm:$0xff]  ;;  %v7610_v0 = vld [vmem:[%s10608_s1 + $0x694] ss:$8 sps:$4 sm:$0xff]   ;;  %v7611_v24 = vld [vmem:[%s10608_s1 + $0x290] ss:$8 sps:$4 sm:$0xff]  }
 0x1ae   :  { %5217 = vmatprep.subr.bf16.mxu1 %v7583_v55  ;;  %v7608_v52 = vld [vmem:[%s10608_s1 + $0x690] ss:$8 sps:$4 sm:$0xff]   ;;  %v7621_v55 = vld [vmem:[%s10608_s1 + $0x2a0] ss:$8 sps:$4 sm:$0xff]  }
 0x1af   :  { %3484 = vxpose.xlu1.c.b16.cont [2/8] %v2781_v51, 128  ;;  %v2798_v51 = vld [vmem:[#allocation2 + $0x698] sm:$0xff]  ;;  %v2780_v50 = vld [vmem:[#allocation2 + $0x608] sm:$0xff] }
 0x1b0   :  { %3228 = vxpose.xlu0.c.b16.cont [2/8] %v2653_v45, 128  ;;  %v9417_v58 = vpop.trf.xlu1  ;;  %v2670_v45 = vld [vmem:[#allocation2 + $0x298] sm:$0xff] }
 0x1b1   :  { %v9420_v28 = vpop.trf.xlu0  ;;  %5747 = vmatmul.mubr.bf16.gmra.mrb[68].mxu0 %v9341_v26  ;;  %v2791_v26 = vld [vmem:[#allocation2 + $0x660] sm:$0xff] }
 0x1b2   :  { %5119 = vmatmul.mubr.bf16.gmra.mrb[68].mxu1 %v9344_v4  ;;  %5752 = vmatprep.mubr.bf16.mxu0 %v9218_v37  ;;  %v7580_v37 = vld [vmem:[%s10608_s1 + $0x664] ss:$8 sps:$4 sm:$0xff]  }
 0x1b3   :  { %3485 = vxpose.xlu1.c.b16.cont [3/8] %v2783_v14, 128  ;;  %5124 = vmatprep.mubr.bf16.mxu1 %v9224_v31  ;;  %v7581_v31 = vld [vmem:[%s10608_s1 + $0x260] ss:$8 sps:$4 sm:$0xff]  }
 0x1b4   :  { %3229 = vxpose.xlu0.c.b16.cont [3/8] %v2655_v59, 128  ;;  %v9434_v62 = vpop.trf.xlu1  ;;  %5845 = vmatprep.subr.bf16.mxu0 %v7580_v37  ;;  %v2800_v14 = vld [vmem:[#allocation2 + $0x6a8] sm:$0xff] }
 0x1b5   :  { %v9440_v53 = vpop.trf.xlu0  ;;  %5218 = vmatpush1.bf16.msra.mxu1 %v7581_v31  ;;  %5846 = vmatpush1.bf16.msra.mxu0 %v7578_v23  ;;  %v2672_v59 = vld [vmem:[#allocation2 + $0x2a8] sm:$0xff] }
 0x1b6   :  { %5219 = vmatprep.subr.bf16.mxu1 %v7593_v61  ;;  %v7618_v23 = vld [vmem:[%s10608_s1 + $0x6a0] ss:$8 sps:$4 sm:$0xff]  }
 0x1b7   :  { %3486 = vxpose.xlu1.c.b16.cont [4/8] %v2785_v22, 128  ;;  %v2802_v22 = vld [vmem:[#allocation2 + $0x6b8] sm:$0xff] }
 0x1b8   :  { %3230 = vxpose.xlu0.c.b16.cont [4/8] %v2657_v3, 128  ;;  %v9457_v1 = vpop.trf.xlu1  ;;  %v2674_v3 = vld [vmem:[#allocation2 + $0x2b8] sm:$0xff] }
 0x1b9   :  { %v9460_v33 = vpop.trf.xlu0  ;;  %5753 = vmatmul.mubr.bf16.gmra.mrb[72].mxu0 %v9356_v35  ;;  %v2793_v35 = vld [vmem:[#allocation2 + $0x670] sm:$0xff] }
 0x1ba   :  { %5125 = vmatmul.mubr.bf16.gmra.mrb[72].mxu1 %v9362_v38  ;;  %5758 = vmatprep.mubr.bf16.mxu0 %v9235_v36  ;;  %v7590_v36 = vld [vmem:[%s10608_s1 + $0x674] ss:$8 sps:$4 sm:$0xff]  }
 0x1bb   :  { %3487 = vxpose.xlu1.c.b16.cont [5/8] %v2787_v60, 128  ;;  %5130 = vmatprep.mubr.bf16.mxu1 %v9239_v39  ;;  %v7591_v39 = vld [vmem:[%s10608_s1 + $0x270] ss:$8 sps:$4 sm:$0xff]   ;;  %v2804_v60 = vld [vmem:[#allocation2 + $0x6c8] sm:$0xff] }
 0x1bc   :  { %3231 = vxpose.xlu0.c.b16.cont [5/8] %v2659_v11, 128  ;;  %v9474_v7 = vpop.trf.xlu1  ;;  %5847 = vmatprep.subr.bf16.mxu0 %v7590_v36  ;;  %v2806_v36 = vld [vmem:[#allocation2 + $0x6d8] sm:$0xff] }
 0x1bd   :  { %v9480_v20 = vpop.trf.xlu0  ;;  %5220 = vmatpush1.bf16.msra.mxu1 %v7591_v39  ;;  %5848 = vmatpush1.bf16.msra.mxu0 %v7588_v30  ;;  %v2678_v39 = vld [vmem:[#allocation2 + $0x2d8] sm:$0xff] }
 0x1be   :  { %5221 = vmatprep.subr.bf16.mxu1 %v7603_v9 }
 0x1bf   :  { %3488 = vxpose.xlu1.c.b16.cont [6/8] %v2789_v18, 128  ;;  %v7626_v18 = vld [vmem:[%s10607_s0 + $0x778] sm:$0xff]  }
 0x1c0   :  { %3232 = vxpose.xlu0.c.b16.cont [6/8] %v2661_v19, 128  ;;  %v9497_v4 = vpop.trf.xlu1  ;;  %v7627_v19 = vld [vmem:[%s10607_s0 + $0x578] sm:$0xff]   ;;  %2570 = vst.msk [vmem:[#allocation2 + $0x6f8] sm:$0xff] %vm1305_vm0, %v7626_v18  ;;  %v7665_v18 = vld [vmem:[%s10607_s0 + $0x530] sm:$0xff]  }
 0x1c1   :  { %v9500_v6 = vpop.trf.xlu0  ;;  %5759 = vmatmul.mubr.bf16.gmra.mrb[76].mxu0 %v9379_v12  ;;  %2506 = vst.msk [vmem:[#allocation2 + $0x2f8] sm:$0xff] %vm1305_vm0, %v7627_v19  ;;  %2497 = vst.msk [vmem:[#allocation2 + $0x268] sm:$0xff] %vm1305_vm0, %v7665_v18 }
 0x1c2   :  { %5131 = vmatmul.mubr.bf16.gmra.mrb[76].mxu1 %v9382_v48  ;;  %5764 = vmatprep.mubr.bf16.mxu0 %v9252_v42  ;;  %v7600_v42 = vld [vmem:[%s10608_s1 + $0x684] ss:$8 sps:$4 sm:$0xff]  }
 0x1c3   :  { %3489 = vxpose.xlu1.c.b16.cont [7/8] %v2791_v26, 128  ;;  %5136 = vmatprep.mubr.bf16.mxu1 %v9255_v44  ;;  %v7601_v44 = vld [vmem:[%s10608_s1 + $0x280] ss:$8 sps:$4 sm:$0xff]   ;;  %v7628_v26 = vld [vmem:[%s10608_s1 + $0x6b0] ss:$8 sps:$4 sm:$0xff]  }
 0x1c4   :  { %3233 = vxpose.xlu0.c.b16.cont [7/8] %v2663_v21, 128  ;;  %v9514_v38 = vpop.trf.xlu1  ;;  %5849 = vmatprep.subr.bf16.mxu0 %v7600_v42  ;;  %v2808_v21 = vld [vmem:[#allocation2 + $0x6e8] sm:$0xff] }
 0x1c5   :  { %v9520_v13 = vpop.trf.xlu0  ;;  %5222 = vmatpush1.bf16.msra.mxu1 %v7601_v44  ;;  %5850 = vmatpush1.bf16.msra.mxu0 %v7598_v40  ;;  %v7636_v42 = vld [vmem:[%s10607_s0 + $0x708] sm:$0xff]  }
 0x1c6   :  { %5851 = vmatprep.subr.bf16.mxu0 %v7610_v0  ;;  %5223 = vmatprep.subr.bf16.mxu1 %v7613_v16  ;;  %v7637_v44 = vld [vmem:[%s10607_s0 + $0x508] sm:$0xff]   ;;  %2556 = vst.msk [vmem:[#allocation2 + $0x618] sm:$0xff] %vm1305_vm0, %v7636_v42  ;;  %v7646_v16 = vld [vmem:[%s10607_s0 + $0x718] sm:$0xff]  }
 0x1c7   :  { %3490 = vxpose.xlu1.c.b16.end [8/8] %v2793_v35, 128  ;;  %v2680_v35 = vld [vmem:[#allocation2 + $0x2e8] sm:$0xff]  ;;  %v2810_v9 = vld [vmem:[#allocation2 + $0x6f8] sm:$0xff]  ;;  %2492 = vst.msk [vmem:[#allocation2 + $0x218] sm:$0xff] %vm1305_vm0, %v7637_v44  ;;  %2558 = vst.msk [vmem:[#allocation2 + $0x638] sm:$0xff] %vm1305_vm0, %v7646_v16 }
 0x1c8   :  { %3234 = vxpose.xlu0.c.b16.end [8/8] %v2665_v29, 128  ;;  %v9537_v12 = vpop.trf.xlu1  ;;  %v2682_v40 = vld [vmem:[#allocation2 + $0x2f8] sm:$0xff]  ;;  %v2652_v0 = vld [vmem:[#allocation2 + $0x208] sm:$0xff] }
 0x1c9   :  { %v9540_v48 = vpop.trf.xlu0  ;;  %5765 = vmatmul.mubr.bf16.gmra.mrb[80].mxu0 %v9394_v47  ;;  %5224 = vmatpush1.bf16.msra.mxu1 %v7611_v24  ;;  %v7668_v44 = vld [vmem:[%s10608_s1 + $0x6f0] ss:$8 sps:$4 sm:$0xff]  }
 0x1ca   :  { %5137 = vmatmul.mubr.bf16.gmra.mrb[80].mxu1 %v9400_v54  ;;  %5770 = vmatprep.mubr.bf16.mxu0 %v9417_v58 }
 0x1cb   :  { %3531 = vxpose.xlu1.c.b16.start [1/8] %v2796_v43, 128  ;;  %5142 = vmatprep.mubr.bf16.mxu1 %v9420_v28 }
 0x1cc   :  { %3275 = vxpose.xlu0.c.b16.start [1/8] %v2668_v17, 128  ;;  %v9554_v47 = vpop.trf.xlu1  ;;  %5852 = vmatpush1.bf16.msra.mxu0 %v7608_v52  ;;  %v7638_v17 = vld [vmem:[%s10608_s1 + $0x6c0] ss:$8 sps:$4 sm:$0xff]   ;;  %v7647_v52 = vld [vmem:[%s10607_s0 + $0x518] sm:$0xff]  }
 0x1cd   :  { %v9560_v54 = vpop.trf.xlu0  ;;  %v2782_v56 = vld [vmem:[#allocation2 + $0x618] sm:$0xff]  ;;  %2494 = vst.msk [vmem:[#allocation2 + $0x238] sm:$0xff] %vm1305_vm0, %v7647_v52 }
 0x1cf   :  { %3532 = vxpose.xlu1.c.b16.cont [2/8] %v2798_v51, 128  ;;  %v7645_v51 = vld [vmem:[%s10607_s0 + $0x510] sm:$0xff]  }
 0x1d0   :  { %3276 = vxpose.xlu0.c.b16.cont [2/8] %v2670_v45, 128  ;;  %v3443_v58 = vpop.trf.xlu1  ;;  %2493 = vst.msk [vmem:[#allocation2 + $0x228] sm:$0xff] %vm1305_vm0, %v7645_v51 }
 0x1d1   :  { %v3187_v28 = vpop.trf.xlu0  ;;  %5771 = vmatmul.mubr.bf16.gmra.mrb[32].mxu0 %v3443_v58 }
 0x1d2   :  { %5143 = vmatmul.mubr.bf16.gmra.mrb[32].mxu1 %v3187_v28  ;;  %5780 = vmatprep.mubr.bf16.mxu0 %v9434_v62  ;;  %v7620_v62 = vld [vmem:[%s10608_s1 + $0x6a4] ss:$8 sps:$4 sm:$0xff]   ;;  %v7648_v28 = vld [vmem:[%s10608_s1 + $0x6d0] ss:$8 sps:$4 sm:$0xff]  }
 0x1d3   :  { %3533 = vxpose.xlu1.c.b16.cont [3/8] %v2800_v14, 128  ;;  %5152 = vmatprep.mubr.bf16.mxu1 %v9440_v53  ;;  %v7623_v53 = vld [vmem:[%s10608_s1 + $0x2a4] ss:$8 sps:$4 sm:$0xff]   ;;  %v2654_v14 = vld [vmem:[#allocation2 + $0x218] sm:$0xff] }
 0x1d4   :  { %3277 = vxpose.xlu0.c.b16.cont [3/8] %v2672_v59, 128  ;;  %v3444_v37 = vpop.trf.xlu1  ;;  %5853 = vmatprep.subr.bf16.mxu0 %v7620_v62  ;;  %v7653_v59 = vld [vmem:[%s10608_s1 + $0x2d4] ss:$8 sps:$4 sm:$0xff]   ;;  %v7656_v62 = vld [vmem:[%s10607_s0 + $0x728] sm:$0xff]  }
 0x1d5   :  { %v3188_v31 = vpop.trf.xlu0  ;;  %5225 = vmatprep.subr.bf16.mxu1 %v7623_v53  ;;  %5854 = vmatpush1.bf16.msra.mxu0 %v7618_v23  ;;  %v2786_v53 = vld [vmem:[#allocation2 + $0x638] sm:$0xff]  ;;  %2560 = vst.msk [vmem:[#allocation2 + $0x658] sm:$0xff] %vm1305_vm0, %v7656_v62 }
 0x1d6   :  { %5226 = vmatpush1.bf16.msra.mxu1 %v7621_v55  ;;  %v7657_v55 = vld [vmem:[%s10607_s0 + $0x528] sm:$0xff]   ;;  %v2658_v23 = vld [vmem:[#allocation2 + $0x238] sm:$0xff] }
 0x1d7   :  { %3534 = vxpose.xlu1.c.b16.cont [4/8] %v2802_v22, 128  ;;  %v7655_v22 = vld [vmem:[%s10607_s0 + $0x520] sm:$0xff]   ;;  %2496 = vst.msk [vmem:[#allocation2 + $0x258] sm:$0xff] %vm1305_vm0, %v7657_v55  ;;  %v7686_v55 = vld [vmem:[%s10607_s0 + $0x3d8] sm:$0xff]  }
 0x1d8   :  { %3278 = vxpose.xlu0.c.b16.cont [4/8] %v2674_v3, 128  ;;  %v3445_v11 = vpop.trf.xlu1  ;;  %v2656_v3 = vld [vmem:[#allocation2 + $0x228] sm:$0xff]  ;;  %2495 = vst.msk [vmem:[#allocation2 + $0x248] sm:$0xff] %vm1305_vm0, %v7655_v22  ;;  %1429 = vst.msk [vmem:[#allocation2 + $0x7b0] sm:$0xff] %vm1305_vm0, %v7686_v55 }
 0x1d9   :  { %v3189_v5 = vpop.trf.xlu0  ;;  %5781 = vmatmul.mubr.bf16.gmra.mrb[36].mxu0 %v3444_v37 }
 0x1da   :  { %5153 = vmatmul.mubr.bf16.gmra.mrb[36].mxu1 %v3188_v31  ;;  %5790 = vmatprep.mubr.bf16.mxu0 %v9457_v1  ;;  %v7630_v1 = vld [vmem:[%s10608_s1 + $0x6b4] ss:$8 sps:$4 sm:$0xff]  }
 0x1db   :  { %3535 = vxpose.xlu1.c.b16.cont [5/8] %v2804_v60, 128  ;;  %5162 = vmatprep.mubr.bf16.mxu1 %v9460_v33  ;;  %v7633_v33 = vld [vmem:[%s10608_s1 + $0x2b4] ss:$8 sps:$4 sm:$0xff]   ;;  %v7661_v60 = vld [vmem:[%s10608_s1 + $0x2e0] ss:$8 sps:$4 sm:$0xff]  }
 0x1dc   :  { %3279 = vxpose.xlu0.c.b16.cont [5/8] %v2676_v15, 128  ;;  %v3446_v61 = vpop.trf.xlu1  ;;  %5855 = vmatprep.subr.bf16.mxu0 %v7630_v1  ;;  %v7664_v15 = vld [vmem:[%s10607_s0 + $0x730] sm:$0xff]   ;;  %v7667_v1 = vld [vmem:[%s10607_s0 + $0x538] sm:$0xff]  }
 0x1dd   :  { %v3190_v30 = vpop.trf.xlu0  ;;  %5227 = vmatprep.subr.bf16.mxu1 %v7633_v33  ;;  %5856 = vmatpush1.bf16.msra.mxu0 %v7628_v26  ;;  %2561 = vst.msk [vmem:[#allocation2 + $0x668] sm:$0xff] %vm1305_vm0, %v7664_v15  ;;  %2498 = vst.msk [vmem:[#allocation2 + $0x278] sm:$0xff] %vm1305_vm0, %v7667_v1  ;;  %v7678_v15 = vld [vmem:[%s10608_s1 + $0x700] ss:$8 sps:$4 sm:$0xff]  }
 0x1de   :  { %5228 = vmatpush1.bf16.msra.mxu1 %v7631_v25  ;;  %v2790_v25 = vld [vmem:[#allocation2 + $0x658] sm:$0xff] }
 0x1df   :  { %3536 = vxpose.xlu1.c.b16.cont [6/8] %v2806_v36, 128  ;;  %5229 = vmatprep.subr.bf16.mxu1 %v7643_v46  ;;  %v2660_v19 = vld [vmem:[#allocation2 + $0x248] sm:$0xff]  ;;  %v2662_v33 = vld [vmem:[#allocation2 + $0x258] sm:$0xff] }
 0x1e0   :  { %3280 = vxpose.xlu0.c.b16.cont [6/8] %v2678_v39, 128  ;;  %v9637_v34 = vpop.trf.xlu1  ;;  %v7666_v39 = vld [vmem:[%s10607_s0 + $0x738] sm:$0xff]   ;;  %v2664_v46 = vld [vmem:[#allocation2 + $0x268] sm:$0xff] }
 0x1e1   :  { %v9640_v29 = vpop.trf.xlu0  ;;  %5791 = vmatmul.mubr.bf16.gmra.mrb[40].mxu0 %v3445_v11  ;;  %v7658_v11 = vld [vmem:[%s10608_s1 + $0x6e0] ss:$8 sps:$4 sm:$0xff]   ;;  %2562 = vst.msk [vmem:[#allocation2 + $0x678] sm:$0xff] %vm1305_vm0, %v7666_v39 }
 0x1e2   :  { %5163 = vmatmul.mubr.bf16.gmra.mrb[40].mxu1 %v3189_v5  ;;  %5800 = vmatprep.mubr.bf16.mxu0 %v9474_v7  ;;  %v7640_v7 = vld [vmem:[%s10608_s1 + $0x6c4] ss:$8 sps:$4 sm:$0xff]  }
 0x1e3   :  { %3537 = vxpose.xlu1.c.b16.cont [7/8] %v2808_v21, 128  ;;  %5172 = vmatprep.mubr.bf16.mxu1 %v9480_v20  ;;  %v7641_v20 = vld [vmem:[%s10608_s1 + $0x2c0] ss:$8 sps:$4 sm:$0xff]  }
 0x1e4   :  { %3281 = vxpose.xlu0.c.b16.cont [7/8] %v2680_v35, 128  ;;  %v9652_v41 = vpop.trf.xlu1  ;;  %5857 = vmatprep.subr.bf16.mxu0 %v7640_v7  ;;  %v2788_v5 = vld [vmem:[#allocation2 + $0x648] sm:$0xff]  ;;  %v7674_v35 = vld [vmem:[%s10607_s0 + $0x3c0] sm:$0xff]  }
 0x1e5   :  { %v9658_v43 = vpop.trf.xlu0  ;;  %5230 = vmatpush1.bf16.msra.mxu1 %v7641_v20  ;;  %5858 = vmatpush1.bf16.msra.mxu0 %v7638_v17  ;;  %v2792_v7 = vld [vmem:[#allocation2 + $0x668] sm:$0xff]  ;;  %1426 = vst.msk [vmem:[#allocation2 + $0x780] sm:$0xff] %vm1305_vm0, %v7674_v35  ;;  %v7688_v35 = vld [vmem:[%s10608_s1 + $0x710] ss:$8 sps:$4 sm:$0xff]  }
 0x1e6   :  { %5231 = vmatprep.subr.bf16.mxu1 %v7653_v59 }
 0x1e7   :  { %3538 = vxpose.xlu1.c.b16.end [8/8] %v2810_v9, 128  ;;  %v7675_v9 = vld [vmem:[%s10607_s0 + $0x1c0] sm:$0xff]  }
 0x1e8   :  { %3282 = vxpose.xlu0.c.b16.end [8/8] %v2682_v40, 128  ;;  %v9675_v45 = vpop.trf.xlu1  ;;  %1362 = vst.msk [vmem:[#allocation2 + $0x380] sm:$0xff] %vm1305_vm0, %v7675_v9 }
 0x1e9   :  { %v9678_v24 = vpop.trf.xlu0  ;;  %5801 = vmatmul.mubr.bf16.gmra.mrb[84].mxu0 %v3446_v61 }
 0x1ea   :  { %5173 = vmatmul.mubr.bf16.gmra.mrb[84].mxu1 %v3190_v30  ;;  %5808 = vmatprep.mubr.bf16.mxu0 %v9497_v4  ;;  %v7650_v4 = vld [vmem:[%s10608_s1 + $0x6d4] ss:$8 sps:$4 sm:$0xff]  }
 0x1eb   :  { %3499 = vxpose.xlu1.c.b16.start [1/8] %v2780_v50, 128  ;;  %5180 = vmatprep.mubr.bf16.mxu1 %v9500_v6  ;;  %v7651_v6 = vld [vmem:[%s10608_s1 + $0x2d0] ss:$8 sps:$4 sm:$0xff]   ;;  %v7677_v50 = vld [vmem:[%s10607_s0 + $0x1c8] sm:$0xff]  }
 0x1ec   :  { %3243 = vxpose.xlu0.c.b16.start [1/8] %v2652_v0, 128  ;;  %v9690_v57 = vpop.trf.xlu1  ;;  %5859 = vmatprep.subr.bf16.mxu0 %v7650_v4  ;;  %v2794_v0 = vld [vmem:[#allocation2 + $0x678] sm:$0xff]  ;;  %1363 = vst.msk [vmem:[#allocation2 + $0x390] sm:$0xff] %vm1305_vm0, %v7677_v50  ;;  %v2827_v63 = vld [vmem:[#allocation2 + $0x780] sm:$0xff] }
 0x1ed   :  { %v9696_v58 = vpop.trf.xlu0  ;;  %5232 = vmatpush1.bf16.msra.mxu1 %v7651_v6  ;;  %5860 = vmatpush1.bf16.msra.mxu0 %v7648_v28  ;;  %v7691_v50 = vld [vmem:[%s10608_s1 + $0x310] ss:$8 sps:$4 sm:$0xff]  }
 0x1ee   :  { %5861 = vmatprep.subr.bf16.mxu0 %v7660_v8 }
 0x1ef   :  { %3500 = vxpose.xlu1.c.b16.cont [2/8] %v2782_v56, 128  ;;  %v2666_v56 = vld [vmem:[#allocation2 + $0x278] sm:$0xff] }
 0x1f0   :  { %3244 = vxpose.xlu0.c.b16.cont [2/8] %v2654_v14, 128  ;;  %v7684_v14 = vld [vmem:[%s10607_s0 + $0x3d0] sm:$0xff]  }
 0x1f1   :  { %v9714_v37 = vpop.trf.xlu1  ;;  %5809 = vmatmul.mubr.bf16.gmra.mrb[88].mxu0 %v9637_v34  ;;  %v7673_v34 = vld [vmem:[%s10608_s1 + $0x2f4] ss:$8 sps:$4 sm:$0xff]   ;;  %1428 = vst.msk [vmem:[#allocation2 + $0x7a0] sm:$0xff] %vm1305_vm0, %v7684_v14 }
 0x1f2   :  { %v9721_v31 = vpop.trf.xlu0  ;;  %5181 = vmatmul.mubr.bf16.gmra.mrb[88].mxu1 %v9640_v29  ;;  %5814 = vmatprep.mubr.bf16.mxu0 %v9514_v38 }
 0x1f3   :  { %3501 = vxpose.xlu1.c.b16.cont [3/8] %v2784_v2, 128  ;;  %5186 = vmatprep.mubr.bf16.mxu1 %v9520_v13  ;;  %v7663_v13 = vld [vmem:[%s10608_s1 + $0x2e4] ss:$8 sps:$4 sm:$0xff]   ;;  %v7685_v2 = vld [vmem:[%s10607_s0 + $0x1d0] sm:$0xff]  }
 0x1f4   :  { %3245 = vxpose.xlu0.c.b16.cont [3/8] %v2656_v3, 128  ;;  %5233 = vmatprep.subr.bf16.mxu1 %v7663_v13  ;;  %v2699_v3 = vld [vmem:[#allocation2 + $0x380] sm:$0xff]  ;;  %1364 = vst.msk [vmem:[#allocation2 + $0x3a0] sm:$0xff] %vm1305_vm0, %v7685_v2 }
 0x1f5   :  { %v9734_v38 = vpop.trf.xlu1  ;;  %5234 = vmatpush1.bf16.msra.mxu1 %v7661_v60  ;;  %5862 = vmatpush1.bf16.msra.mxu0 %v7658_v11 }
 0x1f6   :  { %v9742_v10 = vpop.trf.xlu0  ;;  %5235 = vmatprep.subr.bf16.mxu1 %v7673_v34 }
 0x1f7   :  { %3502 = vxpose.xlu1.c.b16.cont [4/8] %v2786_v53, 128 }
 0x1f8   :  { %3246 = vxpose.xlu0.c.b16.cont [4/8] %v2658_v23, 128  ;;  %v7687_v23 = vld [vmem:[%s10607_s0 + $0x1d8] sm:$0xff]  }
 0x1f9   :  { %v9754_v36 = vpop.trf.xlu1  ;;  %5815 = vmatmul.mubr.bf16.gmra.mrb[92].mxu0 %v9652_v41  ;;  %5236 = vmatpush1.bf16.msra.mxu1 %v7671_v32  ;;  %1365 = vst.msk [vmem:[#allocation2 + $0x3b0] sm:$0xff] %vm1305_vm0, %v7687_v23  ;;  %v7695_v32 = vld [vmem:[%s10607_s0 + $0x1e0] sm:$0xff]  }
 0x1fa   :  { %v9761_v61 = vpop.trf.xlu0  ;;  %5187 = vmatmul.mubr.bf16.gmra.mrb[92].mxu1 %v9658_v43  ;;  %5820 = vmatprep.mubr.bf16.mxu0 %v9537_v12  ;;  %v7670_v12 = vld [vmem:[%s10608_s1 + $0x6f4] ss:$8 sps:$4 sm:$0xff]   ;;  %v7676_v43 = vld [vmem:[%s10607_s0 + $0x3c8] sm:$0xff]   ;;  %1366 = vst.msk [vmem:[#allocation2 + $0x3c0] sm:$0xff] %vm1305_vm0, %v7695_v32  ;;  %v7708_v32 = vld [vmem:[%s10608_s1 + $0x730] ss:$8 sps:$4 sm:$0xff]  }
 0x1fb   :  { %3503 = vxpose.xlu1.c.b16.cont [5/8] %v2788_v5, 128  ;;  %5192 = vmatprep.mubr.bf16.mxu1 %v9540_v48  ;;  %v9769_v30 = vpop.f32.mrb[12].mxu0  ;;  %1427 = vst.msk [vmem:[#allocation2 + $0x790] sm:$0xff] %vm1305_vm0, %v7676_v43  ;;  %v2703_v9 = vld [vmem:[#allocation2 + $0x3a0] sm:$0xff] }
 0x1fc   :  { %3247 = vxpose.xlu0.c.b16.cont [5/8] %v2660_v19, 128  ;;  %v9772_v26 = vpop.f32.mrb[12].mxu1  ;;  %v9774_v27 = vpop.f32.mrb[13].mxu0  ;;  %5863 = vmatprep.subr.bf16.mxu0 %v7670_v12  ;;  %v7681_v19 = vld [vmem:[%s10608_s1 + $0x300] ss:$8 sps:$4 sm:$0xff]   ;;  %v7690_v12 = vld [vmem:[%s10608_s1 + $0x714] ss:$8 sps:$4 sm:$0xff]  }
 0x1fd   :  { %v9780_v21 = vpop.trf.xlu1  ;;  %v9782_v48 = vpop.f32.mrb[13].mxu1  ;;  %5864 = vmatpush1.bf16.msra.mxu0 %v7668_v44 }
 0x1fe   :  { %v9793_v29 = vpop.trf.xlu0  ;;  %v5587_v42 = vpop.f32.mrb[14].mxu0 }
 0x1ff   :  { %3504 = vxpose.xlu1.c.b16.cont [6/8] %v2790_v25, 128  ;;  %v4959_v40 = vpop.f32.mrb[14].mxu1  ;;  %v5588_v41 = vpop.f32.mrb[15].mxu0  ;;  %v7696_v42 = vld [vmem:[%s10607_s0 + $0x3e8] sm:$0xff]  }
 0x200   :  { %3248 = vxpose.xlu0.c.b16.cont [6/8] %v2662_v33, 128  ;;  %v4960_v20 = vpop.f32.mrb[15].mxu1  ;;  %v2831_v33 = vld [vmem:[#allocation2 + $0x7a0] sm:$0xff]  ;;  %v7697_v40 = vld [vmem:[%s10607_s0 + $0x1e8] sm:$0xff]   ;;  %1431 = vst.msk [vmem:[#allocation2 + $0x7d0] sm:$0xff] %vm1305_vm0, %v7696_v42 }
 0x201   :  { %v9806_v17 = vpop.trf.xlu1  ;;  %5821 = vmatmul.mubr.bf16.gmra.mrb[96].mxu0 %v9675_v45  ;;  %1367 = vst.msk [vmem:[#allocation2 + $0x3d0] sm:$0xff] %vm1305_vm0, %v7697_v40  ;;  %v2707_v55 = vld [vmem:[#allocation2 + $0x3c0] sm:$0xff]  ;;  %v7717_v40 = vld [vmem:[%s10607_s0 + $0x188] sm:$0xff]  }
 0x202   :  { %v9810_v49 = vpop.trf.xlu0  ;;  %5193 = vmatmul.mubr.bf16.gmra.mrb[96].mxu1 %v9678_v24  ;;  %5826 = vmatprep.mubr.bf16.mxu0 %v9554_v47  ;;  %v7680_v24 = vld [vmem:[%s10608_s1 + $0x704] ss:$8 sps:$4 sm:$0xff]   ;;  %v2829_v13 = vld [vmem:[#allocation2 + $0x790] sm:$0xff]  ;;  %1355 = vst.msk [vmem:[#allocation2 + $0x310] sm:$0xff] %vm1305_vm0, %v7717_v40 }
 0x203   :  { %3505 = vxpose.xlu1.c.b16.cont [7/8] %v2792_v7, 128  ;;  %5198 = vmatprep.mubr.bf16.mxu1 %v9560_v54  ;;  %v5591_v51 = vpop.f32.mrb[16].mxu0  ;;  %v7683_v54 = vld [vmem:[%s10608_s1 + $0x304] ss:$8 sps:$4 sm:$0xff]   ;;  %v7693_v7 = vld [vmem:[%s10608_s1 + $0x314] ss:$8 sps:$4 sm:$0xff]  }
 0x204   :  { %3249 = vxpose.xlu0.c.b16.cont [7/8] %v2664_v46, 128  ;;  %v4963_v16 = vpop.f32.mrb[16].mxu1  ;;  %v5592_v45 = vpop.f32.mrb[17].mxu0  ;;  %5990 = vmatprep.subr.bf16.mxu0 %v7680_v24  ;;  %v2833_v46 = vld [vmem:[#allocation2 + $0x7b0] sm:$0xff]  ;;  %v7715_v42 = vld [vmem:[%s10607_s0 + $0x180] sm:$0xff]  }
 0x205   :  { %v9822_v47 = vpop.trf.xlu1  ;;  %v4964_v52 = vpop.f32.mrb[17].mxu1  ;;  %5362 = vmatprep.subr.bf16.mxu1 %v7683_v54  ;;  %v7700_v16 = vld [vmem:[%s10608_s1 + $0x724] ss:$8 sps:$4 sm:$0xff]   ;;  %1354 = vst.msk [vmem:[#allocation2 + $0x300] sm:$0xff] %vm1305_vm0, %v7715_v42 }
 0x206   :  { %v9830_v4 = vpop.trf.xlu0  ;;  %v5593_v6 = vpop.f32.mrb[18].mxu0  ;;  %v2705_v52 = vld [vmem:[#allocation2 + $0x3b0] sm:$0xff] }
 0x207   :  { %3506 = vxpose.xlu1.c.b16.end [8/8] %v2794_v0, 128  ;;  %v4965_v59 = vpop.f32.mrb[18].mxu1  ;;  %v5594_v28 = vpop.f32.mrb[19].mxu0  ;;  %v7705_v6 = vld [vmem:[%s10607_s0 + $0x1f0] sm:$0xff]  }
 0x208   :  { %3250 = vxpose.xlu0.c.b16.end [8/8] %v2666_v56, 128  ;;  %v4966_v22 = vpop.f32.mrb[19].mxu1  ;;  %v7703_v56 = vld [vmem:[%s10608_s1 + $0x324] ss:$8 sps:$4 sm:$0xff]   ;;  %v7698_v28 = vld [vmem:[%s10608_s1 + $0x720] ss:$8 sps:$4 sm:$0xff]   ;;  %1368 = vst.msk [vmem:[#allocation2 + $0x3e0] sm:$0xff] %vm1305_vm0, %v7705_v6 }
 0x209   :  { %v9836_v62 = vpop.trf.xlu1  ;;  %5827 = vmatmul.mubr.bf16.gmra.mrb[100].mxu0 %v9690_v57 }
 0x20a   :  { %v9843_v53 = vpop.trf.xlu0  ;;  %5199 = vmatmul.mubr.bf16.gmra.mrb[100].mxu1 %v9696_v58  ;;  %5865 = vmatprep.mubr.bf16.mxu0 %v9714_v37  ;;  %v2701_v37 = vld [vmem:[#allocation2 + $0x390] sm:$0xff] }
 0x20b   :  { %3579 = vxpose.xlu1.c.b16.start [1/8] %v2827_v63, 128  ;;  %5237 = vmatprep.mubr.bf16.mxu1 %v9721_v31  ;;  %v5597_v57 = vpop.f32.mrb[20].mxu0  ;;  %v7694_v31 = vld [vmem:[%s10607_s0 + $0x3e0] sm:$0xff]   ;;  %v7706_v63 = vld [vmem:[%s10607_s0 + $0x3f8] sm:$0xff]  }
 0x20c   :  { %3323 = vxpose.xlu0.c.b16.start [1/8] %v2699_v3, 128  ;;  %v4969_v8 = vpop.f32.mrb[20].mxu1  ;;  %v5598_v60 = vpop.f32.mrb[21].mxu0  ;;  %1430 = vst.msk [vmem:[#allocation2 + $0x7c0] sm:$0xff] %vm1305_vm0, %v7694_v31  ;;  %1433 = vst.msk [vmem:[#allocation2 + $0x7f0] sm:$0xff] %vm1305_vm0, %v7706_v63  ;;  %v2837_v57 = vld [vmem:[#allocation2 + $0x7d0] sm:$0xff] }
 0x20d   :  { %v9853_v11 = vpop.trf.xlu1  ;;  %v4970_v58 = vpop.f32.mrb[21].mxu1  ;;  %v7707_v8 = vld [vmem:[%s10607_s0 + $0x1f8] sm:$0xff]  }
 0x20e   :  { %v9861_v5 = vpop.trf.xlu0  ;;  %v5599_v18 = vpop.f32.mrb[22].mxu0  ;;  %v2709_v58 = vld [vmem:[#allocation2 + $0x3d0] sm:$0xff]  ;;  %1369 = vst.msk [vmem:[#allocation2 + $0x3f0] sm:$0xff] %vm1305_vm0, %v7707_v8  ;;  %v7737_v8 = vld [vmem:[%s10607_s0 + $0x1a8] sm:$0xff]  }
 0x20f   :  { %3580 = vxpose.xlu1.c.b16.cont [2/8] %v2829_v13, 128  ;;  %v4971_v39 = vpop.f32.mrb[22].mxu1  ;;  %v5600_v1 = vpop.f32.mrb[23].mxu0  ;;  %v7711_v31 = vld [vmem:[%s10608_s1 + $0x330] ss:$8 sps:$4 sm:$0xff]   ;;  %1359 = vst.msk [vmem:[#allocation2 + $0x350] sm:$0xff] %vm1305_vm0, %v7737_v8 }
 0x210   :  { %3324 = vxpose.xlu0.c.b16.cont [2/8] %v2701_v37, 128  ;;  %v4972_v25 = vpop.f32.mrb[23].mxu1  ;;  %v7714_v39 = vld [vmem:[%s10607_s0 + $0x380] sm:$0xff]   ;;  %v7728_v63 = vld [vmem:[%s10608_s1 + $0x750] ss:$8 sps:$4 sm:$0xff]  }
 0x211   :  { %v3491_v34 = vpop.trf.xlu1  ;;  %1418 = vst.msk [vmem:[#allocation2 + $0x700] sm:$0xff] %vm1305_vm0, %v7714_v39  ;;  %v7758_v8 = vld [vmem:[%s10608_s1 + $0x780] ss:$8 sps:$4 sm:$0xff]  }
 0x212   :  { %v3235_v44 = vpop.trf.xlu0  ;;  %5866 = vmatmul.mubr.bf16.vlgmr.msra.gmra.mrb[0].mxu0 %v3491_v34 }
 0x213   :  { %5238 = vmatmul.mubr.bf16.vlgmr.msra.gmra.mrb[0].mxu1 %v3235_v44  ;;  %5991 = vmatpush1.bf16.msra.mxu0 %v7678_v15  ;;  %v5603_v41 = vpop.f32.mrb[24].mxu0  ;;  %v2835_v22 = vld [vmem:[#allocation2 + $0x7c0] sm:$0xff] }
 0x214   :  { %5363 = vmatpush1.bf16.msra.mxu1 %v7681_v19  ;;  %3581 = vxpose.xlu1.c.b16.cont [3/8] %v2831_v33, 128  ;;  %v4975_v43 = vpop.f32.mrb[24].mxu1  ;;  %v5604_v20 = vpop.f32.mrb[25].mxu0  ;;  %v2841_v41 = vld [vmem:[#allocation2 + $0x7f0] sm:$0xff] }
 0x215   :  { %5875 = vmatprep.mubr.bf16.mxu0 %v9734_v38  ;;  %3325 = vxpose.xlu0.c.b16.cont [3/8] %v2703_v9, 128  ;;  %v3492_v51 = vpop.trf.xlu1  ;;  %v4976_v0 = vpop.f32.mrb[25].mxu1  ;;  %v7701_v38 = vld [vmem:[%s10608_s1 + $0x320] ss:$8 sps:$4 sm:$0xff]  }
 0x216   :  { %5247 = vmatprep.mubr.bf16.mxu1 %v9742_v10  ;;  %v3236_v45 = vpop.trf.xlu0  ;;  %v5605_v24 = vpop.f32.mrb[26].mxu0  ;;  %5992 = vmatprep.subr.bf16.mxu0 %v7690_v12  ;;  %v7704_v10 = vld [vmem:[%s10607_s0 + $0x3f0] sm:$0xff]   ;;  %v7716_v9 = vld [vmem:[%s10607_s0 + $0x388] sm:$0xff]  }
 0x217   :  { %v4977_v54 = vpop.f32.mrb[26].mxu1  ;;  %v5606_v14 = vpop.f32.mrb[27].mxu0  ;;  %5364 = vmatprep.subr.bf16.mxu1 %v7693_v7  ;;  %5993 = vmatpush1.bf16.msra.mxu0 %v7688_v35  ;;  %1432 = vst.msk [vmem:[#allocation2 + $0x7e0] sm:$0xff] %vm1305_vm0, %v7704_v10  ;;  %v2711_v35 = vld [vmem:[#allocation2 + $0x3e0] sm:$0xff]  ;;  %v2713_v7 = vld [vmem:[#allocation2 + $0x3f0] sm:$0xff]  ;;  %1419 = vst.msk [vmem:[#allocation2 + $0x710] sm:$0xff] %vm1305_vm0, %v7716_v9 }
 0x218   :  { %3582 = vxpose.xlu1.c.b16.cont [4/8] %v2833_v46, 128  ;;  %v4978_v59 = vpop.f32.mrb[27].mxu1  ;;  %5365 = vmatpush1.bf16.msra.mxu1 %v7691_v50  ;;  %v7723_v46 = vld [vmem:[%s10608_s1 + $0x344] ss:$8 sps:$4 sm:$0xff]   ;;  %v7724_v0 = vld [vmem:[%s10607_s0 + $0x390] sm:$0xff]   ;;  %v7726_v24 = vld [vmem:[%s10607_s0 + $0x398] sm:$0xff]  }
 0x219   :  { %3326 = vxpose.xlu0.c.b16.cont [4/8] %v2705_v52, 128  ;;  %v3493_v2 = vpop.trf.xlu1  ;;  %5994 = vmatprep.subr.bf16.mxu0 %v7700_v16  ;;  %v2811_v50 = vld [vmem:[#allocation2 + $0x700] sm:$0xff]  ;;  %v7725_v16 = vld [vmem:[%s10607_s0 + $0x190] sm:$0xff]   ;;  %1420 = vst.msk [vmem:[#allocation2 + $0x720] sm:$0xff] %vm1305_vm0, %v7724_v0  ;;  %1421 = vst.msk [vmem:[#allocation2 + $0x730] sm:$0xff] %vm1305_vm0, %v7726_v24 }
 0x21a   :  { %v3237_v3 = vpop.trf.xlu0  ;;  %5876 = vmatmul.mubr.bf16.gmra.mrb[4].mxu0 %v3492_v51  ;;  %5366 = vmatprep.subr.bf16.mxu1 %v7703_v56  ;;  %v7718_v51 = vld [vmem:[%s10608_s1 + $0x740] ss:$8 sps:$4 sm:$0xff]   ;;  %1356 = vst.msk [vmem:[#allocation2 + $0x320] sm:$0xff] %vm1305_vm0, %v7725_v16  ;;  %v7727_v54 = vld [vmem:[%s10607_s0 + $0x198] sm:$0xff]   ;;  %v2693_v42 = vld [vmem:[#allocation2 + $0x350] sm:$0xff] }
 0x21b   :  { %5248 = vmatmul.mubr.bf16.gmra.mrb[4].mxu1 %v3236_v45  ;;  %5885 = vmatprep.mubr.bf16.mxu0 %v9754_v36  ;;  %v5609_v23 = vpop.f32.mrb[28].mxu0  ;;  %v7710_v36 = vld [vmem:[%s10608_s1 + $0x734] ss:$8 sps:$4 sm:$0xff]   ;;  %v2683_v56 = vld [vmem:[#allocation2 + $0x300] sm:$0xff]  ;;  %1357 = vst.msk [vmem:[#allocation2 + $0x330] sm:$0xff] %vm1305_vm0, %v7727_v54 }
 0x21c   :  { %3583 = vxpose.xlu1.c.b16.cont [5/8] %v2835_v22, 128  ;;  %5257 = vmatprep.mubr.bf16.mxu1 %v9761_v61  ;;  %v4981_v60 = vpop.f32.mrb[28].mxu1  ;;  %v5610_v13 = vpop.f32.mrb[29].mxu0  ;;  %v7713_v61 = vld [vmem:[%s10608_s1 + $0x334] ss:$8 sps:$4 sm:$0xff]   ;;  %v7731_v59 = vld [vmem:[%s10608_s1 + $0x350] ss:$8 sps:$4 sm:$0xff]  }
 0x21d   :  { %3327 = vxpose.xlu0.c.b16.cont [5/8] %v2707_v55, 128  ;;  %v3494_v37 = vpop.trf.xlu1  ;;  %v4982_v15 = vpop.f32.mrb[29].mxu1  ;;  %5367 = vmatpush1.bf16.msra.mxu1 %v7701_v38  ;;  %v2685_v38 = vld [vmem:[#allocation2 + $0x310] sm:$0xff]  ;;  %v7755_v16 = vld [vmem:[%s10607_s0 + $0x5c0] sm:$0xff]  }
 0x21e   :  { %v3238_v18 = vpop.trf.xlu0  ;;  %v5611_v19 = vpop.f32.mrb[30].mxu0  ;;  %5995 = vmatpush1.bf16.msra.mxu0 %v7698_v28  ;;  %v2839_v12 = vld [vmem:[#allocation2 + $0x7e0] sm:$0xff]  ;;  %5368 = vmatprep.subr.bf16.mxu1 %v7713_v61  ;;  %v2813_v14 = vld [vmem:[#allocation2 + $0x710] sm:$0xff]  ;;  %2515 = vst.msk [vmem:[#allocation2 + $0x388] sm:$0xff] %vm1305_vm0, %v7755_v16 }
 0x21f   :  { %v4983_v1 = vpop.f32.mrb[30].mxu1  ;;  %v5612_v25 = vpop.f32.mrb[31].mxu0  ;;  %5996 = vmatprep.subr.bf16.mxu0 %v7710_v36  ;;  %v7734_v28 = vld [vmem:[%s10607_s0 + $0x3a0] sm:$0xff]   ;;  %v7745_v19 = vld [vmem:[%s10607_s0 + $0x1b0] sm:$0xff]  }
 0x220   :  { %3584 = vxpose.xlu1.c.b16.cont [6/8] %v2837_v57, 128  ;;  %v4984_v33 = vpop.f32.mrb[31].mxu1  ;;  %1422 = vst.msk [vmem:[#allocation2 + $0x740] sm:$0xff] %vm1305_vm0, %v7734_v28  ;;  %v7736_v57 = vld [vmem:[%s10607_s0 + $0x3a8] sm:$0xff]   ;;  %v2817_v60 = vld [vmem:[#allocation2 + $0x730] sm:$0xff]  ;;  %1360 = vst.msk [vmem:[#allocation2 + $0x360] sm:$0xff] %vm1305_vm0, %v7745_v19 }
 0x221   :  { %3328 = vxpose.xlu0.c.b16.cont [6/8] %v2709_v58, 128  ;;  %v9939_v34 = vpop.trf.xlu1  ;;  %5369 = vmatpush1.bf16.msra.mxu1 %v7711_v31  ;;  %v2687_v23 = vld [vmem:[#allocation2 + $0x320] sm:$0xff]  ;;  %1423 = vst.msk [vmem:[#allocation2 + $0x750] sm:$0xff] %vm1305_vm0, %v7736_v57  ;;  %v7744_v31 = vld [vmem:[%s10607_s0 + $0x3b0] sm:$0xff]   ;;  %v7746_v25 = vld [vmem:[%s10607_s0 + $0x3b8] sm:$0xff]  }
 0x222   :  { %v9944_v44 = vpop.trf.xlu0  ;;  %5886 = vmatmul.mubr.bf16.gmra.mrb[8].mxu0 %v3493_v2  ;;  %5370 = vmatprep.subr.bf16.mxu1 %v7723_v46  ;;  %v7735_v2 = vld [vmem:[%s10607_s0 + $0x1a0] sm:$0xff]   ;;  %v2689_v13 = vld [vmem:[#allocation2 + $0x330] sm:$0xff]  ;;  %1424 = vst.msk [vmem:[#allocation2 + $0x760] sm:$0xff] %vm1305_vm0, %v7744_v31  ;;  %1425 = vst.msk [vmem:[#allocation2 + $0x770] sm:$0xff] %vm1305_vm0, %v7746_v25 }
 0x223   :  { %5258 = vmatmul.mubr.bf16.gmra.mrb[8].mxu1 %v3237_v3  ;;  %5895 = vmatprep.mubr.bf16.mxu0 %v9780_v21  ;;  %v7720_v21 = vld [vmem:[%s10608_s1 + $0x744] ss:$8 sps:$4 sm:$0xff]   ;;  %1358 = vst.msk [vmem:[#allocation2 + $0x340] sm:$0xff] %vm1305_vm0, %v7735_v2  ;;  %v7738_v36 = vld [vmem:[%s10608_s1 + $0x760] ss:$8 sps:$4 sm:$0xff]   ;;  %v7766_v31 = vld [vmem:[%s10607_s0 + $0x7d8] sm:$0xff]  }
 0x224   :  { %3585 = vxpose.xlu1.c.b16.cont [7/8] %v2839_v12, 128  ;;  %5267 = vmatprep.mubr.bf16.mxu1 %v9793_v29  ;;  %v7721_v29 = vld [vmem:[%s10608_s1 + $0x340] ss:$8 sps:$4 sm:$0xff]   ;;  %v7743_v15 = vld [vmem:[%s10608_s1 + $0x364] ss:$8 sps:$4 sm:$0xff]   ;;  %v7747_v12 = vld [vmem:[%s10607_s0 + $0x1b8] sm:$0xff]   ;;  %2582 = vst.msk [vmem:[#allocation2 + $0x7b8] sm:$0xff] %vm1305_vm0, %v7766_v31 }
 0x225   :  { %3329 = vxpose.xlu0.c.b16.cont [7/8] %v2711_v35, 128  ;;  %v9956_v43 = vpop.trf.xlu1  ;;  %5997 = vmatpush1.bf16.msra.mxu0 %v7708_v32  ;;  %v2815_v3 = vld [vmem:[#allocation2 + $0x720] sm:$0xff]  ;;  %1361 = vst.msk [vmem:[#allocation2 + $0x370] sm:$0xff] %vm1305_vm0, %v7747_v12  ;;  %v7767_v19 = vld [vmem:[%s10607_s0 + $0x5d8] sm:$0xff]  }
 0x226   :  { %v9962_v20 = vpop.trf.xlu0  ;;  %5998 = vmatprep.subr.bf16.mxu0 %v7720_v21  ;;  %5371 = vmatpush1.bf16.msra.mxu1 %v7721_v29  ;;  %v7748_v29 = vld [vmem:[%s10608_s1 + $0x770] ss:$8 sps:$4 sm:$0xff]   ;;  %v7763_v2 = vld [vmem:[%s10608_s1 + $0x384] ss:$8 sps:$4 sm:$0xff]   ;;  %2518 = vst.msk [vmem:[#allocation2 + $0x3b8] sm:$0xff] %vm1305_vm0, %v7767_v19 }
 0x227   :  { %v2695_v0 = vld [vmem:[#allocation2 + $0x360] sm:$0xff] }
 0x228   :  { %3586 = vxpose.xlu1.c.b16.end [8/8] %v2841_v41, 128  ;;  %v2821_v35 = vld [vmem:[#allocation2 + $0x750] sm:$0xff] }
 0x229   :  { %3330 = vxpose.xlu0.c.b16.end [8/8] %v2713_v7, 128  ;;  %v9979_v45 = vpop.trf.xlu1  ;;  %5999 = vmatpush1.bf16.msra.mxu0 %v7718_v51  ;;  %v7751_v41 = vld [vmem:[%s10608_s1 + $0x370] ss:$8 sps:$4 sm:$0xff]   ;;  %v7753_v7 = vld [vmem:[%s10608_s1 + $0x374] ss:$8 sps:$4 sm:$0xff]  }
 0x22a   :  { %v9985_v52 = vpop.trf.xlu0  ;;  %5896 = vmatmul.mubr.bf16.gmra.mrb[104].mxu0 %v3494_v37  ;;  %v2691_v39 = vld [vmem:[#allocation2 + $0x340] sm:$0xff] }
 0x22b   :  { %5268 = vmatmul.mubr.bf16.gmra.mrb[104].mxu1 %v3238_v18  ;;  %5903 = vmatprep.mubr.bf16.mxu0 %v9806_v17  ;;  %v7730_v17 = vld [vmem:[%s10608_s1 + $0x754] ss:$8 sps:$4 sm:$0xff]   ;;  %v2819_v18 = vld [vmem:[#allocation2 + $0x740] sm:$0xff] }
 0x22c   :  { %3547 = vxpose.xlu1.c.b16.start [1/8] %v2811_v50, 128  ;;  %5275 = vmatprep.mubr.bf16.mxu1 %v9810_v49  ;;  %v7733_v49 = vld [vmem:[%s10608_s1 + $0x354] ss:$8 sps:$4 sm:$0xff]   ;;  %v2823_v50 = vld [vmem:[#allocation2 + $0x760] sm:$0xff] }
 0x22d   :  { %3291 = vxpose.xlu0.c.b16.start [1/8] %v2683_v56, 128  ;;  %v9994_v10 = vpop.trf.xlu1  ;;  %6000 = vmatprep.subr.bf16.mxu0 %v7730_v17  ;;  %v7756_v56 = vld [vmem:[%s10607_s0 + $0x7c8] sm:$0xff]   ;;  %v2825_v17 = vld [vmem:[#allocation2 + $0x770] sm:$0xff] }
 0x22e   :  { %v10000_v6 = vpop.trf.xlu0  ;;  %5372 = vmatprep.subr.bf16.mxu1 %v7733_v49  ;;  %6001 = vmatpush1.bf16.msra.mxu0 %v7728_v63  ;;  %2580 = vst.msk [vmem:[#allocation2 + $0x798] sm:$0xff] %vm1305_vm0, %v7756_v56  ;;  %v7760_v49 = vld [vmem:[%s10608_s1 + $0x784] ss:$8 sps:$4 sm:$0xff]   ;;  %v7761_v63 = vld [vmem:[%s10608_s1 + $0x380] ss:$8 sps:$4 sm:$0xff]  }
 0x22f   :  { %5373 = vmatpush1.bf16.msra.mxu1 %v7731_v59  ;;  %v7776_v56 = vld [vmem:[%s10607_s0 + $0x7e8] sm:$0xff]  }
 0x230   :  { %3548 = vxpose.xlu1.c.b16.cont [2/8] %v2813_v14, 128  ;;  %5374 = vmatprep.subr.bf16.mxu1 %v7743_v15  ;;  %v7757_v14 = vld [vmem:[%s10607_s0 + $0x5c8] sm:$0xff]   ;;  %2584 = vst.msk [vmem:[#allocation2 + $0x7d8] sm:$0xff] %vm1305_vm0, %v7776_v56 }
 0x231   :  { %3292 = vxpose.xlu0.c.b16.cont [2/8] %v2685_v38, 128  ;;  %v10017_v22 = vpop.trf.xlu1  ;;  %2516 = vst.msk [vmem:[#allocation2 + $0x398] sm:$0xff] %vm1305_vm0, %v7757_v14 }
 0x232   :  { %v10020_v55 = vpop.trf.xlu0  ;;  %5904 = vmatmul.mubr.bf16.gmra.mrb[108].mxu0 %v9939_v34 }
 0x233   :  { %5276 = vmatmul.mubr.bf16.gmra.mrb[108].mxu1 %v9944_v44  ;;  %5909 = vmatprep.mubr.bf16.mxu0 %v9822_v47  ;;  %v7740_v47 = vld [vmem:[%s10608_s1 + $0x764] ss:$8 sps:$4 sm:$0xff]  }
 0x234   :  { %3549 = vxpose.xlu1.c.b16.cont [3/8] %v2815_v3, 128  ;;  %5281 = vmatprep.mubr.bf16.mxu1 %v9830_v4  ;;  %v7741_v4 = vld [vmem:[%s10608_s1 + $0x360] ss:$8 sps:$4 sm:$0xff]  }
 0x235   :  { %3293 = vxpose.xlu0.c.b16.cont [3/8] %v2687_v23, 128  ;;  %v10034_v58 = vpop.trf.xlu1  ;;  %6002 = vmatprep.subr.bf16.mxu0 %v7740_v47  ;;  %v7765_v47 = vld [vmem:[%s10607_s0 + $0x5d0] sm:$0xff]   ;;  %v2830_v25 = vld [vmem:[#allocation2 + $0x798] sm:$0xff] }
 0x236   :  { %v10040_v37 = vpop.trf.xlu0  ;;  %5375 = vmatpush1.bf16.msra.mxu1 %v7741_v4  ;;  %6003 = vmatpush1.bf16.msra.mxu0 %v7738_v36  ;;  %v2700_v36 = vld [vmem:[#allocation2 + $0x388] sm:$0xff]  ;;  %2517 = vst.msk [vmem:[#allocation2 + $0x3a8] sm:$0xff] %vm1305_vm0, %v7765_v47 }
 0x237   :  { %5376 = vmatprep.subr.bf16.mxu1 %v7753_v7 }
 0x238   :  { %3550 = vxpose.xlu1.c.b16.cont [4/8] %v2817_v60, 128  ;;  %v7764_v60 = vld [vmem:[%s10607_s0 + $0x7d0] sm:$0xff]  }
 0x239   :  { %3294 = vxpose.xlu0.c.b16.cont [4/8] %v2689_v13, 128  ;;  %v10057_v61 = vpop.trf.xlu1  ;;  %2581 = vst.msk [vmem:[#allocation2 + $0x7a8] sm:$0xff] %vm1305_vm0, %v7764_v60  ;;  %v7784_v60 = vld [vmem:[%s10607_s0 + $0x7f0] sm:$0xff]  }
 0x23a   :  { %v10060_v1 = vpop.trf.xlu0  ;;  %5910 = vmatmul.mubr.bf16.gmra.mrb[112].mxu0 %v9956_v43  ;;  %v7754_v43 = vld [vmem:[%s10607_s0 + $0x7c0] sm:$0xff]   ;;  %5377 = vmatpush1.bf16.msra.mxu1 %v7751_v41  ;;  %2585 = vst.msk [vmem:[#allocation2 + $0x7e8] sm:$0xff] %vm1305_vm0, %v7784_v60 }
 0x23b   :  { %5282 = vmatmul.mubr.bf16.gmra.mrb[112].mxu1 %v9962_v20  ;;  %5915 = vmatprep.mubr.bf16.mxu0 %v9836_v62  ;;  %v10069_v33 = vpop.f32.mrb[44].mxu0  ;;  %2579 = vst.msk [vmem:[#allocation2 + $0x788] sm:$0xff] %vm1305_vm0, %v7754_v43  ;;  %v7768_v43 = vld [vmem:[%s10608_s1 + $0x790] ss:$8 sps:$4 sm:$0xff]  }
 0x23c   :  { %3551 = vxpose.xlu1.c.b16.cont [5/8] %v2819_v18, 128  ;;  %5287 = vmatprep.mubr.bf16.mxu1 %v9843_v53  ;;  %v10075_v32 = vpop.f32.mrb[44].mxu1  ;;  %v10077_v34 = vpop.f32.mrb[45].mxu0  ;;  %v7750_v53 = vld [vmem:[%s10608_s1 + $0x774] ss:$8 sps:$4 sm:$0xff]  }
 0x23d   :  { %3295 = vxpose.xlu0.c.b16.cont [5/8] %v2691_v39, 128  ;;  %v10080_v44 = vpop.trf.xlu1  ;;  %v10082_v62 = vpop.f32.mrb[45].mxu1  ;;  %6004 = vmatprep.subr.bf16.mxu0 %v7750_v53  ;;  %v7771_v53 = vld [vmem:[%s10608_s1 + $0x390] ss:$8 sps:$4 sm:$0xff]  }
 0x23e   :  { %v10088_v9 = vpop.trf.xlu0  ;;  %v5649_v40 = vpop.f32.mrb[46].mxu0  ;;  %6005 = vmatpush1.bf16.msra.mxu0 %v7748_v29  ;;  %5378 = vmatprep.subr.bf16.mxu1 %v7763_v2  ;;  %v7774_v29 = vld [vmem:[%s10607_s0 + $0x7e0] sm:$0xff]  }
 0x23f   :  { %v5021_v21 = vpop.f32.mrb[46].mxu1  ;;  %v5650_v20 = vpop.f32.mrb[47].mxu0  ;;  %6006 = vmatprep.subr.bf16.mxu0 %v7760_v49  ;;  %5379 = vmatpush1.bf16.msra.mxu1 %v7761_v63  ;;  %v7773_v40 = vld [vmem:[%s10608_s1 + $0x394] ss:$8 sps:$4 sm:$0xff]   ;;  %2583 = vst.msk [vmem:[#allocation2 + $0x7c8] sm:$0xff] %vm1305_vm0, %v7774_v29 }
 0x240   :  { %3552 = vxpose.xlu1.c.b16.cont [6/8] %v2821_v35, 128  ;;  %v5022_v46 = vpop.f32.mrb[47].mxu1  ;;  %v2832_v20 = vld [vmem:[#allocation2 + $0x7a8] sm:$0xff]  ;;  %5380 = vmatprep.subr.bf16.mxu1 %v7773_v40  ;;  %v2706_v49 = vld [vmem:[#allocation2 + $0x3b8] sm:$0xff] }
 0x241   :  { %3296 = vxpose.xlu0.c.b16.cont [6/8] %v2693_v42, 128  ;;  %v10103_v51 = vpop.trf.xlu1  ;;  %v7781_v63 = vld [vmem:[%s10608_s1 + $0x3a0] ss:$8 sps:$4 sm:$0xff]  }
 0x242   :  { %v10108_v24 = vpop.trf.xlu0  ;;  %5916 = vmatmul.mubr.bf16.gmra.mrb[116].mxu0 %v9979_v45  ;;  %v2828_v57 = vld [vmem:[#allocation2 + $0x788] sm:$0xff] }
 0x243   :  { %5288 = vmatmul.mubr.bf16.gmra.mrb[116].mxu1 %v9985_v52  ;;  %5921 = vmatprep.mubr.bf16.mxu0 %v9853_v11  ;;  %v5653_v54 = vpop.f32.mrb[48].mxu0  ;;  %v2697_v11 = vld [vmem:[#allocation2 + $0x370] sm:$0xff] }
 0x244   :  { %3553 = vxpose.xlu1.c.b16.cont [7/8] %v2823_v50, 128  ;;  %5293 = vmatprep.mubr.bf16.mxu1 %v9861_v5  ;;  %v5025_v38 = vpop.f32.mrb[48].mxu1  ;;  %v5654_v45 = vpop.f32.mrb[49].mxu0  ;;  %v2704_v50 = vld [vmem:[#allocation2 + $0x3a8] sm:$0xff] }
 0x245   :  { %3297 = vxpose.xlu0.c.b16.cont [7/8] %v2695_v0, 128  ;;  %v10122_v59 = vpop.trf.xlu1  ;;  %v5026_v52 = vpop.f32.mrb[49].mxu1  ;;  %6007 = vmatpush1.bf16.msra.mxu0 %v7758_v8  ;;  %v7775_v0 = vld [vmem:[%s10607_s0 + $0x5e0] sm:$0xff]   ;;  %v2834_v45 = vld [vmem:[#allocation2 + $0x7b8] sm:$0xff] }
 0x246   :  { %v10128_v28 = vpop.trf.xlu0  ;;  %v5655_v5 = vpop.f32.mrb[50].mxu0  ;;  %5381 = vmatpush1.bf16.msra.mxu1 %v7771_v53  ;;  %2519 = vst.msk [vmem:[#allocation2 + $0x3c8] sm:$0xff] %vm1305_vm0, %v7775_v0  ;;  %v2836_v47 = vld [vmem:[#allocation2 + $0x7c8] sm:$0xff] }
 0x247   :  { %v5027_v3 = vpop.f32.mrb[50].mxu1  ;;  %v5656_v23 = vpop.f32.mrb[51].mxu0  ;;  %v2840_v0 = vld [vmem:[#allocation2 + $0x7e8] sm:$0xff] }
 0x248   :  { %3554 = vxpose.xlu1.c.b16.end [8/8] %v2825_v17, 128  ;;  %v5028_v13 = vpop.f32.mrb[51].mxu1  ;;  %v7777_v17 = vld [vmem:[%s10607_s0 + $0x5e8] sm:$0xff]  }
 0x249   :  { %3298 = vxpose.xlu0.c.b16.end [8/8] %v2697_v11, 128  ;;  %v10145_v4 = vpop.trf.xlu1  ;;  %2520 = vst.msk [vmem:[#allocation2 + $0x3d8] sm:$0xff] %vm1305_vm0, %v7777_v17  ;;  %v7778_v23 = vld [vmem:[%s10608_s1 + $0x7a0] ss:$8 sps:$4 sm:$0xff]  }
 0x24a   :  { %v10148_v15 = vpop.trf.xlu0  ;;  %5922 = vmatmul.mubr.bf16.gmra.mrb[120].mxu0 %v9994_v10 }
 0x24b   :  { %5294 = vmatmul.mubr.bf16.gmra.mrb[120].mxu1 %v10000_v6  ;;  %5927 = vmatprep.mubr.bf16.mxu0 %v10017_v22  ;;  %v5659_v18 = vpop.f32.mrb[52].mxu0  ;;  %v2702_v6 = vld [vmem:[#allocation2 + $0x398] sm:$0xff] }
 0x24c   :  { %3595 = vxpose.xlu1.c.b16.start [1/8] %v2828_v57, 128  ;;  %5299 = vmatprep.mubr.bf16.mxu1 %v10020_v55  ;;  %v5031_v10 = vpop.f32.mrb[52].mxu1  ;;  %v5660_v39 = vpop.f32.mrb[53].mxu0  ;;  %v7770_v22 = vld [vmem:[%s10608_s1 + $0x794] ss:$8 sps:$4 sm:$0xff]   ;;  %v7783_v57 = vld [vmem:[%s10608_s1 + $0x3a4] ss:$8 sps:$4 sm:$0xff]  }
 0x24d   :  { %3339 = vxpose.xlu0.c.b16.start [1/8] %v2700_v36, 128  ;;  %v10162_v12 = vpop.trf.xlu1  ;;  %v5032_v35 = vpop.f32.mrb[53].mxu1  ;;  %6008 = vmatprep.subr.bf16.mxu0 %v7770_v22  ;;  %v7785_v36 = vld [vmem:[%s10607_s0 + $0x5f0] sm:$0xff]   ;;  %v2708_v18 = vld [vmem:[#allocation2 + $0x3c8] sm:$0xff]  ;;  %v7786_v10 = vld [vmem:[%s10607_s0 + $0x7f8] sm:$0xff]  }
 0x24e   :  { %v10168_v42 = vpop.trf.xlu0  ;;  %v5661_v55 = vpop.f32.mrb[54].mxu0  ;;  %6009 = vmatpush1.bf16.msra.mxu0 %v7768_v43  ;;  %5382 = vmatprep.subr.bf16.mxu1 %v7783_v57  ;;  %2521 = vst.msk [vmem:[#allocation2 + $0x3e8] sm:$0xff] %vm1305_vm0, %v7785_v36  ;;  %v7787_v35 = vld [vmem:[%s10607_s0 + $0x5f8] sm:$0xff]   ;;  %2586 = vst.msk [vmem:[#allocation2 + $0x7f8] sm:$0xff] %vm1305_vm0, %v7786_v10 }
 0x24f   :  { %v5033_v41 = vpop.f32.mrb[54].mxu1  ;;  %v5662_v7 = vpop.f32.mrb[55].mxu0  ;;  %5383 = vmatpush1.bf16.msra.mxu1 %v7781_v63  ;;  %2522 = vst.msk [vmem:[#allocation2 + $0x3f8] sm:$0xff] %vm1305_vm0, %v7787_v35  ;;  %v7788_v43 = vld [vmem:[%s10608_s1 + $0x7b0] ss:$8 sps:$4 sm:$0xff]  }
 0x250   :  { %3596 = vxpose.xlu1.c.b16.cont [2/8] %v2830_v25, 128  ;;  %v5034_v21 = vpop.f32.mrb[55].mxu1  ;;  %v2710_v55 = vld [vmem:[#allocation2 + $0x3d8] sm:$0xff] }
 0x251   :  { %3340 = vxpose.xlu0.c.b16.cont [2/8] %v2702_v6, 128  ;;  %v3507_v46 = vpop.trf.xlu1  ;;  %v7791_v21 = vld [vmem:[%s10608_s1 + $0x3b0] ss:$8 sps:$4 sm:$0xff]  }
 0x252   :  { %v3251_v16 = vpop.trf.xlu0  ;;  %5928 = vmatmul.mubr.bf16.gmra.mrb[32].mxu0 %v3507_v46  ;;  %v7794_v46 = vld [vmem:[%s10607_s0 + $0x780] sm:$0xff]   ;;  %v7806_v57 = vld [vmem:[%s10607_s0 + $0x798] sm:$0xff]  }
 0x253   :  { %5300 = vmatmul.mubr.bf16.gmra.mrb[32].mxu1 %v3251_v16  ;;  %5937 = vmatprep.mubr.bf16.mxu0 %v10034_v58  ;;  %v5665_v54 = vpop.f32.mrb[56].mxu0  ;;  %v7780_v58 = vld [vmem:[%s10608_s1 + $0x7a4] ss:$8 sps:$4 sm:$0xff]   ;;  %2571 = vst.msk [vmem:[#allocation2 + $0x708] sm:$0xff] %vm1305_vm0, %v7794_v46  ;;  %2574 = vst.msk [vmem:[#allocation2 + $0x738] sm:$0xff] %vm1305_vm0, %v7806_v57 }
 0x254   :  { %3597 = vxpose.xlu1.c.b16.cont [3/8] %v2832_v20, 128  ;;  %5309 = vmatprep.mubr.bf16.mxu1 %v10040_v37  ;;  %v5037_v14 = vpop.f32.mrb[56].mxu1  ;;  %v5666_v38 = vpop.f32.mrb[57].mxu0  ;;  %v7793_v20 = vld [vmem:[%s10608_s1 + $0x3b4] ss:$8 sps:$4 sm:$0xff]   ;;  %v7795_v54 = vld [vmem:[%s10607_s0 + $0x580] sm:$0xff]  }
 0x255   :  { %3341 = vxpose.xlu0.c.b16.cont [3/8] %v2704_v50, 128  ;;  %v3508_v52 = vpop.trf.xlu1  ;;  %v5038_v11 = vpop.f32.mrb[57].mxu1  ;;  %6010 = vmatprep.subr.bf16.mxu0 %v7780_v58  ;;  %v2712_v56 = vld [vmem:[#allocation2 + $0x3e8] sm:$0xff]  ;;  %2507 = vst.msk [vmem:[#allocation2 + $0x308] sm:$0xff] %vm1305_vm0, %v7795_v54  ;;  %v2842_v17 = vld [vmem:[#allocation2 + $0x7f8] sm:$0xff] }
 0x256   :  { %v3252_v5 = vpop.trf.xlu0  ;;  %v5667_v37 = vpop.f32.mrb[58].mxu0  ;;  %6011 = vmatpush1.bf16.msra.mxu0 %v7778_v23  ;;  %5384 = vmatprep.subr.bf16.mxu1 %v7793_v20  ;;  %v7796_v14 = vld [vmem:[%s10607_s0 + $0x788] sm:$0xff]   ;;  %v7808_v36 = vld [vmem:[%s10608_s1 + $0x7d0] ss:$8 sps:$4 sm:$0xff]  }
 0x257   :  { %v5039_v2 = vpop.f32.mrb[58].mxu1  ;;  %v5668_v3 = vpop.f32.mrb[59].mxu0  ;;  %5385 = vmatpush1.bf16.msra.mxu1 %v7791_v21  ;;  %v7797_v38 = vld [vmem:[%s10607_s0 + $0x588] sm:$0xff]   ;;  %2572 = vst.msk [vmem:[#allocation2 + $0x718] sm:$0xff] %vm1305_vm0, %v7796_v14 }
 0x258   :  { %3598 = vxpose.xlu1.c.b16.cont [4/8] %v2834_v45, 128  ;;  %v5040_v8 = vpop.f32.mrb[59].mxu1  ;;  %2508 = vst.msk [vmem:[#allocation2 + $0x318] sm:$0xff] %vm1305_vm0, %v7797_v38  ;;  %v7798_v11 = vld [vmem:[%s10608_s1 + $0x7c0] ss:$8 sps:$4 sm:$0xff]   ;;  %v7803_v58 = vld [vmem:[%s10608_s1 + $0x3c4] ss:$8 sps:$4 sm:$0xff]  }
 0x259   :  { %3342 = vxpose.xlu0.c.b16.cont [4/8] %v2706_v49, 128  ;;  %v3509_v13 = vpop.trf.xlu1  ;;  %v7801_v49 = vld [vmem:[%s10608_s1 + $0x3c0] ss:$8 sps:$4 sm:$0xff]   ;;  %5386 = vmatprep.subr.bf16.mxu1 %v7803_v58  ;;  %v7805_v3 = vld [vmem:[%s10607_s0 + $0x590] sm:$0xff]   ;;  %v7807_v8 = vld [vmem:[%s10607_s0 + $0x598] sm:$0xff]  }
 0x25a   :  { %v3253_v31 = vpop.trf.xlu0  ;;  %5938 = vmatmul.mubr.bf16.gmra.mrb[36].mxu0 %v3508_v52  ;;  %v2714_v52 = vld [vmem:[#allocation2 + $0x3f8] sm:$0xff]  ;;  %v2812_v63 = vld [vmem:[#allocation2 + $0x708] sm:$0xff]  ;;  %2509 = vst.msk [vmem:[#allocation2 + $0x328] sm:$0xff] %vm1305_vm0, %v7805_v3  ;;  %2510 = vst.msk [vmem:[#allocation2 + $0x338] sm:$0xff] %vm1305_vm0, %v7807_v8 }
 0x25b   :  { %5310 = vmatmul.mubr.bf16.gmra.mrb[36].mxu1 %v3252_v5  ;;  %5947 = vmatprep.mubr.bf16.mxu0 %v10057_v61  ;;  %v5671_v19 = vpop.f32.mrb[60].mxu0  ;;  %v2838_v61 = vld [vmem:[#allocation2 + $0x7d8] sm:$0xff]  ;;  %v7804_v5 = vld [vmem:[%s10607_s0 + $0x790] sm:$0xff]  }
 0x25c   :  { %3599 = vxpose.xlu1.c.b16.cont [5/8] %v2836_v47, 128  ;;  %5319 = vmatprep.mubr.bf16.mxu1 %v10060_v1  ;;  %v5043_v39 = vpop.f32.mrb[60].mxu1  ;;  %v5672_v25 = vpop.f32.mrb[61].mxu0  ;;  %v7790_v1 = vld [vmem:[%s10608_s1 + $0x7b4] ss:$8 sps:$4 sm:$0xff]   ;;  %2573 = vst.msk [vmem:[#allocation2 + $0x728] sm:$0xff] %vm1305_vm0, %v7804_v5  ;;  %v2684_v23 = vld [vmem:[#allocation2 + $0x308] sm:$0xff] }
 0x25d   :  { %3343 = vxpose.xlu0.c.b16.cont [5/8] %v2708_v18, 128  ;;  %v3510_v6 = vpop.trf.xlu1  ;;  %v5044_v22 = vpop.f32.mrb[61].mxu1  ;;  %6012 = vmatprep.subr.bf16.mxu0 %v7790_v1  ;;  %v7813_v18 = vld [vmem:[%s10608_s1 + $0x3d4] ss:$8 sps:$4 sm:$0xff]   ;;  %v7814_v19 = vld [vmem:[%s10607_s0 + $0x7a0] sm:$0xff]  }
 0x25e   :  { %v3254_v53 = vpop.trf.xlu0  ;;  %v5673_v40 = vpop.f32.mrb[62].mxu0  ;;  %6013 = vmatpush1.bf16.msra.mxu0 %v7788_v43  ;;  %5387 = vmatpush1.bf16.msra.mxu1 %v7801_v49  ;;  %2575 = vst.msk [vmem:[#allocation2 + $0x748] sm:$0xff] %vm1305_vm0, %v7814_v19  ;;  %v7815_v25 = vld [vmem:[%s10607_s0 + $0x5a0] sm:$0xff]   ;;  %v7816_v22 = vld [vmem:[%s10607_s0 + $0x7a8] sm:$0xff]   ;;  %v7824_v43 = vld [vmem:[%s10607_s0 + $0x7b0] sm:$0xff]  }
 0x25f   :  { %v5045_v41 = vpop.f32.mrb[62].mxu1  ;;  %v5674_v7 = vpop.f32.mrb[63].mxu0  ;;  %v2686_v47 = vld [vmem:[#allocation2 + $0x318] sm:$0xff]  ;;  %5388 = vmatprep.subr.bf16.mxu1 %v7813_v18  ;;  %2511 = vst.msk [vmem:[#allocation2 + $0x348] sm:$0xff] %vm1305_vm0, %v7815_v25  ;;  %2576 = vst.msk [vmem:[#allocation2 + $0x758] sm:$0xff] %vm1305_vm0, %v7816_v22 }
 0x260   :  { %3600 = vxpose.xlu1.c.b16.cont [6/8] %v2838_v61, 128  ;;  %v5046_v29 = vpop.f32.mrb[63].mxu1  ;;  %v7817_v61 = vld [vmem:[%s10607_s0 + $0x5a8] sm:$0xff]   ;;  %2577 = vst.msk [vmem:[#allocation2 + $0x768] sm:$0xff] %vm1305_vm0, %v7824_v43  ;;  %v7831_v49 = vld [vmem:[%s10608_s1 + $0x3f0] ss:$8 sps:$4 sm:$0xff]  }
 0x261   :  { %3344 = vxpose.xlu0.c.b16.cont [6/8] %v2710_v55, 128  ;;  %v10242_v50 = vpop.trf.xlu1  ;;  %v2818_v55 = vld [vmem:[#allocation2 + $0x738] sm:$0xff]  ;;  %2512 = vst.msk [vmem:[#allocation2 + $0x358] sm:$0xff] %vm1305_vm0, %v7817_v61  ;;  %v7818_v1 = vld [vmem:[%s10608_s1 + $0x7e0] ss:$8 sps:$4 sm:$0xff]   ;;  %v7823_v7 = vld [vmem:[%s10608_s1 + $0x3e4] ss:$8 sps:$4 sm:$0xff]  }
 0x262   :  { %v10244_v16 = vpop.trf.xlu0  ;;  %5948 = vmatmul.mubr.bf16.gmra.mrb[40].mxu0 %v3509_v13  ;;  %v2814_v13 = vld [vmem:[#allocation2 + $0x718] sm:$0xff]  ;;  %v7821_v41 = vld [vmem:[%s10608_s1 + $0x3e0] ss:$8 sps:$4 sm:$0xff]   ;;  %v7825_v29 = vld [vmem:[%s10607_s0 + $0x5b0] sm:$0xff]  }
 0x263   :  { %5320 = vmatmul.mubr.bf16.gmra.mrb[40].mxu1 %v3253_v31  ;;  %5957 = vmatprep.mubr.bf16.mxu0 %v10080_v44  ;;  %v7811_v31 = vld [vmem:[%s10608_s1 + $0x3d0] ss:$8 sps:$4 sm:$0xff]   ;;  %v2816_v10 = vld [vmem:[#allocation2 + $0x728] sm:$0xff]  ;;  %2513 = vst.msk [vmem:[#allocation2 + $0x368] sm:$0xff] %vm1305_vm0, %v7825_v29 }
 0x264   :  { %3601 = vxpose.xlu1.c.b16.cont [7/8] %v2840_v0, 128  ;;  %5329 = vmatprep.mubr.bf16.mxu1 %v10088_v9  ;;  %v7800_v9 = vld [vmem:[%s10608_s1 + $0x7c4] ss:$8 sps:$4 sm:$0xff]   ;;  %v7826_v0 = vld [vmem:[%s10607_s0 + $0x7b8] sm:$0xff]  }
 0x265   :  { %3345 = vxpose.xlu0.c.b16.cont [7/8] %v2712_v56, 128  ;;  %v10259_v45 = vpop.trf.xlu1  ;;  %6014 = vmatprep.subr.bf16.mxu0 %v7800_v9  ;;  %v2820_v21 = vld [vmem:[#allocation2 + $0x748] sm:$0xff]  ;;  %v7827_v56 = vld [vmem:[%s10607_s0 + $0x5b8] sm:$0xff]   ;;  %2578 = vst.msk [vmem:[#allocation2 + $0x778] sm:$0xff] %vm1305_vm0, %v7826_v0 }
 0x266   :  { %v10262_v44 = vpop.trf.xlu0  ;;  %6015 = vmatpush1.bf16.msra.mxu0 %v7798_v11  ;;  %5389 = vmatpush1.bf16.msra.mxu1 %v7811_v31  ;;  %2514 = vst.msk [vmem:[#allocation2 + $0x378] sm:$0xff] %vm1305_vm0, %v7827_v56 }
 0x267   :  { %5390 = vmatprep.subr.bf16.mxu1 %v7823_v7 }
 0x268   :  { %3602 = vxpose.xlu1.c.b16.end [8/8] %v2842_v17, 128  ;;  %v2694_v17 = vld [vmem:[#allocation2 + $0x358] sm:$0xff] }
 0x269   :  { %3346 = vxpose.xlu0.c.b16.end [8/8] %v2714_v52, 128  ;;  %v10280_v37 = vpop.trf.xlu1 }
 0x26a   :  { %v10282_v2 = vpop.trf.xlu0  ;;  %5958 = vmatmul.mubr.bf16.gmra.mrb[124].mxu0 %v3510_v6  ;;  %v2688_v6 = vld [vmem:[#allocation2 + $0x328] sm:$0xff]  ;;  %5391 = vmatpush1.bf16.msra.mxu1 %v7821_v41 }
 0x26b   :  { %5330 = vmatmul.mubr.bf16.gmra.mrb[124].mxu1 %v3254_v53  ;;  %5965 = vmatprep.mubr.bf16.mxu0 %v10103_v51  ;;  %v2690_v53 = vld [vmem:[#allocation2 + $0x338] sm:$0xff] }
 0x26c   :  { %3563 = vxpose.xlu1.c.b16.start [1/8] %v2812_v63, 128  ;;  %5337 = vmatprep.mubr.bf16.mxu1 %v10108_v24  ;;  %v7810_v24 = vld [vmem:[%s10608_s1 + $0x7d4] ss:$8 sps:$4 sm:$0xff]  }
 0x26d   :  { %3307 = vxpose.xlu0.c.b16.start [1/8] %v2684_v23, 128  ;;  %v10297_v60 = vpop.trf.xlu1  ;;  %6016 = vmatprep.subr.bf16.mxu0 %v7810_v24 }
 0x26e   :  { %v10300_v51 = vpop.trf.xlu0  ;;  %6017 = vmatpush1.bf16.msra.mxu0 %v7808_v36 }
 0x270   :  { %3564 = vxpose.xlu1.c.b16.cont [2/8] %v2814_v13, 128 }
 0x271   :  { %3308 = vxpose.xlu0.c.b16.cont [2/8] %v2686_v47, 128 }
 0x272   :  { %v10318_v39 = vpop.trf.xlu1  ;;  %5966 = vmatmul.mubr.bf16.gmra.mrb[128].mxu0 %v10242_v50  ;;  %v2692_v50 = vld [vmem:[#allocation2 + $0x348] sm:$0xff] }
 0x273   :  { %v10325_v35 = vpop.trf.xlu0  ;;  %5338 = vmatmul.mubr.bf16.gmra.mrb[128].mxu1 %v10244_v16  ;;  %5971 = vmatprep.mubr.bf16.mxu0 %v10122_v59 }
 0x274   :  { %3565 = vxpose.xlu1.c.b16.cont [3/8] %v2816_v10, 128  ;;  %5343 = vmatprep.mubr.bf16.mxu1 %v10128_v28  ;;  %v7820_v28 = vld [vmem:[%s10608_s1 + $0x7e4] ss:$8 sps:$4 sm:$0xff]  }
 0x275   :  { %3309 = vxpose.xlu0.c.b16.cont [3/8] %v2688_v6, 128  ;;  %6018 = vmatprep.subr.bf16.mxu0 %v7820_v28 }
 0x276   :  { %v10338_v59 = vpop.trf.xlu1  ;;  %6019 = vmatpush1.bf16.msra.mxu0 %v7818_v1 }
 0x277   :  { %v10344_v40 = vpop.trf.xlu0 }
 0x278   :  { %3566 = vxpose.xlu1.c.b16.cont [4/8] %v2818_v55, 128 }
 0x279   :  { %3310 = vxpose.xlu0.c.b16.cont [4/8] %v2690_v53, 128 }
 0x27a   :  { %v10358_v20 = vpop.trf.xlu1  ;;  %5972 = vmatmul.mubr.bf16.gmra.mrb[132].mxu0 %v10259_v45 }
 0x27b   :  { %v10365_v46 = vpop.trf.xlu0  ;;  %5344 = vmatmul.mubr.bf16.gmra.mrb[132].mxu1 %v10262_v44  ;;  %5977 = vmatprep.mubr.bf16.mxu0 %v10145_v4  ;;  %v2822_v4 = vld [vmem:[#allocation2 + $0x758] sm:$0xff] }
 0x27c   :  { %3567 = vxpose.xlu1.c.b16.cont [5/8] %v2820_v21, 128  ;;  %5349 = vmatprep.mubr.bf16.mxu1 %v10148_v15  ;;  %v10373_v16 = vpop.f32.mrb[64].mxu0  ;;  %v7830_v44 = vld [vmem:[%s10608_s1 + $0x7f4] ss:$8 sps:$4 sm:$0xff]  }
 0x27d   :  { %3311 = vxpose.xlu0.c.b16.cont [5/8] %v2692_v50, 128  ;;  %v5112_v54 = vpop.f32.mrb[64].mxu1  ;;  %v10379_v14 = vpop.f32.mrb[65].mxu0  ;;  %6020 = vmatprep.subr.bf16.mxu0 %v7830_v44 }
 0x27e   :  { %v10382_v38 = vpop.trf.xlu1  ;;  %v10385_v15 = vadd.f32 %v5112_v54, %v9772_v26  ;;  %v5114_v45 = vpop.f32.mrb[65].mxu1  ;;  %v7833_v26 = vld [vmem:[%s10608_s1 + $0x3f4] ss:$8 sps:$4 sm:$0xff]  }
 0x27f   :  { %v10391_v52 = vpop.trf.xlu0  ;;  %v10394_v9 = vadd.f32 %v5114_v45, %v9782_v48  ;;  %v5744_v11 = vpop.f32.mrb[66].mxu0 }
 0x280   :  { %3568 = vxpose.xlu1.c.b16.cont [6/8] %v2822_v4, 128  ;;  %v5116_v58 = vpop.f32.mrb[66].mxu1  ;;  %v5745_v5 = vpop.f32.mrb[67].mxu0 }
 0x281   :  { %11 = vsyncpa [#allocation4], 0  ;;  %3312 = vxpose.xlu0.c.b16.cont [6/8] %v2694_v17, 128  ;;  %v5117_v63 = vpop.f32.mrb[67].mxu1  ;;  %v2824_v3 = vld [vmem:[#allocation2 + $0x768] sm:$0xff]  ;;  %v7828_v48 = vld [vmem:[%s10608_s1 + $0x7f0] ss:$8 sps:$4 sm:$0xff]   ;;  %5392 = vmatprep.subr.bf16.mxu1 %v7833_v26 }
 0x282   :  { %v10405_v23 = vpop.trf.xlu1  ;;  %5978 = vmatmul.mubr.bf16.gmra.mrb[136].mxu0 %v10280_v37  ;;  %5393 = vmatpush1.bf16.msra.mxu1 %v7831_v49  ;;  %v2696_v8 = vld [vmem:[#allocation2 + $0x368] sm:$0xff]  ;;  %v2826_v36 = vld [vmem:[#allocation2 + $0x778] sm:$0xff]  ;;  %vm6201_vm1 = vcmask 1040384  }
 0x283   :  { %v10408_v57 = vpop.trf.xlu0  ;;  %5350 = vmatmul.mubr.bf16.gmra.mrb[136].mxu1 %v10282_v2  ;;  %5983 = vmatprep.mubr.bf16.mxu0 %v10162_v12  ;;  %v2698_v18 = vld [vmem:[#allocation2 + $0x378] sm:$0xff] }
 0x284   :  { %3569 = vxpose.xlu1.c.b16.cont [7/8] %v2824_v3, 128  ;;  %5355 = vmatprep.mubr.bf16.mxu1 %v10168_v42  ;;  %v5748_v13 = vpop.f32.mrb[68].mxu0 }
 0x285   :  { %3313 = vxpose.xlu0.c.b16.cont [7/8] %v2696_v8, 128  ;;  %v5120_v47 = vpop.f32.mrb[68].mxu1  ;;  %v5749_v24 = vpop.f32.mrb[69].mxu0  ;;  %6021 = vmatpush1.bf16.msra.mxu0 %v7828_v48 }
 0x286   :  { %v10413_v31 = vpop.trf.xlu1  ;;  %v5121_v37 = vpop.f32.mrb[69].mxu1 }
 0x287   :  { %v10415_v19 = vpop.trf.xlu0  ;;  %v5750_v10 = vpop.f32.mrb[70].mxu0 }
 0x288   :  { %3570 = vxpose.xlu1.c.b16.end [8/8] %v2826_v36, 128  ;;  %v5122_v2 = vpop.f32.mrb[70].mxu1  ;;  %v5751_v12 = vpop.f32.mrb[71].mxu0 }
 0x289   :  { %3314 = vxpose.xlu0.c.b16.end [8/8] %v2698_v18, 128  ;;  %v5123_v25 = vpop.f32.mrb[71].mxu1 }
 0x28a   :  { %v10417_v6 = vpop.trf.xlu1  ;;  %5984 = vmatmul.mubr.bf16.gmra.mrb[140].mxu0 %v10297_v60 }
 0x28b   :  { %v10420_v42 = vpop.trf.xlu0  ;;  %5356 = vmatmul.mubr.bf16.gmra.mrb[140].mxu1 %v10300_v51  ;;  %6022 = vmatprep.mubr.bf16.mxu0 %v10318_v39 }
 0x28c   :  { %5394 = vmatprep.mubr.bf16.mxu1 %v10325_v35  ;;  %v5754_v22 = vpop.f32.mrb[72].mxu0 }
 0x28d   :  { %v5126_v61 = vpop.f32.mrb[72].mxu1  ;;  %v5755_v55 = vpop.f32.mrb[73].mxu0 }
 0x28e   :  { %v10425_v53 = vpop.trf.xlu1  ;;  %v5127_v28 = vpop.f32.mrb[73].mxu1 }
 0x28f   :  { %v10427_v1 = vpop.trf.xlu0  ;;  %v5128_v41 = vpop.f32.mrb[74].mxu1 }
 0x290   :  { %v5756_v7 = vpop.f32.mrb[74].mxu0  ;;  %v5129_v43 = vpop.f32.mrb[75].mxu1 }
 0x291   :  { %v5757_v60 = vpop.f32.mrb[75].mxu0 }
 0x292   :  { %v3555_v21 = vpop.trf.xlu1 }
 0x293   :  { %v3299_v29 = vpop.trf.xlu0  ;;  %6023 = vmatmul.mubr.bf16.vlgmr.msra.gmra.mrb[0].mxu0 %v3555_v21 }
 0x294   :  { %5395 = vmatmul.mubr.bf16.vlgmr.msra.gmra.mrb[0].mxu1 %v3299_v29  ;;  %6032 = vmatprep.mubr.bf16.mxu0 %v10338_v59  ;;  %v5760_v51 = vpop.f32.mrb[76].mxu0 }
 0x295   :  { %5404 = vmatprep.mubr.bf16.mxu1 %v10344_v40  ;;  %v5132_v39 = vpop.f32.mrb[76].mxu1  ;;  %v5761_v35 = vpop.f32.mrb[77].mxu0 }
 0x296   :  { %v3556_v50 = vpop.trf.xlu1  ;;  %v5133_v0 = vpop.f32.mrb[77].mxu1 }
 0x297   :  { %v3300_v56 = vpop.trf.xlu0  ;;  %v5134_v54 = vpop.f32.mrb[78].mxu1 }
 0x298   :  { %v5762_v4 = vpop.f32.mrb[78].mxu0  ;;  %v5135_v45 = vpop.f32.mrb[79].mxu1 }
 0x299   :  { %v5763_v17 = vpop.f32.mrb[79].mxu0 }
 0x29a   :  { %v3557_v44 = vpop.trf.xlu1 }
 0x29b   :  { %v3301_v11 = vpop.trf.xlu0  ;;  %6033 = vmatmul.mubr.bf16.gmra.mrb[4].mxu0 %v3556_v50 }
 0x29c   :  { %5405 = vmatmul.mubr.bf16.gmra.mrb[4].mxu1 %v3300_v56  ;;  %6042 = vmatprep.mubr.bf16.mxu0 %v10358_v20  ;;  %v5766_v49 = vpop.f32.mrb[80].mxu0 }
 0x29d   :  { %5414 = vmatprep.mubr.bf16.mxu1 %v10365_v46  ;;  %v5138_v59 = vpop.f32.mrb[80].mxu1  ;;  %v5767_v40 = vpop.f32.mrb[81].mxu0 }
 0x29e   :  { %v3558_v26 = vpop.trf.xlu1  ;;  %v5139_v58 = vpop.f32.mrb[81].mxu1 }
 0x29f   :  { %v3302_v5 = vpop.trf.xlu0  ;;  %v5140_v63 = vpop.f32.mrb[82].mxu1 }
 0x2a0   :  { %v5768_v3 = vpop.f32.mrb[82].mxu0  ;;  %v5141_v48 = vpop.f32.mrb[83].mxu1 }
 0x2a1   :  { %v5769_v8 = vpop.f32.mrb[83].mxu0 }
 0x2a2   :  { %v3559_v13 = vpop.trf.xlu1 }
 0x2a3   :  { %v3303_v47 = vpop.trf.xlu0  ;;  %6043 = vmatmul.mubr.bf16.gmra.mrb[8].mxu0 %v3557_v44 }
 0x2a4   :  { %5415 = vmatmul.mubr.bf16.gmra.mrb[8].mxu1 %v3301_v11  ;;  %6052 = vmatprep.mubr.bf16.mxu0 %v10382_v38 }
 0x2a5   :  { %5424 = vmatprep.mubr.bf16.mxu1 %v10391_v52 }
 0x2a6   :  { %v3560_v20 = vpop.trf.xlu1 }
 0x2a7   :  { %v3304_v24 = vpop.trf.xlu0 }
 0x2aa   :  { %v3561_v46 = vpop.trf.xlu1 }
 0x2ab   :  { %v3305_v36 = vpop.trf.xlu0  ;;  %6053 = vmatmul.mubr.bf16.gmra.mrb[144].mxu0 %v3558_v26 }
 0x2ac   :  { %5425 = vmatmul.mubr.bf16.gmra.mrb[144].mxu1 %v3302_v5  ;;  %6060 = vmatprep.mubr.bf16.mxu0 %v10405_v23 }
 0x2ad   :  { %5432 = vmatprep.mubr.bf16.mxu1 %v10408_v57 }
 0x2ae   :  { %v3562_v37 = vpop.trf.xlu1 }
 0x2af   :  { %v3306_v18 = vpop.trf.xlu0 }
 0x2b2   :  { %v3603_v10 = vpop.trf.xlu1 }
 0x2b3   :  { %v3347_v2 = vpop.trf.xlu0  ;;  %6061 = vmatmul.mubr.bf16.gmra.mrb[148].mxu0 %v3559_v13 }
 0x2b4   :  { %5433 = vmatmul.mubr.bf16.gmra.mrb[148].mxu1 %v3303_v47  ;;  %6066 = vmatprep.mubr.bf16.mxu0 %v10413_v31 }
 0x2b5   :  { %5438 = vmatprep.mubr.bf16.mxu1 %v10415_v19 }
 0x2b6   :  { %v3604_v38 = vpop.trf.xlu1 }
 0x2b7   :  { %v3348_v52 = vpop.trf.xlu0 }
 0x2ba   :  { %v10439_v12 = vpop.trf.xlu1 }
 0x2bb   :  { %v10441_v25 = vpop.trf.xlu0  ;;  %6067 = vmatmul.mubr.bf16.gmra.mrb[152].mxu0 %v3560_v20 }
 0x2bc   :  { %5439 = vmatmul.mubr.bf16.gmra.mrb[152].mxu1 %v3304_v24  ;;  %6072 = vmatprep.mubr.bf16.mxu0 %v10417_v6  ;;  %v10444_v23 = vpop.f32.mrb[84].mxu0 }
 0x2bd   :  { %5444 = vmatprep.mubr.bf16.mxu1 %v10420_v42  ;;  %v5174_v57 = vpop.f32.mrb[84].mxu1  ;;  %v10447_v22 = vpop.f32.mrb[85].mxu0 }
 0x2be   :  { %v10449_v31 = vpop.trf.xlu1  ;;  %v10452_v19 = vadd.f32 %v5174_v57, %v10075_v32  ;;  %v5176_v61 = vpop.f32.mrb[85].mxu1 }
 0x2bf   :  { %v10454_v55 = vpop.trf.xlu0  ;;  %v10457_v28 = vadd.f32 %v5176_v61, %v10082_v62  ;;  %v5178_v41 = vpop.f32.mrb[86].mxu1 }
 0x2c0   :  { %v5806_v6 = vpop.f32.mrb[86].mxu0  ;;  %v5179_v7 = vpop.f32.mrb[87].mxu1 }
 0x2c1   :  { %v5807_v43 = vpop.f32.mrb[87].mxu0 }
 0x2c2   :  { %v10459_v60 = vpop.trf.xlu1 }
 0x2c3   :  { %v10461_v42 = vpop.trf.xlu0  ;;  %6073 = vmatmul.mubr.bf16.gmra.mrb[156].mxu0 %v3561_v46 }
 0x2c4   :  { %5445 = vmatmul.mubr.bf16.gmra.mrb[156].mxu1 %v3305_v36  ;;  %6078 = vmatprep.mubr.bf16.mxu0 %v10425_v53  ;;  %v5810_v32 = vpop.f32.mrb[88].mxu0 }
 0x2c5   :  { %5450 = vmatprep.mubr.bf16.mxu1 %v10427_v1  ;;  %v5182_v21 = vpop.f32.mrb[88].mxu1  ;;  %v5811_v29 = vpop.f32.mrb[89].mxu0 }
 0x2c6   :  { %v10465_v51 = vpop.trf.xlu1  ;;  %v5183_v62 = vpop.f32.mrb[89].mxu1 }
 0x2c7   :  { %v10467_v39 = vpop.trf.xlu0  ;;  %v5184_v35 = vpop.f32.mrb[90].mxu1 }
 0x2c8   :  { %v5812_v50 = vpop.f32.mrb[90].mxu0  ;;  %v5185_v0 = vpop.f32.mrb[91].mxu1 }
 0x2c9   :  { %v5813_v56 = vpop.f32.mrb[91].mxu0 }
 0x2ca   :  { %v10469_v54 = vpop.trf.xlu1 }
 0x2cb   :  { %v10471_v4 = vpop.trf.xlu0  ;;  %6079 = vmatmul.mubr.bf16.gmra.mrb[160].mxu0 %v3562_v37 }
 0x2cc   :  { %5451 = vmatmul.mubr.bf16.gmra.mrb[160].mxu1 %v3306_v18  ;;  %6084 = vmatprep.mubr.bf16.mxu0 %v3603_v10  ;;  %v5816_v53 = vpop.f32.mrb[92].mxu0 }
 0x2cd   :  { %5456 = vmatprep.mubr.bf16.mxu1 %v3347_v2  ;;  %v5188_v1 = vpop.f32.mrb[92].mxu1  ;;  %v5817_v45 = vpop.f32.mrb[93].mxu0 }
 0x2ce   :  { %v10473_v17 = vpop.trf.xlu1  ;;  %v5189_v44 = vpop.f32.mrb[93].mxu1 }
 0x2cf   :  { %v10475_v11 = vpop.trf.xlu0  ;;  %v5190_v49 = vpop.f32.mrb[94].mxu1 }
 0x2d0   :  { %v5818_v59 = vpop.f32.mrb[94].mxu0  ;;  %v5191_v40 = vpop.f32.mrb[95].mxu1 }
 0x2d1   :  { %v5819_v26 = vpop.f32.mrb[95].mxu0 }
 0x2d2   :  { %v3571_v58 = vpop.trf.xlu1 }
 0x2d3   :  { %v3315_v5 = vpop.trf.xlu0  ;;  %6085 = vmatmul.mubr.bf16.gmra.mrb[32].mxu0 %v3571_v58 }
 0x2d4   :  { %5457 = vmatmul.mubr.bf16.gmra.mrb[32].mxu1 %v3315_v5  ;;  %6094 = vmatprep.mubr.bf16.mxu0 %v3604_v38  ;;  %v5822_v63 = vpop.f32.mrb[96].mxu0 }
 0x2d5   :  { %5466 = vmatprep.mubr.bf16.mxu1 %v3348_v52  ;;  %v5194_v3 = vpop.f32.mrb[96].mxu1  ;;  %v5823_v48 = vpop.f32.mrb[97].mxu0 }
 0x2d6   :  { %v5195_v8 = vpop.f32.mrb[97].mxu1  ;;  %v5824_v13 = vpop.f32.mrb[98].mxu0 }
 0x2d7   :  { %v5196_v47 = vpop.f32.mrb[98].mxu1  ;;  %v5825_v20 = vpop.f32.mrb[99].mxu0 }
 0x2d8   :  { %v5197_v24 = vpop.f32.mrb[99].mxu1  ;;  %v3572_v46 = vpop.trf.xlu1 }
 0x2d9   :  { %v3316_v36 = vpop.trf.xlu0 }
 0x2db   :  { %6095 = vmatmul.mubr.bf16.gmra.mrb[36].mxu0 %v3572_v46 }
 0x2dc   :  { %5467 = vmatmul.mubr.bf16.gmra.mrb[36].mxu1 %v3316_v36  ;;  %6104 = vmatprep.mubr.bf16.mxu0 %v10439_v12  ;;  %v5828_v37 = vpop.f32.mrb[100].mxu0  ;;  %v3573_v41 = vpop.trf.xlu1 }
 0x2dd   :  { %5476 = vmatprep.mubr.bf16.mxu1 %v10441_v25  ;;  %v5200_v18 = vpop.f32.mrb[100].mxu1  ;;  %v5829_v10 = vpop.f32.mrb[101].mxu0 }
 0x2de   :  { %v5201_v2 = vpop.f32.mrb[101].mxu1  ;;  %v5830_v38 = vpop.f32.mrb[102].mxu0 }
 0x2df   :  { %v5202_v52 = vpop.f32.mrb[102].mxu1  ;;  %v5831_v57 = vpop.f32.mrb[103].mxu0 }
 0x2e0   :  { %v5203_v61 = vpop.f32.mrb[103].mxu1  ;;  %v3317_v6 = vpop.trf.xlu0 }
 0x2e1   :  { %v3574_v7 = vpop.trf.xlu1 }
 0x2e3   :  { %6105 = vmatmul.mubr.bf16.gmra.mrb[40].mxu0 %v3573_v41 }
 0x2e4   :  { %5477 = vmatmul.mubr.bf16.gmra.mrb[40].mxu1 %v3317_v6  ;;  %6114 = vmatprep.mubr.bf16.mxu0 %v10449_v31  ;;  %v3318_v12 = vpop.trf.xlu0 }
 0x2e5   :  { %5486 = vmatprep.mubr.bf16.mxu1 %v10454_v55  ;;  %v3575_v25 = vpop.trf.xlu1 }
 0x2e8   :  { %v3319_v43 = vpop.trf.xlu0 }
 0x2e9   :  { %v3576_v32 = vpop.trf.xlu1 }
 0x2eb   :  { %6115 = vmatmul.mubr.bf16.gmra.mrb[164].mxu0 %v3574_v7 }
 0x2ec   :  { %5487 = vmatmul.mubr.bf16.gmra.mrb[164].mxu1 %v3318_v12  ;;  %6122 = vmatprep.mubr.bf16.mxu0 %v10459_v60  ;;  %v3320_v31 = vpop.trf.xlu0 }
 0x2ed   :  { %5494 = vmatprep.mubr.bf16.mxu1 %v10461_v42  ;;  %v3577_v60 = vpop.trf.xlu1 }
 0x2f0   :  { %v3321_v56 = vpop.trf.xlu0 }
 0x2f3   :  { %6123 = vmatmul.mubr.bf16.gmra.mrb[168].mxu0 %v3575_v25 }
 0x2f4   :  { %5495 = vmatmul.mubr.bf16.gmra.mrb[168].mxu1 %v3319_v43  ;;  %6128 = vmatprep.mubr.bf16.mxu0 %v10465_v51  ;;  %v3322_v59 = vpop.trf.xlu0 }
 0x2f5   :  { %5500 = vmatprep.mubr.bf16.mxu1 %v10467_v39 }
 0x2fb   :  { %6129 = vmatmul.mubr.bf16.gmra.mrb[172].mxu0 %v3576_v32 }
 0x2fc   :  { %5501 = vmatmul.mubr.bf16.gmra.mrb[172].mxu1 %v3320_v31  ;;  %6134 = vmatprep.mubr.bf16.mxu0 %v10469_v54 }
 0x2fd   :  { %5506 = vmatprep.mubr.bf16.mxu1 %v10471_v4  ;;  %v10487_v55 = vpop.f32.mrb[104].mxu0  ;;  %v3578_v4 = vpop.trf.xlu1 }
 0x2fe   :  { %v5269_v42 = vpop.f32.mrb[104].mxu1  ;;  %v10489_v21 = vpop.f32.mrb[105].mxu0 }
 0x2ff   :  { %v10492_v29 = vadd.f32 %v5269_v42, %v10385_v15  ;;  %v5271_v51 = vpop.f32.mrb[105].mxu1  ;;  %v5901_v62 = vpop.f32.mrb[106].mxu0 }
 0x300   :  { %v10495_v39 = vadd.f32 %v5271_v51, %v10394_v9  ;;  %v5273_v35 = vpop.f32.mrb[106].mxu1  ;;  %v5902_v50 = vpop.f32.mrb[107].mxu0 }
 0x301   :  { %v5274_v0 = vpop.f32.mrb[107].mxu1 }
 0x303   :  { %6135 = vmatmul.mubr.bf16.gmra.mrb[176].mxu0 %v3577_v60 }
 0x304   :  { %5507 = vmatmul.mubr.bf16.gmra.mrb[176].mxu1 %v3321_v56  ;;  %6140 = vmatprep.mubr.bf16.mxu0 %v10473_v17 }
 0x305   :  { %5512 = vmatprep.mubr.bf16.mxu1 %v10475_v11  ;;  %v5905_v54 = vpop.f32.mrb[108].mxu0 }
 0x306   :  { %v5277_v53 = vpop.f32.mrb[108].mxu1  ;;  %v5906_v15 = vpop.f32.mrb[109].mxu0 }
 0x307   :  { %v5278_v1 = vpop.f32.mrb[109].mxu1  ;;  %v5907_v45 = vpop.f32.mrb[110].mxu0 }
 0x308   :  { %v5279_v44 = vpop.f32.mrb[110].mxu1  ;;  %v5908_v49 = vpop.f32.mrb[111].mxu0 }
 0x309   :  { %v5280_v9 = vpop.f32.mrb[111].mxu1 }
 0x30b   :  { %6141 = vmatmul.mubr.bf16.gmra.mrb[180].mxu0 %v3578_v4 }
 0x30c   :  { %5513 = vmatmul.mubr.bf16.gmra.mrb[180].mxu1 %v3322_v59 }
 0x30d   :  { %v5911_v40 = vpop.f32.mrb[112].mxu0 }
 0x30e   :  { %v5283_v26 = vpop.f32.mrb[112].mxu1  ;;  %v5912_v58 = vpop.f32.mrb[113].mxu0 }
 0x30f   :  { %v5284_v5 = vpop.f32.mrb[113].mxu1  ;;  %v5913_v63 = vpop.f32.mrb[114].mxu0 }
 0x310   :  { %v5285_v17 = vpop.f32.mrb[114].mxu1  ;;  %v5914_v3 = vpop.f32.mrb[115].mxu0 }
 0x311   :  { %v5286_v11 = vpop.f32.mrb[115].mxu1 }
 0x315   :  { %v5917_v48 = vpop.f32.mrb[116].mxu0 }
 0x316   :  { %v5289_v8 = vpop.f32.mrb[116].mxu1  ;;  %v5918_v13 = vpop.f32.mrb[117].mxu0 }
 0x317   :  { %v5290_v47 = vpop.f32.mrb[117].mxu1  ;;  %v5919_v20 = vpop.f32.mrb[118].mxu0 }
 0x318   :  { %v5291_v24 = vpop.f32.mrb[118].mxu1  ;;  %v5920_v46 = vpop.f32.mrb[119].mxu0 }
 0x319   :  { %v5292_v36 = vpop.f32.mrb[119].mxu1 }
 0x31d   :  { %v5923_v37 = vpop.f32.mrb[120].mxu0 }
 0x31e   :  { %v5295_v18 = vpop.f32.mrb[120].mxu1  ;;  %v5924_v10 = vpop.f32.mrb[121].mxu0  ;;  %v10512_v37 = vld [vmem:[%s10609_s2] ss:$0 sm:$0xff] }
 0x31f   :  { %v5296_v2 = vpop.f32.mrb[121].mxu1  ;;  %v5925_v38 = vpop.f32.mrb[122].mxu0 }
 0x320   :  { %v5297_v52 = vpop.f32.mrb[122].mxu1  ;;  %v5926_v57 = vpop.f32.mrb[123].mxu0 }
 0x321   :  { %v5298_v61 = vpop.f32.mrb[123].mxu1 }
 0x33d   :  { %v10499_v41 = vpop.f32.mrb[124].mxu0 }
 0x33e   :  { %v5331_v6 = vpop.f32.mrb[124].mxu1  ;;  %v10501_v7 = vpop.f32.mrb[125].mxu0 }
 0x33f   :  { %v10504_v12 = vadd.f32 %v5331_v6, %v10452_v19  ;;  %v5333_v25 = vpop.f32.mrb[125].mxu1  ;;  %v5963_v43 = vpop.f32.mrb[126].mxu0 }
 0x340   :  { %v10507_v32 = vadd.f32 %v5333_v25, %v10457_v28  ;;  %v5335_v31 = vpop.f32.mrb[126].mxu1  ;;  %v5964_v60 = vpop.f32.mrb[127].mxu0 }
 0x341   :  { %v5336_v42 = vpop.f32.mrb[127].mxu1 }
 0x345   :  { %v5967_v51 = vpop.f32.mrb[128].mxu0 }
 0x346   :  { %v5339_v62 = vpop.f32.mrb[128].mxu1  ;;  %v5968_v35 = vpop.f32.mrb[129].mxu0 }
 0x347   :  { %v5340_v50 = vpop.f32.mrb[129].mxu1  ;;  %v5969_v0 = vpop.f32.mrb[130].mxu0 }
 0x348   :  { %v5341_v56 = vpop.f32.mrb[130].mxu1  ;;  %v5970_v54 = vpop.f32.mrb[131].mxu0 }
 0x349   :  { %v5342_v4 = vpop.f32.mrb[131].mxu1 }
 0x34d   :  { %v5973_v53 = vpop.f32.mrb[132].mxu0 }
 0x34e   :  { %v5345_v15 = vpop.f32.mrb[132].mxu1  ;;  %v5974_v19 = vpop.f32.mrb[133].mxu0 }
 0x34f   :  { %v5346_v1 = vpop.f32.mrb[133].mxu1  ;;  %v5975_v45 = vpop.f32.mrb[134].mxu0 }
 0x350   :  { %v5347_v44 = vpop.f32.mrb[134].mxu1  ;;  %v5976_v49 = vpop.f32.mrb[135].mxu0 }
 0x351   :  { %v5348_v28 = vpop.f32.mrb[135].mxu1 }
 0x355   :  { %v5979_v9 = vpop.f32.mrb[136].mxu0 }
 0x356   :  { %v5351_v59 = vpop.f32.mrb[136].mxu1  ;;  %v5980_v40 = vpop.f32.mrb[137].mxu0 }
 0x357   :  { %v5352_v26 = vpop.f32.mrb[137].mxu1  ;;  %v5981_v58 = vpop.f32.mrb[138].mxu0 }
 0x358   :  { %v5353_v5 = vpop.f32.mrb[138].mxu1  ;;  %v5982_v63 = vpop.f32.mrb[139].mxu0 }
 0x359   :  { %v5354_v17 = vpop.f32.mrb[139].mxu1 }
 0x35d   :  { %v5985_v3 = vpop.f32.mrb[140].mxu0 }
 0x35e   :  { %v5357_v11 = vpop.f32.mrb[140].mxu1  ;;  %v5986_v48 = vpop.f32.mrb[141].mxu0 }
 0x35f   :  { %v5358_v8 = vpop.f32.mrb[141].mxu1  ;;  %v5987_v13 = vpop.f32.mrb[142].mxu0 }
 0x360   :  { %v5359_v47 = vpop.f32.mrb[142].mxu1  ;;  %v5988_v20 = vpop.f32.mrb[143].mxu0 }
 0x361   :  { %v5360_v24 = vpop.f32.mrb[143].mxu1 }
 0x366   :  { %v6024_v46 = vpop.f32.mrb[0].mxu0 }
 0x367   :  { %v5396_v36 = vpop.f32.mrb[0].mxu1  ;;  %v6026_v18 = vpop.f32.mrb[1].mxu0 }
 0x368   :  { %v7022_v10 = vadd.f32 %v6024_v46, %v5396_v36  ;;  %v5398_v2 = vpop.f32.mrb[1].mxu1  ;;  %v6028_v38 = vpop.f32.mrb[2].mxu0 }
 0x369   :  { %v7023_v52 = vadd.f32 %v6026_v18, %v5398_v2  ;;  %v5400_v57 = vpop.f32.mrb[2].mxu1  ;;  %v6030_v61 = vpop.f32.mrb[3].mxu0 }
 0x36a   :  { %v6154_v6 = vadd.f32 %v7022_v10, %v10512_v37  ;;  %v7024_v25 = vadd.f32 %v6028_v38, %v5400_v57  ;;  %v5402_v43 = vpop.f32.mrb[3].mxu1 }
 0x36b   :  { %v7025_v31 = vadd.f32 %v6030_v61, %v5402_v43 }
 0x36c   :  { %v6168_v60 = vmax.f32 %v6154_v6, 0.0  ;;  %v6155_v42 = vadd.f32 %v7024_v25, %v10512_v37 }
 0x36d   :  { %v6196_v51 = vadd.f32 %v7025_v31, %v7023_v52 }
 0x36e   :  { %6182 = vst [vmem:[%s10611_s4] sm:$0xff] %v6168_v60  ;;  %v6169_v62 = vmax.f32 %v6155_v42, 0.0  ;;  %v6034_v35 = vpop.f32.mrb[4].mxu0 }
 0x36f   :  { %v5406_v50 = vpop.f32.mrb[4].mxu1  ;;  %v6036_v0 = vpop.f32.mrb[5].mxu0 }
 0x370   :  { %6183 = vst [vmem:[%s10611_s4 + $0x8] sm:$0xff] %v6169_v62  ;;  %v7026_v56 = vadd.f32 %v6034_v35, %v5406_v50  ;;  %v5408_v54 = vpop.f32.mrb[5].mxu1  ;;  %v6038_v4 = vpop.f32.mrb[6].mxu0 }
 0x371   :  { %v7027_v53 = vadd.f32 %v6036_v0, %v5408_v54  ;;  %v5410_v15 = vpop.f32.mrb[6].mxu1  ;;  %v6040_v19 = vpop.f32.mrb[7].mxu0 }
 0x372   :  { %v6156_v1 = vadd.f32 %v7026_v56, %v10512_v37  ;;  %v7028_v45 = vadd.f32 %v6038_v4, %v5410_v15  ;;  %v5412_v44 = vpop.f32.mrb[7].mxu1 }
 0x373   :  { %v6197_v49 = vadd.f32 %v7027_v53, %v6196_v51  ;;  %v7029_v28 = vadd.f32 %v6040_v19, %v5412_v44 }
 0x374   :  { %v6170_v9 = vmax.f32 %v6156_v1, 0.0  ;;  %v6157_v59 = vadd.f32 %v7028_v45, %v10512_v37 }
 0x375   :  { %v6198_v40 = vadd.f32 %v7029_v28, %v6197_v49 }
 0x376   :  { %6184 = vst [vmem:[%s10611_s4 + $0x10] sm:$0xff] %v6170_v9  ;;  %v6171_v26 = vmax.f32 %v6157_v59, 0.0  ;;  %v6044_v58 = vpop.f32.mrb[8].mxu0 }
 0x377   :  { %v5416_v5 = vpop.f32.mrb[8].mxu1  ;;  %v6046_v63 = vpop.f32.mrb[9].mxu0 }
 0x378   :  { %6185 = vst [vmem:[%s10611_s4 + $0x18] sm:$0xff] %v6171_v26  ;;  %v7030_v17 = vadd.f32 %v6044_v58, %v5416_v5  ;;  %v5418_v3 = vpop.f32.mrb[9].mxu1  ;;  %v6048_v11 = vpop.f32.mrb[10].mxu0 }
 0x379   :  { %v7031_v48 = vadd.f32 %v6046_v63, %v5418_v3  ;;  %v5420_v8 = vpop.f32.mrb[10].mxu1  ;;  %v6050_v13 = vpop.f32.mrb[11].mxu0 }
 0x37a   :  { %v6158_v47 = vadd.f32 %v7030_v17, %v10512_v37  ;;  %v7032_v20 = vadd.f32 %v6048_v11, %v5420_v8  ;;  %v5422_v24 = vpop.f32.mrb[11].mxu1 }
 0x37b   :  { %v6199_v46 = vadd.f32 %v7031_v48, %v6198_v40  ;;  %v7033_v36 = vadd.f32 %v6050_v13, %v5422_v24 }
 0x37c   :  { %v6172_v18 = vmax.f32 %v6158_v47, 0.0  ;;  %v6159_v10 = vadd.f32 %v7032_v20, %v10512_v37 }
 0x37d   :  { %v6200_v2 = vadd.f32 %v7033_v36, %v6199_v46 }
 0x37e   :  { %6186 = vst [vmem:[%s10611_s4 + $0x20] sm:$0xff] %v6172_v18  ;;  %v6173_v38 = vmax.f32 %v6159_v10, 0.0  ;;  %v6054_v52 = vpop.f32.mrb[144].mxu0  ;;  %v10554_v18 = vld [vmem:[%s10610_s3] sm:$0x1] }
 0x37f   :  { %v5426_v57 = vpop.f32.mrb[144].mxu1  ;;  %v6056_v61 = vpop.f32.mrb[145].mxu0 }
 0x380   :  { %6187 = vst [vmem:[%s10611_s4 + $0x28] sm:$0xff] %v6173_v38  ;;  %v5427_v6 = vadd.f32 %v5426_v57, %v10492_v29  ;;  %v5428_v25 = vpop.f32.mrb[145].mxu1  ;;  %v6058_v43 = vpop.f32.mrb[146].mxu0 }
 0x381   :  { %v5429_v31 = vadd.f32 %v5428_v25, %v10495_v39  ;;  %v5430_v60 = vpop.f32.mrb[146].mxu1  ;;  %v6059_v42 = vpop.f32.mrb[147].mxu0 }
 0x382   :  { %v5584_v51 = vadd.f32 %v9769_v30, %v5427_v6  ;;  %v5431_v62 = vpop.f32.mrb[147].mxu1 }
 0x383   :  { %v5586_v35 = vadd.f32 %v9774_v27, %v5429_v31 }
 0x384   :  { %v5741_v50 = vadd.f32 %v10373_v16, %v5584_v51 }
 0x385   :  { %v5743_v0 = vadd.f32 %v10379_v14, %v5586_v35 }
 0x386   :  { %v5898_v56 = vadd.f32 %v10487_v55, %v5741_v50  ;;  %v6062_v54 = vpop.f32.mrb[148].mxu0 }
 0x387   :  { %v5900_v29 = vadd.f32 %v10489_v21, %v5743_v0  ;;  %v5434_v4 = vpop.f32.mrb[148].mxu1  ;;  %v6063_v53 = vpop.f32.mrb[149].mxu0 }
 0x388   :  { %v6055_v15 = vadd.f32 %v6054_v52, %v5898_v56  ;;  %v5435_v39 = vpop.f32.mrb[149].mxu1  ;;  %v6064_v19 = vpop.f32.mrb[150].mxu0 }
 0x389   :  { %v6057_v1 = vadd.f32 %v6056_v61, %v5900_v29  ;;  %v5436_v30 = vpop.f32.mrb[150].mxu1  ;;  %v6065_v45 = vpop.f32.mrb[151].mxu0 }
 0x38a   :  { %v6160_v27 = vadd.f32 %v10512_v37, %v6055_v15  ;;  %v5437_v44 = vpop.f32.mrb[151].mxu1 }
 0x38b   :  { %v6202_v16 = vsel %vm6201_vm1, %v6057_v1, 0.0 }
 0x38c   :  { %v6174_v14 = vmax.f32 %v6160_v27, 0.0  ;;  %v6203_v49 = vadd.f32 %v6202_v16, %v6200_v2 }
 0x38e   :  { %6188 = vst [vmem:[%s10611_s4 + $0x30] sm:$0x1] %v6174_v14  ;;  %v6204_v55 = vrot.slane %v6203_v49, 4  ;;  %v6068_v21 = vpop.f32.mrb[152].mxu0 }
 0x38f   :  { %v5440_v28 = vpop.f32.mrb[152].mxu1  ;;  %v6069_v9 = vpop.f32.mrb[153].mxu0 }
 0x390   :  { %v6205_v59 = vadd.f32 %v6204_v55, %v6203_v49  ;;  %v5441_v40 = vpop.f32.mrb[153].mxu1  ;;  %v6070_v26 = vpop.f32.mrb[154].mxu0 }
 0x391   :  { %v5442_v58 = vpop.f32.mrb[154].mxu1  ;;  %v6071_v5 = vpop.f32.mrb[155].mxu0 }
 0x392   :  { %v6206_v63 = vrot.slane %v6205_v59, 2  ;;  %v5443_v17 = vpop.f32.mrb[155].mxu1 }
 0x394   :  { %v6207_v3 = vadd.f32 %v6206_v63, %v6205_v59 }
 0x396   :  { %v6208_v11 = vrot.slane %v6207_v3, 1  ;;  %v6074_v48 = vpop.f32.mrb[156].mxu0 }
 0x397   :  { %v5446_v8 = vpop.f32.mrb[156].mxu1  ;;  %v6075_v13 = vpop.f32.mrb[157].mxu0 }
 0x398   :  { %v6209_v47 = vadd.f32 %v6208_v11, %v6207_v3  ;;  %v5447_v20 = vpop.f32.mrb[157].mxu1  ;;  %v6076_v24 = vpop.f32.mrb[158].mxu0 }
 0x399   :  { %v5448_v46 = vpop.f32.mrb[158].mxu1  ;;  %v6077_v36 = vpop.f32.mrb[159].mxu0 }
 0x39a   :  { %v6224_v10 = vmul.f32 0.020408163, %v6209_v47  ;;  %v5449_v2 = vpop.f32.mrb[159].mxu1 }
 0x39c   :  { %v6227_v38 = vadd.f32 %v10554_v18, %v6224_v10 }
 0x39e   :  { %v6080_v52 = vpop.f32.mrb[160].mxu0  ;;  %v6229_v57 = vmax.f32 %v6227_v38, 0.0 }
 0x39f   :  { %v5452_v61 = vpop.f32.mrb[160].mxu1  ;;  %v6081_v6 = vpop.f32.mrb[161].mxu0 }
 0x3a0   :  { %v5453_v25 = vpop.f32.mrb[161].mxu1  ;;  %v6082_v43 = vpop.f32.mrb[162].mxu0  ;;  %6231 = vst [vmem:[#allocation3] sm:$0x1] %v6229_v57 }
 0x3a1   :  { %v5454_v31 = vpop.f32.mrb[162].mxu1  ;;  %v6083_v60 = vpop.f32.mrb[163].mxu0 }
 0x3a2   :  { %v5455_v42 = vpop.f32.mrb[163].mxu1 }
 0x3a6   :  { %v6086_v51 = vpop.f32.mrb[32].mxu0 }
 0x3a7   :  { %v5458_v62 = vpop.f32.mrb[32].mxu1  ;;  %v6088_v35 = vpop.f32.mrb[33].mxu0 }
 0x3a8   :  { %v7034_v50 = vadd.f32 %v6086_v51, %v5458_v62  ;;  %v5460_v0 = vpop.f32.mrb[33].mxu1  ;;  %v6090_v56 = vpop.f32.mrb[34].mxu0 }
 0x3a9   :  { %v7035_v54 = vadd.f32 %v6088_v35, %v5460_v0  ;;  %v5462_v29 = vpop.f32.mrb[34].mxu1  ;;  %v6092_v4 = vpop.f32.mrb[35].mxu0 }
 0x3aa   :  { %v6161_v53 = vadd.f32 %v7034_v50, %v10512_v37  ;;  %v7036_v15 = vadd.f32 %v6090_v56, %v5462_v29  ;;  %v5464_v39 = vpop.f32.mrb[35].mxu1 }
 0x3ab   :  { %v7037_v19 = vadd.f32 %v6092_v4, %v5464_v39 }
 0x3ac   :  { %v6175_v1 = vmax.f32 %v6161_v53, 0.0  ;;  %v6162_v30 = vadd.f32 %v7036_v15, %v10512_v37 }
 0x3ad   :  { %v6210_v45 = vadd.f32 %v7037_v19, %v7035_v54 }
 0x3ae   :  { %6189 = vst [vmem:[%s10611_s4 + $0x38] sm:$0xff] %v6175_v1  ;;  %v6176_v27 = vmax.f32 %v6162_v30, 0.0  ;;  %v6096_v44 = vpop.f32.mrb[36].mxu0 }
 0x3af   :  { %v5468_v16 = vpop.f32.mrb[36].mxu1  ;;  %v6098_v14 = vpop.f32.mrb[37].mxu0 }
 0x3b0   :  { %6190 = vst [vmem:[%s10611_s4 + $0x40] sm:$0xff] %v6176_v27  ;;  %v7038_v49 = vadd.f32 %v6096_v44, %v5468_v16  ;;  %v5470_v55 = vpop.f32.mrb[37].mxu1  ;;  %v6100_v21 = vpop.f32.mrb[38].mxu0 }
 0x3b1   :  { %v7039_v28 = vadd.f32 %v6098_v14, %v5470_v55  ;;  %v5472_v9 = vpop.f32.mrb[38].mxu1  ;;  %v6102_v59 = vpop.f32.mrb[39].mxu0 }
 0x3b2   :  { %v6163_v40 = vadd.f32 %v7038_v49, %v10512_v37  ;;  %v7040_v26 = vadd.f32 %v6100_v21, %v5472_v9  ;;  %v5474_v58 = vpop.f32.mrb[39].mxu1 }
 0x3b3   :  { %v6211_v5 = vadd.f32 %v7039_v28, %v6210_v45  ;;  %v7041_v63 = vadd.f32 %v6102_v59, %v5474_v58 }
 0x3b4   :  { %v6177_v17 = vmax.f32 %v6163_v40, 0.0  ;;  %v6164_v3 = vadd.f32 %v7040_v26, %v10512_v37 }
 0x3b5   :  { %v6212_v11 = vadd.f32 %v7041_v63, %v6211_v5 }
 0x3b6   :  { %6191 = vst [vmem:[%s10611_s4 + $0x48] sm:$0xff] %v6177_v17  ;;  %v6178_v48 = vmax.f32 %v6164_v3, 0.0  ;;  %v6106_v8 = vpop.f32.mrb[40].mxu0 }
 0x3b7   :  { %v5478_v13 = vpop.f32.mrb[40].mxu1  ;;  %v6108_v47 = vpop.f32.mrb[41].mxu0 }
 0x3b8   :  { %6192 = vst [vmem:[%s10611_s4 + $0x50] sm:$0xff] %v6178_v48  ;;  %v7042_v20 = vadd.f32 %v6106_v8, %v5478_v13  ;;  %v5480_v24 = vpop.f32.mrb[41].mxu1  ;;  %v6110_v46 = vpop.f32.mrb[42].mxu0 }
 0x3b9   :  { %v7043_v36 = vadd.f32 %v6108_v47, %v5480_v24  ;;  %v5482_v10 = vpop.f32.mrb[42].mxu1  ;;  %v6112_v2 = vpop.f32.mrb[43].mxu0 }
 0x3ba   :  { %v6165_v38 = vadd.f32 %v7042_v20, %v10512_v37  ;;  %v7044_v52 = vadd.f32 %v6110_v46, %v5482_v10  ;;  %v5484_v57 = vpop.f32.mrb[43].mxu1 }
 0x3bb   :  { %v6213_v61 = vadd.f32 %v7043_v36, %v6212_v11  ;;  %v7045_v6 = vadd.f32 %v6112_v2, %v5484_v57 }
 0x3bc   :  { %v6179_v25 = vmax.f32 %v6165_v38, 0.0  ;;  %v6166_v43 = vadd.f32 %v7044_v52, %v10512_v37 }
 0x3bd   :  { %v6214_v31 = vadd.f32 %v7045_v6, %v6213_v61 }
 0x3be   :  { %6193 = vst [vmem:[%s10611_s4 + $0x58] sm:$0xff] %v6179_v25  ;;  %v6180_v60 = vmax.f32 %v6166_v43, 0.0  ;;  %v6116_v42 = vpop.f32.mrb[164].mxu0 }
 0x3bf   :  { %v5488_v51 = vpop.f32.mrb[164].mxu1  ;;  %v6118_v62 = vpop.f32.mrb[165].mxu0 }
 0x3c0   :  { %6194 = vst [vmem:[%s10611_s4 + $0x60] sm:$0xff] %v6180_v60  ;;  %v5489_v35 = vadd.f32 %v5488_v51, %v10504_v12  ;;  %v5490_v50 = vpop.f32.mrb[165].mxu1  ;;  %v6120_v0 = vpop.f32.mrb[166].mxu0 }
 0x3c1   :  { %v5491_v56 = vadd.f32 %v5490_v50, %v10507_v32  ;;  %v5492_v54 = vpop.f32.mrb[166].mxu1  ;;  %v6121_v29 = vpop.f32.mrb[167].mxu0 }
 0x3c2   :  { %v5646_v4 = vadd.f32 %v10069_v33, %v5489_v35  ;;  %v5493_v53 = vpop.f32.mrb[167].mxu1 }
 0x3c3   :  { %v5648_v15 = vadd.f32 %v10077_v34, %v5491_v56 }
 0x3c4   :  { %v5803_v39 = vadd.f32 %v10444_v23, %v5646_v4 }
 0x3c5   :  { %v5805_v19 = vadd.f32 %v10447_v22, %v5648_v15 }
 0x3c6   :  { %v5960_v1 = vadd.f32 %v10499_v41, %v5803_v39  ;;  %v6124_v30 = vpop.f32.mrb[168].mxu0 }
 0x3c7   :  { %v5962_v12 = vadd.f32 %v10501_v7, %v5805_v19  ;;  %v5496_v45 = vpop.f32.mrb[168].mxu1  ;;  %v6125_v27 = vpop.f32.mrb[169].mxu0 }
 0x3c8   :  { %v6117_v44 = vadd.f32 %v6116_v42, %v5960_v1  ;;  %v5497_v32 = vpop.f32.mrb[169].mxu1  ;;  %v6126_v16 = vpop.f32.mrb[170].mxu0 }
 0x3c9   :  { %v6119_v14 = vadd.f32 %v6118_v62, %v5962_v12  ;;  %v5498_v49 = vpop.f32.mrb[170].mxu1  ;;  %v6127_v33 = vpop.f32.mrb[171].mxu0 }
 0x3ca   :  { %v6167_v55 = vadd.f32 %v10512_v37, %v6117_v44  ;;  %v5499_v34 = vpop.f32.mrb[171].mxu1 }
 0x3cb   :  { %v6215_v23 = vsel %vm6201_vm1, %v6119_v14, 0.0 }
 0x3cc   :  { %v6181_v21 = vmax.f32 %v6167_v55, 0.0  ;;  %v6216_v22 = vadd.f32 %v6215_v23, %v6214_v31 }
 0x3ce   :  { %6195 = vst [vmem:[%s10611_s4 + $0x68] sm:$0x1] %v6181_v21  ;;  %v6217_v41 = vrot.slane %v6216_v22, 4  ;;  %v6130_v7 = vpop.f32.mrb[172].mxu0  ;;  %s7859_s4 = smov [#allocation3]  }
 0x3cf   :  { %v5502_v28 = vpop.f32.mrb[172].mxu1  ;;  %v6131_v9 = vpop.f32.mrb[173].mxu0  ;;  %s6240_s18 = sshll.u32 %s7859_s4, 4  ;;  %s6241_s18 = int_to_ptr.vmem [resolvable:$true] %s6240_s18 }
 0x3d0   :  { %v6218_v59 = vadd.f32 %v6217_v41, %v6216_v22  ;;  %v5503_v40 = vpop.f32.mrb[173].mxu1  ;;  %v6132_v26 = vpop.f32.mrb[174].mxu0  ;;  %s7834_s2 = scalar_lea.vmem %s6241_s18, 32  ;;  %p7839_p1 = scmp.lt.s32.totalorder %s6241_s18, %s6241_s18 }
 0x3d1   :  { %v5504_v58 = vpop.f32.mrb[174].mxu1  ;;  %v6133_v5 = vpop.f32.mrb[175].mxu0  ;;  %p7835_p0 = scmp.ne.s32.totalorder %s6241_s18, %s7834_s2  ;;  %p7840_p2 = scmp.lt.s32.totalorder %s7834_s2, %s7834_s2 }
 0x3d2   :  { %v6219_v63 = vrot.slane %v6218_v59, 2  ;;  %v5505_v37 = vpop.f32.mrb[175].mxu1 }
 0x3d3   :  { %p7841_p3 = por %p7840_p2, %p7839_p1 }
 0x3d4   :  { %v6220_v17 = vadd.f32 %v6219_v63, %v6218_v59 }
 0x3d5   :  { %p7842_p4 = pnand %p7841_p3, %p7835_p0 }
 0x3d6   :  { %v6221_v3 = vrot.slane %v6220_v17, 1  ;;  %v6136_v11 = vpop.f32.mrb[176].mxu0 }
 0x3d7   :  { %v5508_v48 = vpop.f32.mrb[176].mxu1  ;;  %v6137_v8 = vpop.f32.mrb[177].mxu0 }
 0x3d8   :  { %v6222_v13 = vadd.f32 %v6221_v3, %v6220_v17  ;;  %v5509_v47 = vpop.f32.mrb[177].mxu1  ;;  %v6138_v20 = vpop.f32.mrb[178].mxu0 }
 0x3d9   :  { %v5510_v24 = vpop.f32.mrb[178].mxu1  ;;  %v6139_v46 = vpop.f32.mrb[179].mxu0 }
 0x3da   :  { %v6225_v36 = vmul.f32 0.020408163, %v6222_v13  ;;  %v5511_v10 = vpop.f32.mrb[179].mxu1 }
 0x3dc   :  { %v6228_v2 = vadd.f32 %v10554_v18, %v6225_v36 }
 0x3de   :  { %v6142_v38 = vpop.f32.mrb[180].mxu0  ;;  %v6230_v52 = vmax.f32 %v6228_v2, 0.0 }
 0x3df   :  { %v5514_v57 = vpop.f32.mrb[180].mxu1  ;;  %v6143_v61 = vpop.f32.mrb[181].mxu0 }
 0x3e0   :  { %v5515_v6 = vpop.f32.mrb[181].mxu1  ;;  %v6144_v25 = vpop.f32.mrb[182].mxu0  ;;  %6232 = vst [vmem:[#allocation3 + $0x1] sm:$0x1] %v6230_v52 }
 0x3e1   :  { %v5516_v43 = vpop.f32.mrb[182].mxu1  ;;  %v6145_v31 = vpop.f32.mrb[183].mxu0 }
 0x3e2   :  { %7845 = shalt.err (!%p7842_p4)
}
 0x3e3   :  { %s7846_s21 = scalar_lea.hbm %s10612_s5, 32 }
 0x3e4   :  { %p7847_p5 = scmp.ne.s32.totalorder %s10612_s5, %s7846_s21  ;;  %p7850_p6 = scmp.lt.u32.totalorder %s7846_s21, %s10612_s5 }
 0x3e6   :  { %p7852_p7 = pnand %p7850_p6, %p7847_p5 }
 0x3e8   :  { %7855 = shalt.err (!%p7852_p7)
}
 0x3e9   :  { %s7860_s26 = smov 16   ;;  %s7861_s27 = smov 1   ;;  %v5517_v18 = vpop.f32.mrb[183].mxu1 }
 0x3ea   :  { %6246 = dma.vmem_to_hbm [thread:$0]  %s6241_s18, 32, %s10612_s5, [#allocation4], %s7860_s26, %s7860_s26, %s7861_s27  }
 0x3eb   :  { %7856 = dma.done.wait [#allocation4], 32  }
 0x3ec   :  { %7857 = vsyncadd [#allocation4], 4294967264 }
 0x3ed   :  { %6252 = vsyncpa [#allocation4], 1 }

</bundles_post_ra>
